<compile_context>
chip_gen: v5e
topology: v5e:2x2
jax: 0.10.0
libtpu: 0.0.40
codegen_flags: <defaults>
</compile_context>

<pallas_src>
import jax
import jax.numpy as jnp
import numpy as np
from jax.experimental import pallas as pl
from jax.experimental.pallas import tpu as pltpu


# ----------------------------------------------------------------------------
# Activation helpers / static layer-act metadata
# ----------------------------------------------------------------------------
def _apply_act(h, act):
    if act == "elu":
        # ELU(alpha=1): x if x > 0 else exp(x) - 1 (clamped arg; ELU(0)=0 keeps padded lanes zero)
        return jnp.where(h > 0, h, jnp.exp(jnp.minimum(h, 0.0)) - 1.0)
    if act == "tanh":
        return jnp.tanh(h)
    return h  # None -> identity (final linear layers)


def _scan_acts(cfg):
    return ["elu"] * (len(cfg["scan_encoder_dims"]) - 1) + ["tanh"]


def _priv_acts(cfg):
    return ["elu"] * len(cfg["priv_encoder_dims"])


def _actor_acts(cfg):
    return ["elu"] * len(cfg["actor_hidden_dims"]) + [None]  # tanh_encoder_output=False


def _critic_acts(cfg):
    return ["elu"] * len(cfg["critic_hidden_dims"]) + [None]


def _round_up(x, m):
    return ((x + m - 1) // m) * m


_CH = 10  # StateHistoryEncoder channel_size


# ----------------------------------------------------------------------------
# Static "program": segment offsets + packed-stack layer indices (depends only on cfg)
# ----------------------------------------------------------------------------
def _make_program(cfg, hist_encoding):
    pad128 = lambda n: _round_up(n, 128)
    nh = cfg["num_hist"]
    scan_dims = cfg["scan_encoder_dims"]
    priv_dims = cfg["priv_encoder_dims"]
    actor_dims = cfg["actor_hidden_dims"]
    critic_dims = cfg["critic_hidden_dims"]
    na = cfg["num_actions"]

    assert all(d <= 128 for d in scan_dims + priv_dims + actor_dims + critic_dims)
    assert na + 1 <= 128

    seg_w_scan = pad128(scan_dims[0])
    seg_w_lat = pad128(3 * _CH * nh) if hist_encoding else pad128(priv_dims[0])
    seg_w_aobs = pad128(actor_dims[0])
    seg_w_crit = pad128(critic_dims[0])
    segs = {
        "scan": (0, seg_w_scan),
        "lat": (seg_w_scan, seg_w_lat),
        "aobs": (seg_w_scan + seg_w_lat, seg_w_aobs),
        "crit": (seg_w_scan + seg_w_lat + seg_w_aobs, seg_w_crit),
    }
    w0_lanes = seg_w_scan + seg_w_lat + seg_w_aobs + seg_w_crit

    idx = 0
    scan_ops = []
    for li in range(1, len(scan_dims)):
        scan_ops.append((idx, "tanh" if li == len(scan_dims) - 1 else "elu"))
        idx += 1
    lat_ops = []
    if hist_encoding:
        lat_ops.append((idx, "elu")); idx += 1   # conv2 (im2col)
        lat_ops.append((idx, "elu")); idx += 1   # linear_output
    else:
        for _ in range(1, len(priv_dims)):
            lat_ops.append((idx, "elu")); idx += 1
    i_wscan = idx; idx += 1                      # actor first layer, scan-latent partial
    i_wlat = idx; idx += 1                       # actor first layer, latent partial
    actor_ops = []
    for _ in range(1, len(actor_dims)):
        actor_ops.append((idx, "elu")); idx += 1
    actor_ops.append((idx, None)); idx += 1      # final -> num_actions (lanes [0, na))
    critic_ops = []
    for _ in range(1, len(critic_dims)):
        critic_ops.append((idx, "elu")); idx += 1
    critic_ops.append((idx, None)); idx += 1     # final -> 1 (placed at lane na)
    n_stack = idx
    hist1_bias_idx = n_stack
    n_bias = n_stack + (1 if hist_encoding else 0)

    return dict(segs=segs, w0_lanes=w0_lanes, scan_ops=tuple(scan_ops), lat_ops=tuple(lat_ops),
                i_wscan=i_wscan, i_wlat=i_wlat, actor_ops=tuple(actor_ops),
                critic_ops=tuple(critic_ops), has_hist1=hist_encoding,
                hist1_bias_idx=hist1_bias_idx, n_stack=n_stack, n_bias=n_bias, num_actions=na)


# ----------------------------------------------------------------------------
# Fused kernel factory
# ----------------------------------------------------------------------------
def _make_kernel(prog):
    segs = prog["segs"]
    has_hist1 = prog["has_hist1"]

    def kernel(obs_ref, w0_ref, b0_ref, *rest):
        if has_hist1:
            whist1_ref, wstk_ref, bstk_ref, out_ref = rest
        else:
            wstk_ref, bstk_ref, out_ref = rest

        obs = obs_ref[...]
        # One combined matmul for every obs-consuming first layer (scan0 | hist0/priv0 | W_obs | critic0)
        h0 = jnp.dot(obs, w0_ref[...], preferred_element_type=jnp.float32) + b0_ref[...]

        def seg(name, act=None):
            off, width = segs[name]
            return _apply_act(h0[:, off:off + width], act)

        def stack_layer(h, idx, act):
            return _apply_act(
                jnp.dot(h, wstk_ref[idx], preferred_element_type=jnp.float32)
                + bstk_ref[idx:idx + 1, :], act)

        # scan encoder
        h_scan = seg("scan", "elu")
        for idx, act in prog["scan_ops"]:
            h_scan = stack_layer(h_scan, idx, act)

        # latent encoder: im2col'd history conv stack or priv MLP
        h_lat = seg("lat", "elu")
        if has_hist1:
            hbi = prog["hist1_bias_idx"]
            h_lat = _apply_act(
                jnp.dot(h_lat, whist1_ref[...], preferred_element_type=jnp.float32)
                + bstk_ref[hbi:hbi + 1, :], "elu")
        for idx, act in prog["lat_ops"]:
            h_lat = stack_layer(h_lat, idx, act)

        # actor backbone: split first layer (obs partial + bias already in h0) then the rest
        h = (seg("aobs")
             + jnp.dot(h_scan, wstk_ref[prog["i_wscan"]], preferred_element_type=jnp.float32)
             + jnp.dot(h_lat, wstk_ref[prog["i_wlat"]], preferred_element_type=jnp.float32))
        h = _apply_act(h, "elu")
        for idx, act in prog["actor_ops"]:
            h = stack_layer(h, idx, act)

        # critic
        c = seg("crit", "elu")
        for idx, act in prog["critic_ops"]:
            c = stack_layer(c, idx, act)

        # lane-dense combined output: mean in lanes [0, A), value in lane A, zeros elsewhere
        out_ref[...] = h + c

    return kernel


# ----------------------------------------------------------------------------
# Batched fused pallas_call: grid over batch rows, weights VMEM-resident
# ----------------------------------------------------------------------------
def _fused_call(obs, operands, kernel, bt=None):
    b, d = obs.shape
    bp8 = _round_up(b, 8)
    if bt is None:
        # default: aim for 2 parallel tiles (v7x megacore); cap the tile at 512 rows
        bt = min(512, max(8, _round_up((bp8 + 1) // 2, 8)))
    bt = min(bt, bp8)
    bp = _round_up(b, bt)
    xp = obs if bp == b else jnp.pad(obs, ((0, bp - b), (0, 0)))

    in_specs = [pl.BlockSpec((bt, d), lambda i: (i, 0))]
    in_specs += [pl.BlockSpec(op.shape, lambda i, nd=op.ndim: (0,) * nd) for op in operands]

    out = pl.pallas_call(
        kernel,
        grid=(bp // bt,),
        in_specs=in_specs,
        out_specs=pl.BlockSpec((bt, 128), lambda i: (i, 0)),
        out_shape=jax.ShapeDtypeStruct((bp, 128), jnp.float32),
        compiler_params=pltpu.CompilerParams(dimension_semantics=("parallel",)),
    )(xp, *operands)
    return out


def make_actor_critic_forward(cfg, hist_encoding, bt=None):
    """Returns a jitted fn(fp, obs) -> (action_mean, value) via one fused pallas_call."""
    prog = _make_program(cfg, hist_encoding)
    kernel = _make_kernel(prog)
    na = cfg["num_actions"]
    key = "hist" if hist_encoding else "priv"

    def fn(fp, obs):
        fpv = fp[key]
        ops = [fpv["w0"], fpv["b0"]]
        if hist_encoding:
            ops.append(fpv["whist1"])
        ops += [fpv["wstk"], fpv["bstk"]]
        out = _fused_call(obs, ops, kernel, bt=bt)
        b = obs.shape[0]
        return out[:b, :na], out[:b, na:na + 1]

    return jax.jit(fn)


# ----------------------------------------------------------------------------
# Deterministic parameters in PyTorch layouts (Linear (out,in)/(out,), Conv1d (out,in,ks)/(out,))
# ----------------------------------------------------------------------------
def _t_linear(key, in_dim, out_dim):
    k1, k2 = jax.random.split(key)
    w = jax.random.normal(k1, (out_dim, in_dim), jnp.float32) / jnp.sqrt(float(in_dim))
    b = jax.random.normal(k2, (out_dim,), jnp.float32) * 0.01
    return w, b


def _t_conv(key, out_ch, in_ch, ks):
    k1, k2 = jax.random.split(key)
    w = jax.random.normal(k1, (out_ch, in_ch, ks), jnp.float32) / jnp.sqrt(float(in_ch * ks))
    b = jax.random.normal(k2, (out_ch,), jnp.float32) * 0.01
    return w, b


def build_torch_params(key, cfg):
    ki = iter(jax.random.split(key, 64))
    p = {}

    dims = [cfg["num_scan"]] + cfg["scan_encoder_dims"]
    p["scan"] = [_t_linear(next(ki), dims[i], dims[i + 1]) for i in range(len(dims) - 1)]

    dims = [cfg["num_priv_latent"]] + cfg["priv_encoder_dims"]
    p["priv"] = [_t_linear(next(ki), dims[i], dims[i + 1]) for i in range(len(dims) - 1)]
    priv_out = cfg["priv_encoder_dims"][-1]

    tsteps = cfg["num_hist"]
    assert tsteps == 10, "this script instantiates the tsteps==10 conv stack"
    hist = {
        "enc": _t_linear(next(ki), cfg["num_prop"], 3 * _CH),
        "conv1": _t_conv(next(ki), 2 * _CH, 3 * _CH, 4), "conv1_cfg": (4, 2),
        "conv2": _t_conv(next(ki), _CH, 2 * _CH, 2), "conv2_cfg": (2, 1),
    }
    l1 = (tsteps - 4) // 2 + 1          # 4
    l2 = (l1 - 2) // 1 + 1              # 3
    hist["lin_out"] = _t_linear(next(ki), _CH * l2, priv_out)
    p["hist"] = hist

    scan_out = cfg["scan_encoder_dims"][-1]
    bb_in = cfg["num_prop"] + scan_out + cfg["num_priv_explicit"] + priv_out
    dims = [bb_in] + cfg["actor_hidden_dims"] + [cfg["num_actions"]]
    p["actor"] = [_t_linear(next(ki), dims[i], dims[i + 1]) for i in range(len(dims) - 1)]

    dims = [cfg["num_critic_obs"]] + cfg["critic_hidden_dims"] + [1]
    p["critic"] = [_t_linear(next(ki), dims[i], dims[i + 1]) for i in range(len(dims) - 1)]

    p["std"] = jnp.ones((cfg["num_actions"],), jnp.float32)   # init_noise_std = 1.0
    return p


# ----------------------------------------------------------------------------
# Packed, lane-padded fused-kernel parameter layouts (built once, numpy -> jnp)
# ----------------------------------------------------------------------------
def _build_variant(tp, cfg, hist_encoding):
    prog = _make_program(cfg, hist_encoding)
    npp, nsc = cfg["num_prop"], cfg["num_scan"]
    npe, npl = cfg["num_priv_explicit"], cfg["num_priv_latent"]
    nh = cfg["num_hist"]
    na = cfg["num_actions"]
    obs_dim = cfg["num_critic_obs"]
    scan_dims, priv_dims = cfg["scan_encoder_dims"], cfg["priv_encoder_dims"]
    actor_dims, critic_dims = cfg["actor_hidden_dims"], cfg["critic_hidden_dims"]
    scan_out, priv_out = scan_dims[-1], priv_dims[-1]

    off_scan_in = npp
    off_pe_in = npp + nsc
    off_pl_in = npp + nsc + npe
    off_hist_in = obs_dim - nh * npp

    segs = prog["segs"]
    w0 = np.zeros((obs_dim, prog["w0_lanes"]), np.float32)
    b0 = np.zeros((1, prog["w0_lanes"]), np.float32)
    wstk = np.zeros((prog["n_stack"], 128, 128), np.float32)
    bstk = np.zeros((prog["n_bias"], 128), np.float32)
    whist1 = None

    def put_stack(idx, w_in_out, b):
        k, n = w_in_out.shape
        wstk[idx, :k, :n] = w_in_out
        if b is not None:
            bstk[idx, :b.shape[0]] = b

    # --- combined obs-consuming first layer (W0 / B0) ---
    so, _ = segs["scan"]
    sw0, sb0 = (np.asarray(a) for a in tp["scan"][0])
    w0[off_scan_in:off_scan_in + nsc, so:so + scan_dims[0]] = sw0.T
    b0[0, so:so + scan_dims[0]] = sb0

    lo, _ = segs["lat"]
    if hist_encoding:
        ew, eb = (np.asarray(a) for a in tp["hist"]["enc"])
        c3 = 3 * _CH
        for t in range(nh):
            w0[off_hist_in + t * npp:off_hist_in + (t + 1) * npp,
               lo + t * c3:lo + (t + 1) * c3] = ew.T
        b0[0, lo:lo + nh * c3] = np.tile(eb, nh)
    else:
        pw0, pb0 = (np.asarray(a) for a in tp["priv"][0])
        w0[off_pl_in:off_pl_in + npl, lo:lo + priv_dims[0]] = pw0.T
        b0[0, lo:lo + priv_dims[0]] = pb0

    ao, _ = segs["aobs"]
    aw0, ab0 = (np.asarray(a) for a in tp["actor"][0])
    h0w = actor_dims[0]
    w0[0:npp, ao:ao + h0w] = aw0[:, 0:npp].T
    w0[off_pe_in:off_pe_in + npe, ao:ao + h0w] = aw0[:, npp + scan_out:npp + scan_out + npe].T
    b0[0, ao:ao + h0w] = ab0

    co, _ = segs["crit"]
    cw0, cb0 = (np.asarray(a) for a in tp["critic"][0])
    assert cw0.shape[1] == obs_dim, "fused actor+critic kernel assumes critic_obs == obs"
    w0[:, co:co + critic_dims[0]] = cw0.T
    b0[0, co:co + critic_dims[0]] = cb0

    # --- scan encoder remaining layers ---
    for (idx, _), (w, b) in zip(prog["scan_ops"], tp["scan"][1:]):
        put_stack(idx, np.asarray(w).T, np.asarray(b))

    # --- latent encoder remaining layers ---
    if hist_encoding:
        hp = tp["hist"]
        c1w, c1b = (np.asarray(a) for a in hp["conv1"]); ks1, st1 = hp["conv1_cfg"]
        c2w, c2b = (np.asarray(a) for a in hp["conv2"]); ks2, st2 = hp["conv2_cfg"]
        low, lob = (np.asarray(a) for a in hp["lin_out"])
        c3, c2 = 3 * _CH, 2 * _CH
        l1 = (nh - ks1) // st1 + 1
        l2 = (l1 - ks2) // st2 + 1
        # conv1 -> wide block-sparse im2col matmul (separate ref, K padded to 128 multiple)
        whist1 = np.zeros((_round_up(nh * c3, 128), 128), np.float32)
        for t in range(l1):
            for k in range(ks1):
                s = t * st1 + k
                whist1[s * c3:(s + 1) * c3, t * c2:(t + 1) * c2] = c1w[:, :, k].T
        bstk[prog["hist1_bias_idx"], :l1 * c2] = np.tile(c1b, l1)
        # conv2 + linear_output go into the (128,128) stack
        i_conv2 = prog["lat_ops"][0][0]
        i_lin = prog["lat_ops"][1][0]
        w2 = np.zeros((l1 * c2, l2 * _CH), np.float32)
        for t in range(l2):
            for k in range(ks2):
                s = t * st2 + k
                w2[s * c2:(s + 1) * c2, t * _CH:(t + 1) * _CH] = c2w[:, :, k].T
        put_stack(i_conv2, w2, np.tile(c2b, l2))
        # torch Flatten of (N, C, L) is C-major; our conv output layout is position-major
        out_dim = low.shape[0]
        w_lo = low.reshape(out_dim, _CH, l2).transpose(2, 1, 0).reshape(l2 * _CH, out_dim)
        put_stack(i_lin, w_lo, lob)
    else:
        for (idx, _), (w, b) in zip(prog["lat_ops"], tp["priv"][1:]):
            put_stack(idx, np.asarray(w).T, np.asarray(b))

    # --- actor backbone first layer: scan-latent / latent partial weights (bias already in B0) ---
    put_stack(prog["i_wscan"], aw0[:, npp:npp + scan_out].T, None)
    put_stack(prog["i_wlat"], aw0[:, npp + scan_out + npe:npp + scan_out + npe + priv_out].T, None)

    # --- actor remaining layers ---
    for (idx, _), (w, b) in zip(prog["actor_ops"], tp["actor"][1:]):
        put_stack(idx, np.asarray(w).T, np.asarray(b))

    # --- critic remaining layers (final single-column layer placed at lane num_actions) ---
    crit_rest = tp["critic"][1:]
    for (idx, _), (w, b) in zip(prog["critic_ops"][:-1], crit_rest[:-1]):
        put_stack(idx, np.asarray(w).T, np.asarray(b))
    idx_last = prog["critic_ops"][-1][0]
    wl, bl = (np.asarray(a) for a in crit_rest[-1])     # (1, K), (1,)
    wstk[idx_last, :wl.shape[1], na:na + 1] = wl.T
    bstk[idx_last, na:na + 1] = bl

    out = dict(w0=jnp.asarray(w0), b0=jnp.asarray(b0),
               wstk=jnp.asarray(wstk), bstk=jnp.asarray(bstk))
    if whist1 is not None:
        out["whist1"] = jnp.asarray(whist1)
    return out


def build_fused_params(tp, cfg):
    return {"hist": _build_variant(tp, cfg, True),
            "priv": _build_variant(tp, cfg, False),
            "std": tp["std"]}


# ----------------------------------------------------------------------------
# Plain-JAX transcription of the PyTorch math (correctness reference only)
# ----------------------------------------------------------------------------
def _ref_mlp(x, layers, acts):
    h = x
    for (w, b), a in zip(layers, acts):
        h = _apply_act(h @ w.T + b, a)
    return h


def _ref_conv1d_ncl(x, w, b, stride):
    cout, cin, ks = w.shape
    lout = (x.shape[2] - ks) // stride + 1
    cols = [jnp.einsum("nck,ock->no", x[:, :, t * stride:t * stride + ks], w) + b
            for t in range(lout)]
    return jnp.stack(cols, axis=2)


def _ref_hist_encoder(hp, hist):      # hist: (nd, T, num_prop)
    nd, T, npp = hist.shape
    ew, eb = hp["enc"]
    proj = _apply_act(hist.reshape(nd * T, npp) @ ew.T + eb, "elu")
    x = proj.reshape(nd, T, -1).transpose(0, 2, 1)            # NCL, like torch permute
    w1, b1 = hp["conv1"]
    h1 = _apply_act(_ref_conv1d_ncl(x, w1, b1, hp["conv1_cfg"][1]), "elu")
    w2, b2 = hp["conv2"]
    h2 = _apply_act(_ref_conv1d_ncl(h1, w2, b2, hp["conv2_cfg"][1]), "elu")
    flat = h2.reshape(nd, -1)                                  # torch Flatten (C-major)
    lw, lb = hp["lin_out"]
    return _apply_act(flat @ lw.T + lb, "elu")


def ref_actor(tp, cfg, obs, hist_encoding):
    npp, nsc = cfg["num_prop"], cfg["num_scan"]
    npe, npl = cfg["num_priv_explicit"], cfg["num_priv_latent"]
    nh = cfg["num_hist"]
    scan_latent = _ref_mlp(obs[:, npp:npp + nsc], tp["scan"], _scan_acts(cfg))
    obs_prop_scan = jnp.concatenate([obs[:, :npp], scan_latent], axis=1)
    obs_pe = obs[:, npp + nsc:npp + nsc + npe]
    if hist_encoding:
        hist = obs[:, -nh * npp:].reshape(-1, nh, npp)
        latent = _ref_hist_encoder(tp["hist"], hist)
    else:
        priv = obs[:, npp + nsc + npe:npp + nsc + npe + npl]
        latent = _ref_mlp(priv, tp["priv"], _priv_acts(cfg))
    backbone_input = jnp.concatenate([obs_prop_scan, obs_pe, latent], axis=1)
    return _ref_mlp(backbone_input, tp["actor"], _actor_acts(cfg))


def ref_critic(tp, cfg, critic_obs):
    return _ref_mlp(critic_obs, tp["critic"], _critic_acts(cfg))


# TODO(synk): torch.distributions.Normal sample/log_prob/entropy are host-side distribution
# utilities, not kernel compute; only the mean and std tensors are produced here.
# TODO(synk): if critic_obs ever differs from the actor obs, the critic chain would need its own
# (tiny) pallas_call instead of riding the fused kernel.


if __name__ == "__main__":
    cfg = dict(
        num_prop=8,
        num_scan=32,
        num_priv_explicit=4,
        num_priv_latent=8,
        num_hist=10,
        num_actions=4,
        scan_encoder_dims=[32, 32, 16],
        actor_hidden_dims=[32, 32, 32],
        critic_hidden_dims=[32, 32, 32],
        priv_encoder_dims=[16, 8],
    )
    obs_dim = (cfg["num_prop"] + cfg["num_scan"] + cfg["num_priv_explicit"]
               + cfg["num_priv_latent"] + cfg["num_hist"] * cfg["num_prop"])
    cfg["num_critic_obs"] = obs_dim

    key = jax.random.PRNGKey(0)
    k_param, k_obs = jax.random.split(key)
    tp = build_torch_params(k_param, cfg)
    fp = build_fused_params(tp, cfg)

    batch = 256                          # default tiling -> two 128-row parallel tiles
    obs = jax.random.normal(k_obs, (batch, obs_dim), jnp.float32)

    fwd_hist = make_actor_critic_forward(cfg, hist_encoding=True)
    fwd_priv = make_actor_critic_forward(cfg, hist_encoding=False)

    mean_hist, value_h = fwd_hist(fp, obs)   # act_inference (history encoding) + evaluate
    mean_priv, value_p = fwd_priv(fp, obs)   # act_inference (privileged latent) + evaluate
    action_std = mean_hist * 0.0 + fp["std"]  # Normal(mean, mean*0 + std) parameters
    jax.block_until_ready((mean_hist, mean_priv, value_h, value_p, action_std))

    # validate the fused kernel against the plain-JAX transcription of the torch math
    ref_h = ref_actor(tp, cfg, obs, True)
    ref_p = ref_actor(tp, cfg, obs, False)
    ref_v = ref_critic(tp, cfg, obs)

    assert mean_hist.shape == (batch, cfg["num_actions"])
    assert mean_priv.shape == (batch, cfg["num_actions"])
    assert value_h.shape == (batch, 1) and value_p.shape == (batch, 1)
    assert action_std.shape == (batch, cfg["num_actions"])
    assert bool(jnp.all(jnp.isfinite(mean_hist)))
    assert bool(jnp.all(jnp.isfinite(mean_priv)))
    assert bool(jnp.all(jnp.isfinite(value_h)))
    assert bool(jnp.allclose(mean_hist, ref_h, atol=1e-2, rtol=1e-2))
    assert bool(jnp.allclose(mean_priv, ref_p, atol=1e-2, rtol=1e-2))
    assert bool(jnp.allclose(value_h, ref_v, atol=1e-2, rtol=1e-2))
    assert bool(jnp.allclose(value_p, ref_v, atol=1e-2, rtol=1e-2))

    print("KERNEL_OK")
</pallas_src>

<mosaic_0001>
module attributes {stable_mosaic.version = 11 : i64} {
  func.func @kernel(%arg0: i32, %arg1: memref<128x132xf32, #tpu.memory_space<vmem>>, %arg2: memref<132x768xf32, #tpu.memory_space<vmem>>, %arg3: memref<1x768xf32, #tpu.memory_space<vmem>>, %arg4: memref<384x128xf32, #tpu.memory_space<vmem>>, %arg5: memref<12x128x128xf32, #tpu.memory_space<vmem>>, %arg6: memref<13x128xf32, #tpu.memory_space<vmem>>, %arg7: memref<128x128xf32, #tpu.memory_space<vmem>>) attributes {dimension_semantics = [#tpu.dimension_semantics<parallel>], iteration_bounds = array<i64: 2>, scalar_prefetch = 0 : i64, scratch_operands = 0 : i64, tpu.core_type = #tpu.core_type<tc>, window_params = [{transform_indices = @transform_0, window_bounds = array<i64: 128, 132>}, {pipeline_mode = #tpu.pipeline_mode<synchronous>, transform_indices = @transform_1, window_bounds = array<i64: 132, 768>}, {pipeline_mode = #tpu.pipeline_mode<synchronous>, transform_indices = @transform_2, window_bounds = array<i64: 1, 768>}, {pipeline_mode = #tpu.pipeline_mode<synchronous>, transform_indices = @transform_3, window_bounds = array<i64: 384, 128>}, {pipeline_mode = #tpu.pipeline_mode<synchronous>, transform_indices = @transform_4, window_bounds = array<i64: 12, 128, 128>}, {pipeline_mode = #tpu.pipeline_mode<synchronous>, transform_indices = @transform_5, window_bounds = array<i64: 13, 128>}, {transform_indices = @transform_6, window_bounds = array<i64: 128, 128>}]} {
    %c0 = arith.constant 0 : index
    %c0_0 = arith.constant 0 : index
    %0 = vector.load %arg1[%c0, %c0_0] : memref<128x132xf32, #tpu.memory_space<vmem>>, vector<128x132xf32>
    %c0_1 = arith.constant 0 : index
    %c0_2 = arith.constant 0 : index
    %1 = vector.load %arg2[%c0_1, %c0_2] : memref<132x768xf32, #tpu.memory_space<vmem>>, vector<132x768xf32>
    %cst = arith.constant dense<0.000000e+00> : vector<128x768xf32>
    %2 = tpu.matmul %0, %1, %cst {dimension_numbers = #tpu.dot_dimension_numbers<[1], [0], [0], [1], [0, 0, 1, 1], [], []>} : vector<128x132xf32>, vector<132x768xf32>, vector<128x768xf32> -> vector<128x768xf32>
    %c0_3 = arith.constant 0 : index
    %c0_4 = arith.constant 0 : index
    %3 = vector.load %arg3[%c0_3, %c0_4] : memref<1x768xf32, #tpu.memory_space<vmem>>, vector<1x768xf32>
    %4 = vector.broadcast %3 : vector<1x768xf32> to vector<128x768xf32>
    %5 = arith.addf %2, %4 : vector<128x768xf32>
    %6 = vector.extract_strided_slice %5 {offsets = [0, 0], sizes = [128, 128], strides = [1, 1]} : vector<128x768xf32> to vector<128x128xf32>
    %cst_5 = arith.constant 0.000000e+00 : f32
    %7 = vector.broadcast %cst_5 : f32 to vector<128x128xf32>
    %8 = arith.cmpf ogt, %6, %7 : vector<128x128xf32>
    %cst_6 = arith.constant 0.000000e+00 : f32
    %9 = vector.broadcast %cst_6 : f32 to vector<128x128xf32>
    %10 = arith.minimumf %6, %9 : vector<128x128xf32>
    %11 = math.exp %10 : vector<128x128xf32>
    %cst_7 = arith.constant 1.000000e+00 : f32
    %12 = vector.broadcast %cst_7 : f32 to vector<128x128xf32>
    %13 = arith.subf %11, %12 : vector<128x128xf32>
    %14 = arith.select %8, %6, %13 : vector<128x128xi1>, vector<128x128xf32>
    %c0_8 = arith.constant 0 : index
    %c0_9 = arith.constant 0 : index
    %c0_10 = arith.constant 0 : index
    %15 = vector.load %arg5[%c0_8, %c0_9, %c0_10] : memref<12x128x128xf32, #tpu.memory_space<vmem>>, vector<1x128x128xf32>
    %16 = vector.shape_cast %15 : vector<1x128x128xf32> to vector<128x128xf32>
    %cst_11 = arith.constant dense<0.000000e+00> : vector<128x128xf32>
    %17 = tpu.matmul %14, %16, %cst_11 {dimension_numbers = #tpu.dot_dimension_numbers<[1], [0], [0], [1], [0, 0, 1, 1], [], []>} : vector<128x128xf32>, vector<128x128xf32>, vector<128x128xf32> -> vector<128x128xf32>
    %c0_12 = arith.constant 0 : index
    %c0_13 = arith.constant 0 : index
    %18 = vector.load %arg6[%c0_12, %c0_13] : memref<13x128xf32, #tpu.memory_space<vmem>>, vector<1x128xf32>
    %19 = vector.broadcast %18 : vector<1x128xf32> to vector<128x128xf32>
    %20 = arith.addf %17, %19 : vector<128x128xf32>
    %cst_14 = arith.constant 0.000000e+00 : f32
    %21 = vector.broadcast %cst_14 : f32 to vector<128x128xf32>
    %22 = arith.cmpf ogt, %20, %21 : vector<128x128xf32>
    %cst_15 = arith.constant 0.000000e+00 : f32
    %23 = vector.broadcast %cst_15 : f32 to vector<128x128xf32>
    %24 = arith.minimumf %20, %23 : vector<128x128xf32>
    %25 = math.exp %24 : vector<128x128xf32>
    %cst_16 = arith.constant 1.000000e+00 : f32
    %26 = vector.broadcast %cst_16 : f32 to vector<128x128xf32>
    %27 = arith.subf %25, %26 : vector<128x128xf32>
    %28 = arith.select %22, %20, %27 : vector<128x128xi1>, vector<128x128xf32>
    %c1 = arith.constant 1 : index
    %c0_17 = arith.constant 0 : index
    %c0_18 = arith.constant 0 : index
    %29 = vector.load %arg5[%c1, %c0_17, %c0_18] : memref<12x128x128xf32, #tpu.memory_space<vmem>>, vector<1x128x128xf32>
    %30 = vector.shape_cast %29 : vector<1x128x128xf32> to vector<128x128xf32>
    %cst_19 = arith.constant dense<0.000000e+00> : vector<128x128xf32>
    %31 = tpu.matmul %28, %30, %cst_19 {dimension_numbers = #tpu.dot_dimension_numbers<[1], [0], [0], [1], [0, 0, 1, 1], [], []>} : vector<128x128xf32>, vector<128x128xf32>, vector<128x128xf32> -> vector<128x128xf32>
    %c1_20 = arith.constant 1 : index
    %c0_21 = arith.constant 0 : index
    %32 = vector.load %arg6[%c1_20, %c0_21] : memref<13x128xf32, #tpu.memory_space<vmem>>, vector<1x128xf32>
    %33 = vector.broadcast %32 : vector<1x128xf32> to vector<128x128xf32>
    %34 = arith.addf %31, %33 : vector<128x128xf32>
    %35 = math.tanh %34 : vector<128x128xf32>
    %36 = vector.extract_strided_slice %5 {offsets = [0, 128], sizes = [128, 384], strides = [1, 1]} : vector<128x768xf32> to vector<128x384xf32>
    %cst_22 = arith.constant 0.000000e+00 : f32
    %37 = vector.broadcast %cst_22 : f32 to vector<128x384xf32>
    %38 = arith.cmpf ogt, %36, %37 : vector<128x384xf32>
    %cst_23 = arith.constant 0.000000e+00 : f32
    %39 = vector.broadcast %cst_23 : f32 to vector<128x384xf32>
    %40 = arith.minimumf %36, %39 : vector<128x384xf32>
    %41 = math.exp %40 : vector<128x384xf32>
    %cst_24 = arith.constant 1.000000e+00 : f32
    %42 = vector.broadcast %cst_24 : f32 to vector<128x384xf32>
    %43 = arith.subf %41, %42 : vector<128x384xf32>
    %44 = arith.select %38, %36, %43 : vector<128x384xi1>, vector<128x384xf32>
    %c0_25 = arith.constant 0 : index
    %c0_26 = arith.constant 0 : index
    %45 = vector.load %arg4[%c0_25, %c0_26] : memref<384x128xf32, #tpu.memory_space<vmem>>, vector<384x128xf32>
    %cst_27 = arith.constant dense<0.000000e+00> : vector<128x128xf32>
    %46 = tpu.matmul %44, %45, %cst_27 {dimension_numbers = #tpu.dot_dimension_numbers<[1], [0], [0], [1], [0, 0, 1, 1], [], []>} : vector<128x384xf32>, vector<384x128xf32>, vector<128x128xf32> -> vector<128x128xf32>
    %c12 = arith.constant 12 : index
    %c0_28 = arith.constant 0 : index
    %47 = vector.load %arg6[%c12, %c0_28] : memref<13x128xf32, #tpu.memory_space<vmem>>, vector<1x128xf32>
    %48 = vector.broadcast %47 : vector<1x128xf32> to vector<128x128xf32>
    %49 = arith.addf %46, %48 : vector<128x128xf32>
    %cst_29 = arith.constant 0.000000e+00 : f32
    %50 = vector.broadcast %cst_29 : f32 to vector<128x128xf32>
    %51 = arith.cmpf ogt, %49, %50 : vector<128x128xf32>
    %cst_30 = arith.constant 0.000000e+00 : f32
    %52 = vector.broadcast %cst_30 : f32 to vector<128x128xf32>
    %53 = arith.minimumf %49, %52 : vector<128x128xf32>
    %54 = math.exp %53 : vector<128x128xf32>
    %cst_31 = arith.constant 1.000000e+00 : f32
    %55 = vector.broadcast %cst_31 : f32 to vector<128x128xf32>
    %56 = arith.subf %54, %55 : vector<128x128xf32>
    %57 = arith.select %51, %49, %56 : vector<128x128xi1>, vector<128x128xf32>
    %c2 = arith.constant 2 : index
    %c0_32 = arith.constant 0 : index
    %c0_33 = arith.constant 0 : index
    %58 = vector.load %arg5[%c2, %c0_32, %c0_33] : memref<12x128x128xf32, #tpu.memory_space<vmem>>, vector<1x128x128xf32>
    %59 = vector.shape_cast %58 : vector<1x128x128xf32> to vector<128x128xf32>
    %cst_34 = arith.constant dense<0.000000e+00> : vector<128x128xf32>
    %60 = tpu.matmul %57, %59, %cst_34 {dimension_numbers = #tpu.dot_dimension_numbers<[1], [0], [0], [1], [0, 0, 1, 1], [], []>} : vector<128x128xf32>, vector<128x128xf32>, vector<128x128xf32> -> vector<128x128xf32>
    %c2_35 = arith.constant 2 : index
    %c0_36 = arith.constant 0 : index
    %61 = vector.load %arg6[%c2_35, %c0_36] : memref<13x128xf32, #tpu.memory_space<vmem>>, vector<1x128xf32>
    %62 = vector.broadcast %61 : vector<1x128xf32> to vector<128x128xf32>
    %63 = arith.addf %60, %62 : vector<128x128xf32>
    %cst_37 = arith.constant 0.000000e+00 : f32
    %64 = vector.broadcast %cst_37 : f32 to vector<128x128xf32>
    %65 = arith.cmpf ogt, %63, %64 : vector<128x128xf32>
    %cst_38 = arith.constant 0.000000e+00 : f32
    %66 = vector.broadcast %cst_38 : f32 to vector<128x128xf32>
    %67 = arith.minimumf %63, %66 : vector<128x128xf32>
    %68 = math.exp %67 : vector<128x128xf32>
    %cst_39 = arith.constant 1.000000e+00 : f32
    %69 = vector.broadcast %cst_39 : f32 to vector<128x128xf32>
    %70 = arith.subf %68, %69 : vector<128x128xf32>
    %71 = arith.select %65, %63, %70 : vector<128x128xi1>, vector<128x128xf32>
    %c3 = arith.constant 3 : index
    %c0_40 = arith.constant 0 : index
    %c0_41 = arith.constant 0 : index
    %72 = vector.load %arg5[%c3, %c0_40, %c0_41] : memref<12x128x128xf32, #tpu.memory_space<vmem>>, vector<1x128x128xf32>
    %73 = vector.shape_cast %72 : vector<1x128x128xf32> to vector<128x128xf32>
    %cst_42 = arith.constant dense<0.000000e+00> : vector<128x128xf32>
    %74 = tpu.matmul %71, %73, %cst_42 {dimension_numbers = #tpu.dot_dimension_numbers<[1], [0], [0], [1], [0, 0, 1, 1], [], []>} : vector<128x128xf32>, vector<128x128xf32>, vector<128x128xf32> -> vector<128x128xf32>
    %c3_43 = arith.constant 3 : index
    %c0_44 = arith.constant 0 : index
    %75 = vector.load %arg6[%c3_43, %c0_44] : memref<13x128xf32, #tpu.memory_space<vmem>>, vector<1x128xf32>
    %76 = vector.broadcast %75 : vector<1x128xf32> to vector<128x128xf32>
    %77 = arith.addf %74, %76 : vector<128x128xf32>
    %cst_45 = arith.constant 0.000000e+00 : f32
    %78 = vector.broadcast %cst_45 : f32 to vector<128x128xf32>
    %79 = arith.cmpf ogt, %77, %78 : vector<128x128xf32>
    %cst_46 = arith.constant 0.000000e+00 : f32
    %80 = vector.broadcast %cst_46 : f32 to vector<128x128xf32>
    %81 = arith.minimumf %77, %80 : vector<128x128xf32>
    %82 = math.exp %81 : vector<128x128xf32>
    %cst_47 = arith.constant 1.000000e+00 : f32
    %83 = vector.broadcast %cst_47 : f32 to vector<128x128xf32>
    %84 = arith.subf %82, %83 : vector<128x128xf32>
    %85 = arith.select %79, %77, %84 : vector<128x128xi1>, vector<128x128xf32>
    %86 = vector.extract_strided_slice %5 {offsets = [0, 512], sizes = [128, 128], strides = [1, 1]} : vector<128x768xf32> to vector<128x128xf32>
    %c4 = arith.constant 4 : index
    %c0_48 = arith.constant 0 : index
    %c0_49 = arith.constant 0 : index
    %87 = vector.load %arg5[%c4, %c0_48, %c0_49] : memref<12x128x128xf32, #tpu.memory_space<vmem>>, vector<1x128x128xf32>
    %88 = vector.shape_cast %87 : vector<1x128x128xf32> to vector<128x128xf32>
    %cst_50 = arith.constant dense<0.000000e+00> : vector<128x128xf32>
    %89 = tpu.matmul %35, %88, %cst_50 {dimension_numbers = #tpu.dot_dimension_numbers<[1], [0], [0], [1], [0, 0, 1, 1], [], []>} : vector<128x128xf32>, vector<128x128xf32>, vector<128x128xf32> -> vector<128x128xf32>
    %90 = arith.addf %86, %89 : vector<128x128xf32>
    %c5 = arith.constant 5 : index
    %c0_51 = arith.constant 0 : index
    %c0_52 = arith.constant 0 : index
    %91 = vector.load %arg5[%c5, %c0_51, %c0_52] : memref<12x128x128xf32, #tpu.memory_space<vmem>>, vector<1x128x128xf32>
    %92 = vector.shape_cast %91 : vector<1x128x128xf32> to vector<128x128xf32>
    %cst_53 = arith.constant dense<0.000000e+00> : vector<128x128xf32>
    %93 = tpu.matmul %85, %92, %cst_53 {dimension_numbers = #tpu.dot_dimension_numbers<[1], [0], [0], [1], [0, 0, 1, 1], [], []>} : vector<128x128xf32>, vector<128x128xf32>, vector<128x128xf32> -> vector<128x128xf32>
    %94 = arith.addf %90, %93 : vector<128x128xf32>
    %cst_54 = arith.constant 0.000000e+00 : f32
    %95 = vector.broadcast %cst_54 : f32 to vector<128x128xf32>
    %96 = arith.cmpf ogt, %94, %95 : vector<128x128xf32>
    %cst_55 = arith.constant 0.000000e+00 : f32
    %97 = vector.broadcast %cst_55 : f32 to vector<128x128xf32>
    %98 = arith.minimumf %94, %97 : vector<128x128xf32>
    %99 = math.exp %98 : vector<128x128xf32>
    %cst_56 = arith.constant 1.000000e+00 : f32
    %100 = vector.broadcast %cst_56 : f32 to vector<128x128xf32>
    %101 = arith.subf %99, %100 : vector<128x128xf32>
    %102 = arith.select %96, %94, %101 : vector<128x128xi1>, vector<128x128xf32>
    %c6 = arith.constant 6 : index
    %c0_57 = arith.constant 0 : index
    %c0_58 = arith.constant 0 : index
    %103 = vector.load %arg5[%c6, %c0_57, %c0_58] : memref<12x128x128xf32, #tpu.memory_space<vmem>>, vector<1x128x128xf32>
    %104 = vector.shape_cast %103 : vector<1x128x128xf32> to vector<128x128xf32>
    %cst_59 = arith.constant dense<0.000000e+00> : vector<128x128xf32>
    %105 = tpu.matmul %102, %104, %cst_59 {dimension_numbers = #tpu.dot_dimension_numbers<[1], [0], [0], [1], [0, 0, 1, 1], [], []>} : vector<128x128xf32>, vector<128x128xf32>, vector<128x128xf32> -> vector<128x128xf32>
    %c6_60 = arith.constant 6 : index
    %c0_61 = arith.constant 0 : index
    %106 = vector.load %arg6[%c6_60, %c0_61] : memref<13x128xf32, #tpu.memory_space<vmem>>, vector<1x128xf32>
    %107 = vector.broadcast %106 : vector<1x128xf32> to vector<128x128xf32>
    %108 = arith.addf %105, %107 : vector<128x128xf32>
    %cst_62 = arith.constant 0.000000e+00 : f32
    %109 = vector.broadcast %cst_62 : f32 to vector<128x128xf32>
    %110 = arith.cmpf ogt, %108, %109 : vector<128x128xf32>
    %cst_63 = arith.constant 0.000000e+00 : f32
    %111 = vector.broadcast %cst_63 : f32 to vector<128x128xf32>
    %112 = arith.minimumf %108, %111 : vector<128x128xf32>
    %113 = math.exp %112 : vector<128x128xf32>
    %cst_64 = arith.constant 1.000000e+00 : f32
    %114 = vector.broadcast %cst_64 : f32 to vector<128x128xf32>
    %115 = arith.subf %113, %114 : vector<128x128xf32>
    %116 = arith.select %110, %108, %115 : vector<128x128xi1>, vector<128x128xf32>
    %c7 = arith.constant 7 : index
    %c0_65 = arith.constant 0 : index
    %c0_66 = arith.constant 0 : index
    %117 = vector.load %arg5[%c7, %c0_65, %c0_66] : memref<12x128x128xf32, #tpu.memory_space<vmem>>, vector<1x128x128xf32>
    %118 = vector.shape_cast %117 : vector<1x128x128xf32> to vector<128x128xf32>
    %cst_67 = arith.constant dense<0.000000e+00> : vector<128x128xf32>
    %119 = tpu.matmul %116, %118, %cst_67 {dimension_numbers = #tpu.dot_dimension_numbers<[1], [0], [0], [1], [0, 0, 1, 1], [], []>} : vector<128x128xf32>, vector<128x128xf32>, vector<128x128xf32> -> vector<128x128xf32>
    %c7_68 = arith.constant 7 : index
    %c0_69 = arith.constant 0 : index
    %120 = vector.load %arg6[%c7_68, %c0_69] : memref<13x128xf32, #tpu.memory_space<vmem>>, vector<1x128xf32>
    %121 = vector.broadcast %120 : vector<1x128xf32> to vector<128x128xf32>
    %122 = arith.addf %119, %121 : vector<128x128xf32>
    %cst_70 = arith.constant 0.000000e+00 : f32
    %123 = vector.broadcast %cst_70 : f32 to vector<128x128xf32>
    %124 = arith.cmpf ogt, %122, %123 : vector<128x128xf32>
    %cst_71 = arith.constant 0.000000e+00 : f32
    %125 = vector.broadcast %cst_71 : f32 to vector<128x128xf32>
    %126 = arith.minimumf %122, %125 : vector<128x128xf32>
    %127 = math.exp %126 : vector<128x128xf32>
    %cst_72 = arith.constant 1.000000e+00 : f32
    %128 = vector.broadcast %cst_72 : f32 to vector<128x128xf32>
    %129 = arith.subf %127, %128 : vector<128x128xf32>
    %130 = arith.select %124, %122, %129 : vector<128x128xi1>, vector<128x128xf32>
    %c8 = arith.constant 8 : index
    %c0_73 = arith.constant 0 : index
    %c0_74 = arith.constant 0 : index
    %131 = vector.load %arg5[%c8, %c0_73, %c0_74] : memref<12x128x128xf32, #tpu.memory_space<vmem>>, vector<1x128x128xf32>
    %132 = vector.shape_cast %131 : vector<1x128x128xf32> to vector<128x128xf32>
    %cst_75 = arith.constant dense<0.000000e+00> : vector<128x128xf32>
    %133 = tpu.matmul %130, %132, %cst_75 {dimension_numbers = #tpu.dot_dimension_numbers<[1], [0], [0], [1], [0, 0, 1, 1], [], []>} : vector<128x128xf32>, vector<128x128xf32>, vector<128x128xf32> -> vector<128x128xf32>
    %c8_76 = arith.constant 8 : index
    %c0_77 = arith.constant 0 : index
    %134 = vector.load %arg6[%c8_76, %c0_77] : memref<13x128xf32, #tpu.memory_space<vmem>>, vector<1x128xf32>
    %135 = vector.broadcast %134 : vector<1x128xf32> to vector<128x128xf32>
    %136 = arith.addf %133, %135 : vector<128x128xf32>
    %137 = vector.extract_strided_slice %5 {offsets = [0, 640], sizes = [128, 128], strides = [1, 1]} : vector<128x768xf32> to vector<128x128xf32>
    %cst_78 = arith.constant 0.000000e+00 : f32
    %138 = vector.broadcast %cst_78 : f32 to vector<128x128xf32>
    %139 = arith.cmpf ogt, %137, %138 : vector<128x128xf32>
    %cst_79 = arith.constant 0.000000e+00 : f32
    %140 = vector.broadcast %cst_79 : f32 to vector<128x128xf32>
    %141 = arith.minimumf %137, %140 : vector<128x128xf32>
    %142 = math.exp %141 : vector<128x128xf32>
    %cst_80 = arith.constant 1.000000e+00 : f32
    %143 = vector.broadcast %cst_80 : f32 to vector<128x128xf32>
    %144 = arith.subf %142, %143 : vector<128x128xf32>
    %145 = arith.select %139, %137, %144 : vector<128x128xi1>, vector<128x128xf32>
    %c9 = arith.constant 9 : index
    %c0_81 = arith.constant 0 : index
    %c0_82 = arith.constant 0 : index
    %146 = vector.load %arg5[%c9, %c0_81, %c0_82] : memref<12x128x128xf32, #tpu.memory_space<vmem>>, vector<1x128x128xf32>
    %147 = vector.shape_cast %146 : vector<1x128x128xf32> to vector<128x128xf32>
    %cst_83 = arith.constant dense<0.000000e+00> : vector<128x128xf32>
    %148 = tpu.matmul %145, %147, %cst_83 {dimension_numbers = #tpu.dot_dimension_numbers<[1], [0], [0], [1], [0, 0, 1, 1], [], []>} : vector<128x128xf32>, vector<128x128xf32>, vector<128x128xf32> -> vector<128x128xf32>
    %c9_84 = arith.constant 9 : index
    %c0_85 = arith.constant 0 : index
    %149 = vector.load %arg6[%c9_84, %c0_85] : memref<13x128xf32, #tpu.memory_space<vmem>>, vector<1x128xf32>
    %150 = vector.broadcast %149 : vector<1x128xf32> to vector<128x128xf32>
    %151 = arith.addf %148, %150 : vector<128x128xf32>
    %cst_86 = arith.constant 0.000000e+00 : f32
    %152 = vector.broadcast %cst_86 : f32 to vector<128x128xf32>
    %153 = arith.cmpf ogt, %151, %152 : vector<128x128xf32>
    %cst_87 = arith.constant 0.000000e+00 : f32
    %154 = vector.broadcast %cst_87 : f32 to vector<128x128xf32>
    %155 = arith.minimumf %151, %154 : vector<128x128xf32>
    %156 = math.exp %155 : vector<128x128xf32>
    %cst_88 = arith.constant 1.000000e+00 : f32
    %157 = vector.broadcast %cst_88 : f32 to vector<128x128xf32>
    %158 = arith.subf %156, %157 : vector<128x128xf32>
    %159 = arith.select %153, %151, %158 : vector<128x128xi1>, vector<128x128xf32>
    %c10 = arith.constant 10 : index
    %c0_89 = arith.constant 0 : index
    %c0_90 = arith.constant 0 : index
    %160 = vector.load %arg5[%c10, %c0_89, %c0_90] : memref<12x128x128xf32, #tpu.memory_space<vmem>>, vector<1x128x128xf32>
    %161 = vector.shape_cast %160 : vector<1x128x128xf32> to vector<128x128xf32>
    %cst_91 = arith.constant dense<0.000000e+00> : vector<128x128xf32>
    %162 = tpu.matmul %159, %161, %cst_91 {dimension_numbers = #tpu.dot_dimension_numbers<[1], [0], [0], [1], [0, 0, 1, 1], [], []>} : vector<128x128xf32>, vector<128x128xf32>, vector<128x128xf32> -> vector<128x128xf32>
    %c10_92 = arith.constant 10 : index
    %c0_93 = arith.constant 0 : index
    %163 = vector.load %arg6[%c10_92, %c0_93] : memref<13x128xf32, #tpu.memory_space<vmem>>, vector<1x128xf32>
    %164 = vector.broadcast %163 : vector<1x128xf32> to vector<128x128xf32>
    %165 = arith.addf %162, %164 : vector<128x128xf32>
    %cst_94 = arith.constant 0.000000e+00 : f32
    %166 = vector.broadcast %cst_94 : f32 to vector<128x128xf32>
    %167 = arith.cmpf ogt, %165, %166 : vector<128x128xf32>
    %cst_95 = arith.constant 0.000000e+00 : f32
    %168 = vector.broadcast %cst_95 : f32 to vector<128x128xf32>
    %169 = arith.minimumf %165, %168 : vector<128x128xf32>
    %170 = math.exp %169 : vector<128x128xf32>
    %cst_96 = arith.constant 1.000000e+00 : f32
    %171 = vector.broadcast %cst_96 : f32 to vector<128x128xf32>
    %172 = arith.subf %170, %171 : vector<128x128xf32>
    %173 = arith.select %167, %165, %172 : vector<128x128xi1>, vector<128x128xf32>
    %c11 = arith.constant 11 : index
    %c0_97 = arith.constant 0 : index
    %c0_98 = arith.constant 0 : index
    %174 = vector.load %arg5[%c11, %c0_97, %c0_98] : memref<12x128x128xf32, #tpu.memory_space<vmem>>, vector<1x128x128xf32>
    %175 = vector.shape_cast %174 : vector<1x128x128xf32> to vector<128x128xf32>
    %cst_99 = arith.constant dense<0.000000e+00> : vector<128x128xf32>
    %176 = tpu.matmul %173, %175, %cst_99 {dimension_numbers = #tpu.dot_dimension_numbers<[1], [0], [0], [1], [0, 0, 1, 1], [], []>} : vector<128x128xf32>, vector<128x128xf32>, vector<128x128xf32> -> vector<128x128xf32>
    %c11_100 = arith.constant 11 : index
    %c0_101 = arith.constant 0 : index
    %177 = vector.load %arg6[%c11_100, %c0_101] : memref<13x128xf32, #tpu.memory_space<vmem>>, vector<1x128xf32>
    %178 = vector.broadcast %177 : vector<1x128xf32> to vector<128x128xf32>
    %179 = arith.addf %176, %178 : vector<128x128xf32>
    %180 = arith.addf %136, %179 : vector<128x128xf32>
    %c0_102 = arith.constant 0 : index
    %c0_103 = arith.constant 0 : index
    %181 = vector.load %arg7[%c0_102, %c0_103] : memref<128x128xf32, #tpu.memory_space<vmem>>, vector<128x128xf32>
    tpu.vector_store %arg7[%c0_102, %c0_103], %180 {strides = array<i32>} : memref<128x128xf32, #tpu.memory_space<vmem>>, vector<128x128xf32>,
    return
  }
  func.func @transform_0(%arg0: i32) -> (i32, i32) {
    %c0_i32 = arith.constant 0 : i32
    %c0_i32_0 = arith.constant 0 : i32
    return %arg0, %c0_i32 : i32, i32
  }
  func.func @transform_1(%arg0: i32) -> (i32, i32) {
    %c0_i32 = arith.constant 0 : i32
    %c0_i32_0 = arith.constant 0 : i32
    %c0_i32_1 = arith.constant 0 : i32
    return %c0_i32, %c0_i32_0 : i32, i32
  }
  func.func @transform_2(%arg0: i32) -> (i32, i32) {
    %c0_i32 = arith.constant 0 : i32
    %c0_i32_0 = arith.constant 0 : i32
    %c0_i32_1 = arith.constant 0 : i32
    return %c0_i32, %c0_i32_0 : i32, i32
  }
  func.func @transform_3(%arg0: i32) -> (i32, i32) {
    %c0_i32 = arith.constant 0 : i32
    %c0_i32_0 = arith.constant 0 : i32
    %c0_i32_1 = arith.constant 0 : i32
    return %c0_i32, %c0_i32_0 : i32, i32
  }
  func.func @transform_4(%arg0: i32) -> (i32, i32, i32) {
    %c0_i32 = arith.constant 0 : i32
    %c0_i32_0 = arith.constant 0 : i32
    %c0_i32_1 = arith.constant 0 : i32
    %c0_i32_2 = arith.constant 0 : i32
    return %c0_i32, %c0_i32_0, %c0_i32_1 : i32, i32, i32
  }
  func.func @transform_5(%arg0: i32) -> (i32, i32) {
    %c0_i32 = arith.constant 0 : i32
    %c0_i32_0 = arith.constant 0 : i32
    %c0_i32_1 = arith.constant 0 : i32
    return %c0_i32, %c0_i32_0 : i32, i32
  }
  func.func @transform_6(%arg0: i32) -> (i32, i32) {
    %c0_i32 = arith.constant 0 : i32
    %c0_i32_0 = arith.constant 0 : i32
    return %arg0, %c0_i32 : i32, i32
  }
}

</mosaic_0001>

<bundles_post_ra>
// kernel: fn.1
= control target key start
LH: loop header
LB: loop body
LE: loop exit
PB: predicated region body
PF: predicated region fallthrough
CT: control target
= control target key end

     0   :  { %11 = vsyncpa [#allocation3], 0  ;;  %s7143_s0 = inlined_call_operand.vmem [shape: f32[256,132], index: 0, kind: input, shape index: {}]   ;;  %s7144_s1 = inlined_call_operand.hbm [shape: f32[132,768], index: 1, kind: input, shape index: {}]   ;;  %s7145_s2 = inlined_call_operand.vmem [shape: f32[1,768], index: 2, kind: input, shape index: {}]   ;;  %s7146_s3 = inlined_call_operand.vmem [shape: f32[384,128], index: 3, kind: input, shape index: {}]   ;;  %s7147_s4 = inlined_call_operand.hbm [shape: f32[12,128,128], index: 4, kind: input, shape index: {}]   ;;  %s7148_s5 = inlined_call_operand.vmem [shape: f32[13,128], index: 5, kind: input, shape index: {}]   ;;  %s7149_s6 = inlined_call_operand.vmem [shape: f32[256,128], index: 6, kind: output, shape index: {}]  }
   0x1   :  { %12 = vsyncpa [#allocation5], 0  ;;  %s5074_s21 = smov 0  }
   0x2 LB: > { %s191_s24 = sshll.u32 %s7144_s1, 4  ;;  %s4038_s25 = sadd.s32 4294967295, %s5031_s21   ;;  %s5031_s21 = sphi %s5074_s21, %s18_s21   ;;  %s192_s24 = int_to_ptr.hbm [resolvable:$true] %s191_s24 }
   0x3   : > { %p4040_p0 = scmp.ge.s32.totalorder %s5031_s21, 1  ;;  %p180_p1 = scmp.lt.s32.totalorder %s5031_s21, 3 }
   0x4   : > { %p5085_p2 = scmp.eq.s32.totalorder %s4038_s25, 0  ;;  %s5033_s28 = smov [#allocation2]  }
   0x5   : > { %p5089_p3 = pnand %p4040_p0, %p180_p1  ;;  %s193_s29 = sshll.u32 %s5033_s28, 4  ;;  %s194_s29 = int_to_ptr.vmem [resolvable:$true] %s193_s29 }
   0x6   : > { %s211_s8 = sshll.u32 %s7147_s4, 4  ;;  %s5034_s9 = smov [#allocation4]   ;;  %s212_s8 = int_to_ptr.hbm [resolvable:$true] %s211_s8 }
   0x7   : > { %p4422_p4 = pneg %p5089_p3  ;;  %s213_s10 = sshll.u32 %s5034_s9, 4  ;;  %s214_s10 = int_to_ptr.vmem [resolvable:$true] %s213_s10 }
   0x8   : > { %s5035_s11 = smov 768   ;;  %s5036_s12 = smov 48  }
   0x9   : > { %p4423_p5 = pnand %p5085_p2, %p4422_p4  ;;  %s5037_s13 = smov 128  }
   0xa   : > { %s5038_s14 = smov 8   ;;  %242 = sbr.rel (%p5089_p3) target bundleno = 1642 (0x66a), region = 44 }
   0xb   : > { %4425 = dma.hbm_to_vmem [thread:$0]  (!%p4423_p5), %s192_s24, 13056, %s194_s29, [#allocation3], %s5035_s11, %s5035_s11, %s5036_s12  }
   0xc   : > { %4428 = dma.hbm_to_vmem [thread:$0]  (!%p4423_p5), %s212_s8, 24576, %s214_s10, [#allocation5], %s5037_s13, %s5037_s13, %s5038_s14  }
   0xf   : > { %5022 = dma.done.wait (%p5085_p2), [#allocation3], 13056  }
  0x10   : > { %5024 = vsyncadd (%p5085_p2), [#allocation3], 4294954240 }
  0x11   : > { %5026 = dma.done.wait (%p5085_p2), [#allocation5], 24576  }
  0x12   : > { %5028 = vsyncadd (%p5085_p2), [#allocation5], 4294942720  ;;  %s4047_s15 = sshll.u32 %s4038_s25, 4  ;;  %vm489_vm0 = vcmask 1043456   ;;  %v414_v0 = vld [vmem:[#allocation2 + $0x2d0] sm:$0xff]  ;;  %vm440_vm1 = vcmask 31744  }
  0x13   : > { %p280_p6 = scmp.lt.s32.totalorder %s4047_s15, 31  ;;  %v420_v1 = vld [vmem:[#allocation2 + $0x300] sm:$0xf]  ;;  %v421_v2 = vld [vmem:[#allocation2 + $0x308] sm:$0xf]  ;;  %508 = vmatpush.msra.mxu0 %v414_v0  ;;  %4381 = vmatpush.msra.mxu2 %v414_v0  ;;  %v402_v6 = vld [vmem:[#allocation2 + $0x270] sm:$0xff] }
  0x14   : > { %v5121_v4 = vld [vmem:[#allocation2 + $0x2e0] sm:$0xff]  ;;  %4052 = vmatpush.msk.msra.mxu1 %vm489_vm0, %v420_v1  ;;  %4069 = vmatpush.msk.msra.mxu3 %vm489_vm0, %v421_v2  ;;  %v5129_v7 = vld [vmem:[#allocation2 + $0x2b0] sm:$0xff]  ;;  %v415_v33 = vld [vmem:[#allocation2 + $0x2d8] sm:$0xff] }
  0x15   : > { %s7299_s15 = smov (!%p280_p6, %s4047_s15), 31  ;;  %v408_v5 = vld [vmem:[#allocation2 + $0x2a0] sm:$0xff]  ;;  %v390_v10 = vld [vmem:[#allocation2 + $0x210] sm:$0xff]  ;;  %v409_v34 = vld [vmem:[#allocation2 + $0x2a8] sm:$0xff] }
  0x16   : > { %s4380_s16 = sshll.u32 %s7299_s15, 4  ;;  %768 = vmatpush.msrb.mxu1 %v5121_v4  ;;  %509 = vmatpush.msra.mxu0 %v408_v5  ;;  %v396_v8 = vld [vmem:[#allocation2 + $0x240] sm:$0xff]  ;;  %v5135_v11 = vld [vmem:[#allocation2 + $0x250] sm:$0xff]  ;;  %v403_v35 = vld [vmem:[#allocation2 + $0x278] sm:$0xff]  ;;  %s4051_s14 = sshll.u32 %s7299_s15, 3 }
  0x17   : > { %s5116_s19 = scalar_lea.vmem %s7143_s0, %s4380_s16  ;;  %4382 = vmatpush.msra.mxu2 %v408_v5  ;;  %v5132_v9 = vld [vmem:[#allocation2 + $0x280] sm:$0xff]  ;;  %v378_v15 = vld [vmem:[#allocation2 + $0x1b0] sm:$0xff]  ;;  %v397_v38 = vld [vmem:[#allocation2 + $0x248] sm:$0xff]  ;;  %s7092_s18 = scalar_lea.vmem %s7149_s6, %s4051_s14 }
  0x18   : > { %v5119_v3 = vld [vmem:[%s5116_s19 + $0x8] sm:$0xff]  ;;  %510 = vmatpush.msra.mxu0 %v402_v6  ;;  %769 = vmatpush.msrb.mxu1 %v5129_v7  ;;  %v5138_v12 = vld [vmem:[%s5116_s19 + $0x18] sm:$0xff]  ;;  %v384_v13 = vld [vmem:[#allocation2 + $0x1e0] sm:$0xff] }
  0x19   : > { %4053 = vmatmul.msk.f32.vlgmr.msra.gmra.mxu1 %vm440_vm1, %v5119_v3  ;;  %4070 = vmatmul.msk.f32.vlgmr.msra.gmra.mxu3 %vm440_vm1, %v5119_v3  ;;  %v5142_v14 = vld [vmem:[#allocation2 + $0x220] sm:$0xff]  ;;  %v5148_v16 = vld [vmem:[#allocation2 + $0x1f0] sm:$0xff]  ;;  %v5152_v19 = vld [vmem:[%s5116_s19 + $0x28] sm:$0xff] }
  0x1a   : > { %4383 = vmatpush.msra.mxu2 %v402_v6  ;;  %511 = vmatpush.msra.mxu0 %v396_v8  ;;  %v372_v17 = vld [vmem:[#allocation2 + $0x180] sm:$0xff]  ;;  %v366_v18 = vld [vmem:[#allocation2 + $0x150] sm:$0xff]  ;;  %v5163_v25 = vld [vmem:[%s5116_s19 + $0x38] sm:$0xff] }
  0x1b   : > { %770 = vmatpush.msrb.mxu1 %v5132_v9  ;;  %v360_v20 = vld [vmem:[#allocation2 + $0x120] sm:$0xff]  ;;  %v354_v21 = vld [vmem:[#allocation2 + $0xf0] sm:$0xff]  ;;  %v5179_v32 = vld [vmem:[%s5116_s19 + $0x48] sm:$0xff] }
  0x1c   : > { %4384 = vmatpush.msra.mxu2 %v396_v8  ;;  %512 = vmatpush.msra.mxu0 %v390_v10  ;;  %v5159_v22 = vld [vmem:[#allocation2 + $0x1c0] sm:$0xff]  ;;  %v342_v24 = vld [vmem:[#allocation2 + $0x90] sm:$0xff]  ;;  %v5197_v40 = vld [vmem:[%s5116_s19 + $0x58] sm:$0xff] }
  0x1d   : > { %771 = vmatpush.msrb.mxu1 %v5135_v11  ;;  %v348_v23 = vld [vmem:[#allocation2 + $0xc0] sm:$0xff]  ;;  %v330_v27 = vld [vmem:[#allocation2 + $0x30] sm:$0xff]  ;;  %v391_v41 = vld [vmem:[#allocation2 + $0x218] sm:$0xff] }
  0x1e   : > { %4385 = vmatpush.msra.mxu2 %v390_v10  ;;  %513 = vmatpush.msra.mxu0 %v384_v13  ;;  %v336_v26 = vld [vmem:[#allocation2 + $0x60] sm:$0xff]  ;;  %v5169_v28 = vld [vmem:[#allocation2 + $0x190] sm:$0xff]  ;;  %v385_v42 = vld [vmem:[#allocation2 + $0x1e8] sm:$0xff] }
  0x1f   : > { %772 = vmatpush.msrb.mxu1 %v5142_v14  ;;  %v324_v29 = vld [vmem:[#allocation2] sm:$0xff]  ;;  %v5176_v31 = vld [vmem:[%s5116_s19 + $0xb0] sm:$0xff]  ;;  %v379_v43 = vld [vmem:[#allocation2 + $0x1b8] sm:$0xff] }
  0x20   : > { %4386 = vmatpush.msra.mxu2 %v384_v13  ;;  %514 = vmatpush.msra.mxu0 %v378_v15  ;;  %v5173_v30 = vld [vmem:[%s5116_s19] sm:$0xff]  ;;  %v5191_v37 = vld [vmem:[%s5116_s19 + $0x10] sm:$0xff]  ;;  %v373_v46 = vld [vmem:[#allocation2 + $0x188] sm:$0xff] }
  0x21   : > { %4054 = vmatmul.msk.f32.gmra.mxu1 %vm440_vm1, %v5138_v12  ;;  %4071 = vmatmul.msk.f32.gmra.mxu3 %vm440_vm1, %v5138_v12  ;;  %v5187_v36 = vld [vmem:[#allocation2 + $0x160] sm:$0xff]  ;;  %v5205_v44 = vld [vmem:[#allocation2 + $0x130] sm:$0xff]  ;;  %v5215_v48 = vld [vmem:[%s5116_s19 + $0x68] sm:$0xff] }
  0x22   : > { %4387 = vmatpush.msra.mxu2 %v378_v15  ;;  %773 = vmatpush.msrb.mxu1 %v5148_v16  ;;  %v5194_v39 = vld [vmem:[%s5116_s19 + $0xc0] sm:$0xff]  ;;  %v5212_v47 = vld [vmem:[%s5116_s19 + $0xd0] sm:$0xff]  ;;  %v367_v49 = vld [vmem:[#allocation2 + $0x158] sm:$0xff] }
  0x23   : > { %515 = vmatpush.msra.mxu0 %v372_v17  ;;  %v5209_v45 = vld [vmem:[%s5116_s19 + $0x20] sm:$0xff]  ;;  %v361_v50 = vld [vmem:[#allocation2 + $0x128] sm:$0xff]  ;;  %v355_v51 = vld [vmem:[#allocation2 + $0xf8] sm:$0xff] }
  0x24   : > { %4388 = vmatpush.msra.mxu2 %v372_v17  ;;  %774 = vmatpush.msrb.mxu1 %v5159_v22  ;;  %v5223_v52 = vld [vmem:[#allocation2 + $0x100] sm:$0xff]  ;;  %v5227_v53 = vld [vmem:[%s5116_s19 + $0x30] sm:$0xff]  ;;  %v349_v54 = vld [vmem:[#allocation2 + $0xc8] sm:$0xff] }
  0x25   : > { %516 = vmatpush.msra.mxu0 %v366_v18  ;;  %v5230_v55 = vld [vmem:[%s5116_s19 + $0xe0] sm:$0xff]  ;;  %v5233_v56 = vld [vmem:[%s5116_s19 + $0x78] sm:$0xff]  ;;  %v337_v58 = vld [vmem:[#allocation2 + $0x68] sm:$0xff] }
  0x26   : > { %4389 = vmatpush.msra.mxu2 %v366_v18  ;;  %775 = vmatpush.msrb.mxu1 %v5169_v28  ;;  %v343_v57 = vld [vmem:[#allocation2 + $0x98] sm:$0xff]  ;;  %v417_v59 = vld [vmem:[#allocation2 + $0x2e8] sm:$0xff]  ;;  %v5241_v61 = vld [vmem:[#allocation2 + $0xd0] sm:$0xff] }
  0x27   : > { %517 = vmatpush.msra.mxu0 %v360_v20  ;;  %v331_v60 = vld [vmem:[#allocation2 + $0x38] sm:$0xff]  ;;  %v405_v63 = vld [vmem:[#allocation2 + $0x288] sm:$0xff]  ;;  %v5245_v0 = vld [vmem:[%s5116_s19 + $0x40] sm:$0xff] }
  0x28   : > { %4390 = vmatpush.msra.mxu2 %v360_v20  ;;  %776 = vmatpush.msrb.mxu1 %v5187_v36  ;;  %v411_v62 = vld [vmem:[#allocation2 + $0x2b8] sm:$0xff]  ;;  %v325_v1 = vld [vmem:[#allocation2 + $0x8] sm:$0xff]  ;;  %v5248_v2 = vld [vmem:[%s5116_s19 + $0xf0] sm:$0xff] }
  0x29   : > { %4055 = vmatmul.msk.f32.gmra.mxu1 %vm440_vm1, %v5152_v19  ;;  %4072 = vmatmul.msk.f32.gmra.mxu3 %vm440_vm1, %v5152_v19  ;;  %v399_v5 = vld [vmem:[#allocation2 + $0x258] sm:$0xff]  ;;  %v5251_v6 = vld [vmem:[%s5116_s19 + $0x88] sm:$0xff]  ;;  %v344_v10 = vld [vmem:[#allocation2 + $0xa0] sm:$0xff] }
  0x2a   : > { %518 = vmatpush.msra.mxu0 %v354_v21  ;;  %4391 = vmatpush.msra.mxu2 %v354_v21  ;;  %v393_v8 = vld [vmem:[#allocation2 + $0x228] sm:$0xff]  ;;  %v387_v13 = vld [vmem:[#allocation2 + $0x1f8] sm:$0xff]  ;;  %v5262_v17 = vld [vmem:[%s5116_s19 + $0x50] sm:$0xff] }
  0x2b   : > { %777 = vmatpush.msrb.mxu1 %v5205_v44  ;;  %v381_v15 = vld [vmem:[#allocation2 + $0x1c8] sm:$0xff]  ;;  %v375_v18 = vld [vmem:[#allocation2 + $0x198] sm:$0xff] }
  0x2c   : > { %519 = vmatpush.msra.mxu0 %v348_v23  ;;  %4392 = vmatpush.msra.mxu2 %v348_v23  ;;  %v5266_v20 = vld [vmem:[%s5116_s19 + $0x98] sm:$0xff]  ;;  %v357_v21 = vld [vmem:[#allocation2 + $0x108] sm:$0xff] }
  0x2d   : > { %778 = vmatpush.msrb.mxu1 %v5223_v52  ;;  %v351_v23 = vld [vmem:[#allocation2 + $0xd8] sm:$0xff] }
  0x2e   : > { %520 = vmatpush.msra.mxu0 %v342_v24  ;;  %4393 = vmatpush.msra.mxu2 %v342_v24  ;;  %v5282_v24 = vld [vmem:[%s5116_s19 + $0xa8] sm:$0xff] }
  0x2f   : > { %779 = vmatpush.msrb.mxu1 %v5241_v61 }
  0x30   : > { %521 = vmatpush.msra.mxu0 %v336_v26  ;;  %4394 = vmatpush.msra.mxu2 %v336_v26  ;;  %v333_v26 = vld [vmem:[#allocation2 + $0x48] sm:$0xff] }
  0x31   : > { %4056 = vmatmul.msk.f32.gmra.mxu1 %vm440_vm1, %v5163_v25  ;;  %4073 = vmatmul.msk.f32.gmra.mxu3 %vm440_vm1, %v5163_v25 }
  0x32   : > { %522 = vmatpush.msra.mxu0 %v330_v27  ;;  %4395 = vmatpush.msra.mxu2 %v330_v27  ;;  %v5294_v27 = vld [vmem:[%s5116_s19 + $0x70] sm:$0xff] }
  0x33   : > { %780 = vmatpush.msrb.mxu1 %v344_v10 }
  0x34   : > { %523 = vmatpush.msra.mxu0 %v324_v29  ;;  %4396 = vmatpush.msra.mxu2 %v324_v29  ;;  %v5298_v29 = vld [vmem:[%s5116_s19 + $0xb8] sm:$0xff] }
  0x35   : > { %524 = vmatmul.f32.vlgmr.msra.gmra.mxu0 %v5173_v30  ;;  %557 = vmatmul.f32.vlgmr.msra.gmra.mxu2 %v5176_v31 }
  0x36   : > { %638 = vmatpush.msrb.mxu2 %v415_v33  ;;  %898 = vmatpush.msrb.mxu0 %v417_v59  ;;  %v326_v33 = vld [vmem:[#allocation2 + $0x10] sm:$0xff] }
  0x37   : > { %v382_v59 = vld [vmem:[#allocation2 + $0x1d0] sm:$0xff] }
  0x38   : > { %639 = vmatpush.msrb.mxu2 %v409_v34  ;;  %899 = vmatpush.msrb.mxu0 %v411_v62  ;;  %v5308_v34 = vld [vmem:[%s5116_s19 + $0x80] sm:$0xff] }
  0x39   : > { %4057 = vmatmul.msk.f32.gmra.mxu1 %vm440_vm1, %v5179_v32  ;;  %4074 = vmatmul.msk.f32.gmra.mxu3 %vm440_vm1, %v5179_v32 }
  0x3a   : > { %640 = vmatpush.msrb.mxu2 %v403_v35  ;;  %900 = vmatpush.msrb.mxu0 %v405_v63  ;;  %v5311_v35 = vld [vmem:[%s5116_s19 + $0xc8] sm:$0xff] }
  0x3c   : > { %641 = vmatpush.msrb.mxu2 %v397_v38  ;;  %901 = vmatpush.msrb.mxu0 %v399_v5  ;;  %v418_v38 = vld [vmem:[#allocation2 + $0x2f0] sm:$0xff] }
  0x3d   : > { %527 = vmatmul.f32.gmra.mxu0 %v5191_v37  ;;  %560 = vmatmul.f32.gmra.mxu2 %v5194_v39 }
  0x3e   : > { %642 = vmatpush.msrb.mxu2 %v391_v41  ;;  %902 = vmatpush.msrb.mxu0 %v393_v8  ;;  %v5322_v41 = vld [vmem:[%s5116_s19 + $0x90] sm:$0xff] }
  0x40   : > { %643 = vmatpush.msrb.mxu2 %v385_v42  ;;  %903 = vmatpush.msrb.mxu0 %v387_v13  ;;  %v5325_v42 = vld [vmem:[%s5116_s19 + $0xd8] sm:$0xff] }
  0x41   : > { %4058 = vmatmul.msk.f32.gmra.mxu1 %vm440_vm1, %v5197_v40  ;;  %4075 = vmatmul.msk.f32.gmra.mxu3 %vm440_vm1, %v5197_v40 }
  0x42   : > { %644 = vmatpush.msrb.mxu2 %v379_v43  ;;  %904 = vmatpush.msrb.mxu0 %v381_v15  ;;  %v412_v43 = vld [vmem:[#allocation2 + $0x2c0] sm:$0xff] }
  0x44   : > { %645 = vmatpush.msrb.mxu2 %v373_v46  ;;  %905 = vmatpush.msrb.mxu0 %v375_v18  ;;  %v5337_v46 = vld [vmem:[%s5116_s19 + $0xe8] sm:$0xff] }
  0x45   : > { %530 = vmatmul.f32.gmra.mxu0 %v5209_v45  ;;  %563 = vmatmul.f32.gmra.mxu2 %v5212_v47 }
  0x46   : > { %646 = vmatpush.msrb.mxu2 %v367_v49  ;;  %v406_v49 = vld [vmem:[#allocation2 + $0x290] sm:$0xff] }
  0x48   : > { %647 = vmatpush.msrb.mxu2 %v361_v50  ;;  %v5346_v50 = vld [vmem:[%s5116_s19 + $0xf8] sm:$0xff] }
  0x49   : > { %4059 = vmatmul.msk.f32.gmra.mxu1 %vm440_vm1, %v5215_v48  ;;  %4076 = vmatmul.msk.f32.gmra.mxu3 %vm440_vm1, %v5215_v48 }
  0x4a   : > { %648 = vmatpush.msrb.mxu2 %v355_v51  ;;  %v400_v51 = vld [vmem:[#allocation2 + $0x260] sm:$0xff] }
  0x4c   : > { %649 = vmatpush.msrb.mxu2 %v349_v54  ;;  %v394_v54 = vld [vmem:[#allocation2 + $0x230] sm:$0xff] }
  0x4d   : > { %533 = vmatmul.f32.gmra.mxu0 %v5227_v53  ;;  %566 = vmatmul.f32.gmra.mxu2 %v5230_v55 }
  0x4e   : > { %650 = vmatpush.msrb.mxu2 %v343_v57 }
  0x50   : > { %651 = vmatpush.msrb.mxu2 %v337_v58  ;;  %v388_v58 = vld [vmem:[#allocation2 + $0x200] sm:$0xff] }
  0x51   : > { %4060 = vmatmul.msk.f32.gmra.mxu1 %vm440_vm1, %v5233_v56  ;;  %4077 = vmatmul.msk.f32.gmra.mxu3 %vm440_vm1, %v5233_v56 }
  0x52   : > { %652 = vmatpush.msrb.mxu2 %v331_v60 }
  0x54   : > { %653 = vmatpush.msrb.mxu2 %v325_v1  ;;  %v370_v1 = vld [vmem:[#allocation2 + $0x170] sm:$0xff] }
  0x55   : > { %536 = vmatmul.f32.gmra.mxu0 %v5245_v0  ;;  %569 = vmatmul.f32.gmra.mxu2 %v5248_v2 }
  0x56   : > { %4397 = vmatpush.msra.mxu2 %v5121_v4  ;;  %v369_v4 = vld [vmem:[#allocation2 + $0x168] sm:$0xff] }
  0x57   : > { %906 = vmatpush.msrb.mxu0 %v369_v4 }
  0x58   : > { %4398 = vmatpush.msra.mxu2 %v5129_v7  ;;  %v338_v7 = vld [vmem:[#allocation2 + $0x70] sm:$0xff] }
  0x59   : > { %4061 = vmatmul.msk.f32.gmra.mxu1 %vm440_vm1, %v5251_v6  ;;  %4078 = vmatmul.msk.f32.gmra.mxu3 %vm440_vm1, %v5251_v6 }
  0x5a   : > { %4399 = vmatpush.msra.mxu2 %v5132_v9  ;;  %v363_v9 = vld [vmem:[#allocation2 + $0x138] sm:$0xff]  ;;  %781 = vmatpush.msrb.mxu1 %v338_v7 }
  0x5b   : > { %907 = vmatpush.msrb.mxu0 %v363_v9 }
  0x5c   : > { %4400 = vmatpush.msra.mxu2 %v5135_v11  ;;  %v5278_v11 = vld [vmem:[%s5116_s19 + $0x60] sm:$0xff] }
  0x5d   : > { %539 = vmatmul.f32.gmra.mxu0 %v5262_v17  ;;  %654 = vmatmul.f32.vlgmr.msrb.gmra.mxu2 %v5173_v30 }
  0x5e   : > { %4401 = vmatpush.msra.mxu2 %v5142_v14  ;;  %908 = vmatpush.msrb.mxu0 %v357_v21  ;;  %v345_v14 = vld [vmem:[#allocation2 + $0xa8] sm:$0xff] }
  0x60   : > { %4402 = vmatpush.msra.mxu2 %v5148_v16  ;;  %909 = vmatpush.msrb.mxu0 %v351_v23  ;;  %v332_v16 = vld [vmem:[#allocation2 + $0x40] sm:$0xff] }
  0x61   : > { %4062 = vmatmul.msk.f32.gmra.mxu1 %vm440_vm1, %v5266_v20  ;;  %4079 = vmatmul.msk.f32.gmra.mxu3 %vm440_vm1, %v5266_v20 }
  0x62   : > { %4403 = vmatpush.msra.mxu2 %v5159_v22  ;;  %910 = vmatpush.msrb.mxu0 %v345_v14  ;;  %v339_v22 = vld [vmem:[#allocation2 + $0x78] sm:$0xff] }
  0x63   : > { %782 = vmatpush.msrb.mxu1 %v332_v16 }
  0x64   : > { %4404 = vmatpush.msra.mxu2 %v5169_v28  ;;  %911 = vmatpush.msrb.mxu0 %v339_v22  ;;  %v327_v28 = vld [vmem:[#allocation2 + $0x18] sm:$0xff]  ;;  %v352_v22 = vld [vmem:[#allocation2 + $0xe0] sm:$0xff] }
  0x65   : > { %542 = vmatmul.f32.gmra.mxu0 %v5278_v11  ;;  %657 = vmatmul.f32.gmra.mxu2 %v5191_v37 }
  0x66   : > { %4405 = vmatpush.msra.mxu2 %v5187_v36  ;;  %912 = vmatpush.msrb.mxu0 %v333_v26  ;;  %v422_v36 = vld [vmem:[#allocation2 + $0x310] sm:$0xf] }
  0x67   : > { %783 = vmatpush.msrb.mxu1 %v326_v33  ;;  %4413 = vmatpush.msk.msrb.mxu3 %vm489_vm0, %v422_v36 }
  0x68   : > { %4406 = vmatpush.msra.mxu2 %v5205_v44  ;;  %913 = vmatpush.msrb.mxu0 %v327_v28  ;;  %v5334_v44 = vld [vmem:[%s5116_s19 + $0xa0] sm:$0xff] }
  0x69   : > { %4063 = vmatmul.msk.f32.gmra.mxu1 %vm440_vm1, %v5282_v24  ;;  %4080 = vmatmul.msk.f32.gmra.mxu3 %vm440_vm1, %v5282_v24 }
  0x6a   : > { %4407 = vmatpush.msra.mxu2 %v5223_v52  ;;  %1028 = vmatpush.msra.mxu1 %v418_v38  ;;  %v346_v38 = vld [vmem:[#allocation2 + $0xb0] sm:$0xff] }
  0x6c   : > { %4408 = vmatpush.msra.mxu2 %v5241_v61  ;;  %1029 = vmatpush.msra.mxu1 %v412_v43  ;;  %v376_v61 = vld [vmem:[#allocation2 + $0x1a0] sm:$0xff]  ;;  %v413_v43 = vld [vmem:[#allocation2 + $0x2c8] sm:$0xff] }
  0x6d   : > { %545 = vmatmul.f32.gmra.mxu0 %v5294_v27  ;;  %660 = vmatmul.f32.gmra.mxu2 %v5209_v45 }
  0x6e   : > { %4409 = vmatpush.msra.mxu2 %v344_v10  ;;  %1030 = vmatpush.msra.mxu1 %v406_v49  ;;  %v364_v10 = vld [vmem:[#allocation2 + $0x140] sm:$0xff] }
  0x70   : > { %4410 = vmatpush.msra.mxu2 %v338_v7  ;;  %1031 = vmatpush.msra.mxu1 %v400_v51  ;;  %v358_v7 = vld [vmem:[#allocation2 + $0x110] sm:$0xff]  ;;  %v407_v51 = vld [vmem:[#allocation2 + $0x298] sm:$0xff] }
  0x71   : > { %4064 = vmatmul.msk.f32.gmra.mxu1 %vm440_vm1, %v5298_v29  ;;  %4081 = vmatmul.msk.f32.gmra.mxu3 %vm440_vm1, %v5298_v29 }
  0x72   : > { %4411 = vmatpush.msra.mxu2 %v332_v16  ;;  %1032 = vmatpush.msra.mxu1 %v394_v54 }
  0x74   : > { %4412 = vmatpush.msra.mxu2 %v326_v33  ;;  %1033 = vmatpush.msra.mxu1 %v388_v58  ;;  %v419_v33 = vld [vmem:[#allocation2 + $0x2f8] sm:$0xff]  ;;  %v401_v58 = vld [vmem:[#allocation2 + $0x268] sm:$0xff] }
  0x75   : > { %548 = vmatmul.f32.gmra.mxu0 %v5308_v34  ;;  %663 = vmatmul.f32.gmra.mxu2 %v5227_v53 }
  0x76   : > { %4086 = vmatpush.msk.msrb.mxu2 %vm489_vm0, %v422_v36  ;;  %1034 = vmatpush.msra.mxu1 %v382_v59 }
  0x77   : > { %1158 = vmatpush.msra.mxu0 %v419_v33  ;;  %v383_v33 = vld [vmem:[#allocation2 + $0x1d8] sm:$0xff] }
  0x78   : > { %1035 = vmatpush.msra.mxu1 %v376_v61  ;;  %v395_v61 = vld [vmem:[#allocation2 + $0x238] sm:$0xff] }
  0x79   : > { %4065 = vmatmul.msk.f32.gmra.mxu1 %vm440_vm1, %v5311_v35  ;;  %4082 = vmatmul.msk.f32.gmra.mxu3 %vm440_vm1, %v5311_v35 }
  0x7a   : > { %1036 = vmatpush.msra.mxu1 %v370_v1  ;;  %1159 = vmatpush.msra.mxu0 %v413_v43  ;;  %v340_v1 = vld [vmem:[#allocation2 + $0x80] sm:$0xff]  ;;  %v423_v43 = vld [vmem:[#allocation2 + $0x318] sm:$0xf] }
  0x7c   : > { %1037 = vmatpush.msra.mxu1 %v364_v10  ;;  %1160 = vmatpush.msra.mxu0 %v407_v51  ;;  %v389_v10 = vld [vmem:[#allocation2 + $0x208] sm:$0xff]  ;;  %v334_v51 = vld [vmem:[#allocation2 + $0x50] sm:$0xff] }
  0x7d   : > { %551 = vmatmul.f32.gmra.mxu0 %v5322_v41  ;;  %666 = vmatmul.f32.gmra.mxu2 %v5245_v0 }
  0x7e   : > { %1038 = vmatpush.msra.mxu1 %v358_v7  ;;  %1161 = vmatpush.msra.mxu0 %v401_v58  ;;  %v377_v58 = vld [vmem:[#allocation2 + $0x1a8] sm:$0xff] }
  0x80   : > { %1039 = vmatpush.msra.mxu1 %v352_v22  ;;  %1162 = vmatpush.msra.mxu0 %v395_v61  ;;  %v371_v61 = vld [vmem:[#allocation2 + $0x178] sm:$0xff] }
  0x81   : > { %4066 = vmatmul.msk.f32.gmra.mxu1 %vm440_vm1, %v5325_v42  ;;  %4083 = vmatmul.msk.f32.gmra.mxu3 %vm440_vm1, %v5325_v42 }
  0x82   : > { %1040 = vmatpush.msra.mxu1 %v346_v38  ;;  %1163 = vmatpush.msra.mxu0 %v389_v10 }
  0x84   : > { %1041 = vmatpush.msra.mxu1 %v340_v1  ;;  %1164 = vmatpush.msra.mxu0 %v383_v33 }
  0x85   : > { %554 = vmatmul.f32.gmra.mxu0 %v5334_v44  ;;  %669 = vmatmul.f32.gmra.mxu2 %v5262_v17 }
  0x86   : > { %1042 = vmatpush.msra.mxu1 %v334_v51  ;;  %1165 = vmatpush.msra.mxu0 %v377_v58  ;;  %v353_v51 = vld [vmem:[#allocation2 + $0xe8] sm:$0xff] }
  0x88   : > { %1166 = vmatpush.msra.mxu0 %v371_v61 }
  0x89   : > { %4067 = vmatmul.msk.f32.gmra.mxu1 %vm440_vm1, %v5337_v46  ;;  %4084 = vmatmul.msk.f32.gmra.mxu3 %vm440_vm1, %v5337_v46 }
  0x8d   : > { %914 = vmatmul.f32.vlgmr.msrb.gmra.mxu0 %v5173_v30  ;;  %672 = vmatmul.f32.gmra.mxu2 %v5278_v11 }
  0x91   : > { %4068 = vmatmul.msk.f32.gmra.mxu1 %vm440_vm1, %v5346_v50  ;;  %4085 = vmatmul.msk.f32.gmra.mxu3 %vm440_vm1, %v5346_v50 }
  0x95   : > { %917 = vmatmul.f32.gmra.mxu0 %v5191_v37  ;;  %675 = vmatmul.f32.gmra.mxu2 %v5294_v27 }
  0x96   : > { %v5354_v52 = vpop.f32.mrf.mxu1 }
  0x99   : > { %784 = vmatmul.f32.vlgmr.msrb.gmra.mxu1 %v5173_v30  ;;  %4089 = vmatmul.msk.f32.vlgmr.msrb.gmra.mxu3 %vm440_vm1, %v5152_v19 }
  0x9c   : > { %v5378_v63 = vpop.f32.mrf.mxu3 }
  0x9d   : > { %920 = vmatmul.f32.gmra.mxu0 %v5209_v45  ;;  %678 = vmatmul.f32.gmra.mxu2 %v5308_v34 }
  0x9e   : > { %v5361_v57 = vpop.f32.mrf.mxu1 }
  0xa1   : > { %787 = vmatmul.f32.gmra.mxu1 %v5191_v37  ;;  %4090 = vmatmul.msk.f32.gmra.mxu3 %vm440_vm1, %v5163_v25 }
  0xa4   : > { %v5391_v13 = vpop.f32.mrf.mxu3 }
  0xa5   : > { %923 = vmatmul.f32.gmra.mxu0 %v5227_v53  ;;  %681 = vmatmul.f32.gmra.mxu2 %v5322_v41 }
  0xa6   : > { %v5368_v60 = vpop.f32.mrf.mxu1 }
  0xa9   : > { %790 = vmatmul.f32.gmra.mxu1 %v5209_v45  ;;  %4091 = vmatmul.msk.f32.gmra.mxu3 %vm440_vm1, %v5179_v32 }
  0xac   : > { %v5408_v21 = vpop.f32.mrf.mxu3 }
  0xad   : > { %926 = vmatmul.f32.gmra.mxu0 %v5245_v0  ;;  %684 = vmatmul.f32.gmra.mxu2 %v5334_v44 }
  0xae   : > { %v5375_v62 = vpop.f32.mrf.mxu1 }
  0xb1   : > { %793 = vmatmul.f32.gmra.mxu1 %v5227_v53  ;;  %4092 = vmatmul.msk.f32.gmra.mxu3 %vm440_vm1, %v5197_v40 }
  0xb2   : > { %v5384_v5 = vpop.f32.mrf.mxu0 }
  0xb4   : > { %v5421_v26 = vpop.f32.mrf.mxu3 }
  0xb5   : > { %929 = vmatmul.f32.gmra.mxu0 %v5262_v17  ;;  %687 = vmatmul.f32.gmra.mxu2 %v5176_v31 }
  0xb6   : > { %v5386_v8 = vpop.f32.mrf.mxu1 }
  0xb8   : > { %v5395_v15 = vpop.f32.mrf.mxu2 }
  0xb9   : > { %796 = vmatmul.f32.gmra.mxu1 %v5245_v0  ;;  %4093 = vmatmul.msk.f32.gmra.mxu3 %vm440_vm1, %v5215_v48  ;;  %7152 = vst [vmem:[#allocation8_spill] sm:$0xff] %v5395_v15  ;;  %v347_v15 = vld [vmem:[#allocation2 + $0xb8] sm:$0xff] }
  0xba   : > { %v5397_v18 = vpop.f32.mrf.mxu0 }
  0xbc   : > { %v5437_v59 = vpop.f32.mrf.mxu3 }
  0xbd   : > { %932 = vmatmul.f32.gmra.mxu0 %v5278_v11  ;;  %690 = vmatmul.f32.gmra.mxu2 %v5194_v39 }
  0xbe   : > { %v5399_v4 = vpop.f32.mrf.mxu1 }
  0xc0   : > { %v5406_v9 = vpop.f32.mrf.mxu2 }
  0xc1   : > { %799 = vmatmul.f32.gmra.mxu1 %v5262_v17  ;;  %4094 = vmatmul.msk.f32.gmra.mxu3 %vm440_vm1, %v5233_v56  ;;  %7153 = vst [vmem:[#allocation9_spill] sm:$0xff] %v5406_v9  ;;  %v424_v9 = vld [vmem:[#allocation2 + $0x320] sm:$0xf] }
  0xc2   : > { %v5412_v14 = vpop.f32.mrf.mxu0  ;;  %4120 = vmatpush.msk.msra.mxu3 %vm489_vm0, %v424_v9  ;;  %v341_v9 = vld [vmem:[#allocation2 + $0x88] sm:$0xff] }
  0xc4   : > { %v5453_v1 = vpop.f32.mrf.mxu3 }
  0xc5   : > { %935 = vmatmul.f32.gmra.mxu0 %v5294_v27  ;;  %693 = vmatmul.f32.gmra.mxu2 %v5212_v47 }
  0xc6   : > { %v5410_v23 = vpop.f32.mrf.mxu1 }
  0xc8   : > { %v5419_v16 = vpop.f32.mrf.mxu2 }
  0xc9   : > { %802 = vmatmul.f32.gmra.mxu1 %v5278_v11  ;;  %4095 = vmatmul.msk.f32.gmra.mxu3 %vm440_vm1, %v5251_v6  ;;  %7154 = vst [vmem:[#allocation10_spill] sm:$0xff] %v5419_v16  ;;  %v359_v16 = vld [vmem:[#allocation2 + $0x118] sm:$0xff] }
  0xca   : > { %v5427_v36 = vpop.f32.mrf.mxu0 }
  0xcc   : > { %v5471_v61 = vpop.f32.mrf.mxu3 }
  0xcd   : > { %938 = vmatmul.f32.gmra.mxu0 %v5308_v34  ;;  %696 = vmatmul.f32.gmra.mxu2 %v5230_v55  ;;  %7161 = vst [vmem:[#allocation17_spill] sm:$0xff] %v5471_v61 }
  0xce   : > { %v5423_v28 = vpop.f32.mrf.mxu1 }
  0xcf   : > { %7155 = vst [vmem:[#allocation11_spill] sm:$0xff] %v5423_v28 }
  0xd0   : > { %v5432_v49 = vpop.f32.mrf.mxu2 }
  0xd1   : > { %805 = vmatmul.f32.gmra.mxu1 %v5294_v27  ;;  %4096 = vmatmul.msk.f32.gmra.mxu3 %vm440_vm1, %v5266_v20  ;;  %7156 = vst [vmem:[#allocation12_spill] sm:$0xff] %v5432_v49  ;;  %v365_v49 = vld [vmem:[#allocation2 + $0x148] sm:$0xff] }
  0xd2   : > { %v5443_v7 = vpop.f32.mrf.mxu0  ;;  %1167 = vmatpush.msra.mxu0 %v365_v49 }
  0xd4   : > { %1168 = vmatpush.msra.mxu0 %v359_v16  ;;  %v335_v16 = vld [vmem:[#allocation2 + $0x58] sm:$0xff] }
  0xd5   : > { %941 = vmatmul.f32.gmra.mxu0 %v5322_v41  ;;  %699 = vmatmul.f32.gmra.mxu2 %v5248_v2 }
  0xd6   : > { %v5434_v54 = vpop.f32.mrf.mxu1  ;;  %1169 = vmatpush.msra.mxu0 %v353_v51  ;;  %v1398_v51 = vld [vmem:[#allocation4 + $0x70] sm:$0xff] }
  0xd7   : > { %7157 = vst [vmem:[#allocation13_spill] sm:$0xff] %v5434_v54 }
  0xd8   : > { %v5445_v22 = vpop.f32.mrf.mxu2  ;;  %1170 = vmatpush.msra.mxu0 %v347_v15 }
  0xd9   : > { %808 = vmatmul.f32.gmra.mxu1 %v5308_v34  ;;  %4097 = vmatmul.msk.f32.gmra.mxu3 %vm440_vm1, %v5282_v24  ;;  %7158 = vst [vmem:[#allocation14_spill] sm:$0xff] %v5445_v22 }
  0xda   : > { %v5459_v22 = vpop.f32.mrf.mxu0  ;;  %1171 = vmatpush.msra.mxu0 %v341_v9 }
  0xdc   : > { %1172 = vmatpush.msra.mxu0 %v335_v16 }
  0xdd   : > { %944 = vmatmul.f32.gmra.mxu0 %v5334_v44  ;;  %826 = vmatmul.f32.vlgmr.msra.gmra.mxu2 %v5230_v55 }
  0xde   : > { %v5447_v38 = vpop.f32.mrf.mxu1  ;;  %4103 = vmatpush.msk.msra.mxu2 %vm489_vm0, %v423_v43  ;;  %v328_v43 = vld [vmem:[#allocation2 + $0x20] sm:$0xff] }
  0xdf   : > { %7159 = vst [vmem:[#allocation15_spill] sm:$0xff] %v5447_v38  ;;  %1043 = vmatpush.msra.mxu1 %v328_v43  ;;  %v425_v38 = vld [vmem:[#allocation2 + $0x328] sm:$0xf] }
  0xe0   : > { %v5457_v10 = vpop.f32.mrf.mxu2 }
  0xe1   : > { %811 = vmatmul.f32.gmra.mxu1 %v5322_v41  ;;  %4098 = vmatmul.msk.f32.gmra.mxu3 %vm440_vm1, %v5298_v29 }
  0xe2   : > { %v5475_v54 = vpop.f32.mrf.mxu0 }
  0xe5   : > { %947 = vmatmul.f32.gmra.mxu0 %v5176_v31  ;;  %829 = vmatmul.f32.gmra.mxu2 %v5248_v2 }
  0xe6   : > { %v5461_v33 = vpop.f32.mrf.mxu1 }
  0xe7   : > { %7160 = vst [vmem:[#allocation16_spill] sm:$0xff] %v5461_v33  ;;  %v1399_v33 = vld [vmem:[#allocation4 + $0x78] sm:$0xff] }
  0xe8   : > { %v5469_v58 = vpop.f32.mrf.mxu2  ;;  %1402 = vmatpush.msrb.mxu1 %v1399_v33  ;;  %v329_v33 = vld [vmem:[#allocation2 + $0x28] sm:$0xff] }
  0xe9   : > { %814 = vmatmul.f32.gmra.mxu1 %v5334_v44  ;;  %4099 = vmatmul.msk.f32.gmra.mxu3 %vm440_vm1, %v5311_v35 }
  0xea   : > { %1173 = vmatpush.msra.mxu0 %v329_v33  ;;  %1403 = vmatpush.msrb.mxu1 %v1398_v51  ;;  %v5493_v15 = vpop.f32.mrf.mxu0  ;;  %v1396_v51 = vld [vmem:[#allocation4 + $0x60] sm:$0xff] }
  0xed   : > { %950 = vmatmul.f32.gmra.mxu0 %v5194_v39  ;;  %4087 = vmatmul.msk.f32.vlgmr.msrb.gmra.mxu2 %vm440_vm1, %v5119_v3 }
  0xee   : > { %v5473_v49 = vpop.f32.mrf.mxu1  ;;  %4137 = vmatpush.msk.msrb.mxu2 %vm489_vm0, %v425_v38  ;;  %v1397_v38 = vld [vmem:[#allocation4 + $0x68] sm:$0xff] }
  0xef   : > { %7162 = vst [vmem:[#allocation18_spill] sm:$0xff] %v5473_v49  ;;  %v5486_v49 = vpop.f32.mrf.mxu3  ;;  %1404 = vmatpush.msrb.mxu1 %v1397_v38 }
  0xf0   : > { %v5484_v43 = vpop.f32.mrf.mxu2  ;;  %7163 = vst [vmem:[#allocation19_spill] sm:$0xff] %v5486_v49 }
  0xf1   : > { %817 = vmatmul.f32.gmra.mxu1 %v5176_v31  ;;  %4100 = vmatmul.msk.f32.gmra.mxu3 %vm440_vm1, %v5325_v42 }
  0xf2   : > { %1405 = vmatpush.msrb.mxu1 %v1396_v51 }
  0xf5   : > { %953 = vmatmul.f32.gmra.mxu0 %v5212_v47  ;;  %4088 = vmatmul.msk.f32.gmra.mxu2 %vm440_vm1, %v5138_v12 }
  0xf6   : > { %v5488_v28 = vpop.f32.mrf.mxu1 }
  0xf7   : > { %7164 = vst [vmem:[#allocation20_spill] sm:$0xff] %v5488_v28  ;;  %v5503_v33 = vpop.f32.mrf.mxu3  ;;  %v5510_v28 = vpop.f32.mrf.mxu0 }
  0xf8   : > { %v5498_v9 = vpop.f32.mrf.mxu2  ;;  %7166 = vst [vmem:[#allocation22_spill] sm:$0xff] %v5503_v33 }
  0xf9   : > { %820 = vmatmul.f32.gmra.mxu1 %v5194_v39  ;;  %4101 = vmatmul.msk.f32.gmra.mxu3 %vm440_vm1, %v5337_v46  ;;  %7167 = vst [vmem:[#allocation23_spill] sm:$0xff] %v5510_v28  ;;  %v1395_v28 = vld [vmem:[#allocation4 + $0x58] sm:$0xff] }
  0xfa   : > { %1406 = vmatpush.msrb.mxu1 %v1395_v28 }
  0xfd   : > { %956 = vmatmul.f32.gmra.mxu0 %v5230_v55  ;;  %4104 = vmatmul.msk.f32.vlgmr.msra.gmra.mxu2 %vm440_vm1, %v5119_v3 }
  0xfe   : > { %v5500_v16 = vpop.f32.mrf.mxu1 }
  0xff   : > { %7165 = vst [vmem:[#allocation21_spill] sm:$0xff] %v5500_v16  ;;  %v5520_v16 = vpop.f32.mrf.mxu3  ;;  %v5526_v61 = vpop.f32.mrf.mxu0 }
 0x100   : > { %v5512_v49 = vpop.f32.mrf.mxu2  ;;  %7169 = vst [vmem:[#allocation25_spill] sm:$0xff] %v5520_v16 }
 0x101   : > { %823 = vmatmul.f32.gmra.mxu1 %v5212_v47  ;;  %4102 = vmatmul.msk.f32.gmra.mxu3 %vm440_vm1, %v5346_v50  ;;  %7170 = vst [vmem:[#allocation26_spill] sm:$0xff] %v5526_v61 }
 0x105   : > { %959 = vmatmul.f32.gmra.mxu0 %v5248_v2  ;;  %4105 = vmatmul.msk.f32.gmra.mxu2 %vm440_vm1, %v5138_v12 }
 0x106   : > { %v5514_v38 = vpop.f32.mrf.mxu1 }
 0x107   : > { %7168 = vst [vmem:[#allocation24_spill] sm:$0xff] %v5514_v38  ;;  %v5538_v16 = vpop.f32.mrf.mxu3  ;;  %v5542_v61 = vpop.f32.mrf.mxu0 }
 0x108   : > { %v5524_v33 = vpop.f32.mrf.mxu2 }
 0x109   : > { %1044 = vmatmul.f32.vlgmr.msra.gmra.mxu1 %v5173_v30  ;;  %4121 = vmatmul.msk.f32.vlgmr.msra.gmra.mxu3 %vm440_vm1, %v5119_v3  ;;  %v1394_v3 = vld [vmem:[#allocation4 + $0x50] sm:$0xff] }
 0x10a   : > { %1407 = vmatpush.msrb.mxu1 %v1394_v3 }
 0x10d   : > { %1174 = vmatmul.f32.vlgmr.msra.gmra.mxu0 %v5173_v30  ;;  %4106 = vmatmul.msk.f32.gmra.mxu2 %vm440_vm1, %v5152_v19  ;;  %v1393_v30 = vld [vmem:[#allocation4 + $0x48] sm:$0xff] }
 0x10e   : > { %v5528_v51 = vpop.f32.mrf.mxu1  ;;  %1408 = vmatpush.msrb.mxu1 %v1393_v30 }
 0x10f   : > { %7171 = vst [vmem:[#allocation27_spill] sm:$0xff] %v5528_v51  ;;  %v5552_v51 = vpop.f32.mrf.mxu3 }
 0x110   : > { %v5536_v38 = vpop.f32.mrf.mxu2 }
 0x111   : > { %1047 = vmatmul.f32.gmra.mxu1 %v5191_v37  ;;  %4122 = vmatmul.msk.f32.gmra.mxu3 %vm440_vm1, %v5138_v12 }
 0x115   : > { %1177 = vmatmul.f32.gmra.mxu0 %v5191_v37  ;;  %4107 = vmatmul.msk.f32.gmra.mxu2 %vm440_vm1, %v5163_v25  ;;  %v5559_v37 = vpop.f32.mrf.mxu0 }
 0x116   : > { %v5540_v28 = vpop.f32.mrf.mxu1  ;;  %7174 = vst [vmem:[#allocation30_spill] sm:$0xff] %v5559_v37  ;;  %v1391_v37 = vld [vmem:[#allocation4 + $0x38] sm:$0xff] }
 0x117   : > { %7172 = vst [vmem:[#allocation28_spill] sm:$0xff] %v5540_v28  ;;  %v1392_v28 = vld [vmem:[#allocation4 + $0x40] sm:$0xff] }
 0x118   : > { %v5550_v12 = vpop.f32.mrf.mxu2  ;;  %1409 = vmatpush.msrb.mxu1 %v1392_v28 }
 0x119   : > { %1050 = vmatmul.f32.gmra.mxu1 %v5209_v45  ;;  %4123 = vmatmul.msk.f32.gmra.mxu3 %vm440_vm1, %v5152_v19 }
 0x11a   : > { %1410 = vmatpush.msrb.mxu1 %v1391_v37 }
 0x11d   : > { %1180 = vmatmul.f32.gmra.mxu0 %v5209_v45  ;;  %4108 = vmatmul.msk.f32.gmra.mxu2 %vm440_vm1, %v5179_v32  ;;  %v5576_v45 = vpop.f32.mrf.mxu0 }
 0x11e   : > { %v5554_v3 = vpop.f32.mrf.mxu1  ;;  %7176 = vst [vmem:[#allocation32_spill] sm:$0xff] %v5576_v45  ;;  %v1390_v45 = vld [vmem:[#allocation4 + $0x30] sm:$0xff] }
 0x11f   : > { %7173 = vst [vmem:[#allocation29_spill] sm:$0xff] %v5554_v3  ;;  %v5569_v3 = vpop.f32.mrf.mxu3  ;;  %1411 = vmatpush.msrb.mxu1 %v1390_v45 }
 0x120   : > { %v5564_v19 = vpop.f32.mrf.mxu2 }
 0x121   : > { %1053 = vmatmul.f32.gmra.mxu1 %v5227_v53  ;;  %4124 = vmatmul.msk.f32.gmra.mxu3 %vm440_vm1, %v5163_v25 }
 0x125   : > { %1183 = vmatmul.f32.gmra.mxu0 %v5227_v53  ;;  %4109 = vmatmul.msk.f32.gmra.mxu2 %vm440_vm1, %v5197_v40 }
 0x126   : > { %v5566_v30 = vpop.f32.mrf.mxu1 }
 0x127   : > { %7175 = vst [vmem:[#allocation31_spill] sm:$0xff] %v5566_v30  ;;  %v5586_v53 = vpop.f32.mrf.mxu3  ;;  %v5592_v30 = vpop.f32.mrf.mxu0 }
 0x128   : > { %v5578_v25 = vpop.f32.mrf.mxu2  ;;  %7178 = vst [vmem:[#allocation34_spill] sm:$0xff] %v5592_v30 }
 0x129   : > { %1056 = vmatmul.f32.gmra.mxu1 %v5245_v0  ;;  %4125 = vmatmul.msk.f32.gmra.mxu3 %vm440_vm1, %v5179_v32 }
 0x12d   : > { %1186 = vmatmul.f32.gmra.mxu0 %v5245_v0  ;;  %4110 = vmatmul.msk.f32.gmra.mxu2 %vm440_vm1, %v5215_v48 }
 0x12e   : > { %v5580_v28 = vpop.f32.mrf.mxu1 }
 0x12f   : > { %7177 = vst [vmem:[#allocation33_spill] sm:$0xff] %v5580_v28  ;;  %v5604_v28 = vpop.f32.mrf.mxu3  ;;  %v5608_v30 = vpop.f32.mrf.mxu0 }
 0x130   : > { %v5590_v32 = vpop.f32.mrf.mxu2  ;;  %7181 = vst [vmem:[#allocation37_spill] sm:$0xff] %v5608_v30 }
 0x131   : > { %1059 = vmatmul.f32.gmra.mxu1 %v5262_v17  ;;  %4126 = vmatmul.msk.f32.gmra.mxu3 %vm440_vm1, %v5197_v40  ;;  %v1389_v40 = vld [vmem:[#allocation4 + $0x28] sm:$0xff] }
 0x132   : > { %1412 = vmatpush.msrb.mxu1 %v1389_v40 }
 0x135   : > { %1189 = vmatmul.f32.gmra.mxu0 %v5262_v17  ;;  %4111 = vmatmul.msk.f32.gmra.mxu2 %vm440_vm1, %v5233_v56  ;;  %v1388_v17 = vld [vmem:[#allocation4 + $0x20] sm:$0xff] }
 0x136   : > { %v5594_v37 = vpop.f32.mrf.mxu1  ;;  %1413 = vmatpush.msrb.mxu1 %v1388_v17 }
 0x137   : > { %7179 = vst [vmem:[#allocation35_spill] sm:$0xff] %v5594_v37  ;;  %v5618_v37 = vpop.f32.mrf.mxu3 }
 0x138   : > { %v5602_v0 = vpop.f32.mrf.mxu2 }
 0x139   : > { %1062 = vmatmul.f32.gmra.mxu1 %v5278_v11  ;;  %4127 = vmatmul.msk.f32.gmra.mxu3 %vm440_vm1, %v5215_v48 }
 0x13d   : > { %1192 = vmatmul.f32.gmra.mxu0 %v5278_v11  ;;  %4112 = vmatmul.msk.f32.gmra.mxu2 %vm440_vm1, %v5251_v6  ;;  %v5625_v11 = vpop.f32.mrf.mxu0 }
 0x13e   : > { %v5606_v45 = vpop.f32.mrf.mxu1  ;;  %7183 = vst [vmem:[#allocation39_spill] sm:$0xff] %v5625_v11  ;;  %v1964_v11 = vld [vmem:[%s7146_s3 + $0x68] sm:$0xff] }
 0x13f   : > { %7180 = vst [vmem:[#allocation36_spill] sm:$0xff] %v5606_v45  ;;  %v1387_v45 = vld [vmem:[#allocation4 + $0x18] sm:$0xff] }
 0x140   : > { %v5616_v48 = vpop.f32.mrf.mxu2  ;;  %1414 = vmatpush.msrb.mxu1 %v1387_v45 }
 0x141   : > { %1065 = vmatmul.f32.gmra.mxu1 %v5294_v27  ;;  %4128 = vmatmul.msk.f32.gmra.mxu3 %vm440_vm1, %v5233_v56 }
 0x145   : > { %1195 = vmatmul.f32.gmra.mxu0 %v5294_v27  ;;  %4113 = vmatmul.msk.f32.gmra.mxu2 %vm440_vm1, %v5266_v20  ;;  %v1966_v27 = vld [vmem:[%s7146_s3 + $0x78] sm:$0xff] }
 0x146   : > { %v5620_v40 = vpop.f32.mrf.mxu1  ;;  %2001 = vmatpush.msrb.mxu0 %v1966_v27 }
 0x147   : > { %7182 = vst [vmem:[#allocation38_spill] sm:$0xff] %v5620_v40  ;;  %v5635_v40 = vpop.f32.mrf.mxu3 }
 0x148   : > { %v5630_v56 = vpop.f32.mrf.mxu2 }
 0x149   : > { %1068 = vmatmul.f32.gmra.mxu1 %v5308_v34  ;;  %4129 = vmatmul.msk.f32.gmra.mxu3 %vm440_vm1, %v5251_v6  ;;  %v1965_v6 = vld [vmem:[%s7146_s3 + $0x70] sm:$0xff] }
 0x14a   : > { %2002 = vmatpush.msrb.mxu0 %v1965_v6 }
 0x14c   : > { %2003 = vmatpush.msrb.mxu0 %v1964_v11 }
 0x14d   : > { %1198 = vmatmul.f32.gmra.mxu0 %v5308_v34  ;;  %4114 = vmatmul.msk.f32.gmra.mxu2 %vm440_vm1, %v5282_v24  ;;  %v5648_v34 = vpop.f32.mrf.mxu0 }
 0x14e   : > { %v5632_v17 = vpop.f32.mrf.mxu1  ;;  %7185 = vst [vmem:[#allocation41_spill] sm:$0xff] %v5648_v34 }
 0x14f   : > { %7184 = vst [vmem:[#allocation40_spill] sm:$0xff] %v5632_v17  ;;  %v1386_v17 = vld [vmem:[#allocation4 + $0x10] sm:$0xff]  ;;  %v5667_v6 = vpop.f32.mrf.mxu3 }
 0x150   : > { %v5650_v45 = vpop.f32.mrf.mxu2  ;;  %1415 = vmatpush.msrb.mxu1 %v1386_v17  ;;  %v1962_v17 = vld [vmem:[%s7146_s3 + $0x58] sm:$0xff]  ;;  %7187 = vst [vmem:[#allocation43_spill] sm:$0xff] %v5667_v6 }
 0x151   : > { %1071 = vmatmul.f32.gmra.mxu1 %v5322_v41  ;;  %4130 = vmatmul.msk.f32.gmra.mxu3 %vm440_vm1, %v5266_v20  ;;  %v1963_v20 = vld [vmem:[%s7146_s3 + $0x60] sm:$0xff] }
 0x152   : > { %2004 = vmatpush.msrb.mxu0 %v1963_v20  ;;  %v1960_v20 = vld [vmem:[%s7146_s3 + $0x48] sm:$0xff] }
 0x154   : > { %2005 = vmatpush.msrb.mxu0 %v1962_v17  ;;  %v1958_v17 = vld [vmem:[%s7146_s3 + $0x38] sm:$0xff] }
 0x155   : > { %1201 = vmatmul.f32.gmra.mxu0 %v5322_v41  ;;  %4115 = vmatmul.msk.f32.gmra.mxu2 %vm440_vm1, %v5298_v29  ;;  %v1961_v41 = vld [vmem:[%s7146_s3 + $0x50] sm:$0xff] }
 0x156   : > { %v5655_v27 = vpop.f32.mrf.mxu1  ;;  %2006 = vmatpush.msrb.mxu0 %v1961_v41  ;;  %v1385_v41 = vld [vmem:[#allocation4 + $0x8] sm:$0xff] }
 0x157   : > { %7186 = vst [vmem:[#allocation42_spill] sm:$0xff] %v5655_v27  ;;  %v5679_v27 = vpop.f32.mrf.mxu0  ;;  %1416 = vmatpush.msrb.mxu1 %v1385_v41 }
 0x158   : > { %v5674_v11 = vpop.f32.mrf.mxu2  ;;  %7188 = vst [vmem:[#allocation44_spill] sm:$0xff] %v5679_v27  ;;  %2007 = vmatpush.msrb.mxu0 %v1960_v20  ;;  %v1384_v27 = vld [vmem:[#allocation4] sm:$0xff] }
 0x159   : > { %1074 = vmatmul.f32.gmra.mxu1 %v5334_v44  ;;  %4131 = vmatmul.msk.f32.gmra.mxu3 %vm440_vm1, %v5282_v24  ;;  %v1959_v24 = vld [vmem:[%s7146_s3 + $0x40] sm:$0xff] }
 0x15a   : > { %2008 = vmatpush.msrb.mxu0 %v1959_v24  ;;  %v5703_v24 = vld [vmem:[%s7145_s2] sm:$0x3f]  ;;  %1417 = vmatpush.msrb.mxu1 %v1384_v27  ;;  %v1954_v27 = vld [vmem:[%s7146_s3 + $0x18] sm:$0xff] }
 0x15c   : > { %2009 = vmatpush.msrb.mxu0 %v1958_v17  ;;  %v1956_v17 = vld [vmem:[%s7146_s3 + $0x28] sm:$0xff] }
 0x15d   : > { %1204 = vmatmul.f32.gmra.mxu0 %v5334_v44  ;;  %4116 = vmatmul.msk.f32.gmra.mxu2 %vm440_vm1, %v5311_v35  ;;  %v1957_v44 = vld [vmem:[%s7146_s3 + $0x30] sm:$0xff] }
 0x15e   : > { %v5681_v34 = vpop.f32.mrf.mxu1  ;;  %2010 = vmatpush.msrb.mxu0 %v1957_v44 }
 0x15f   : > { %7189 = vst [vmem:[#allocation45_spill] sm:$0xff] %v5681_v34  ;;  %v5705_v34 = vpop.f32.mrf.mxu3  ;;  %v5718_v30 = vpop.f32.mrf.mxu0 }
 0x160   : > { %v5695_v20 = vpop.f32.mrf.mxu2  ;;  %7191 = vst [vmem:[#allocation47_spill] sm:$0xff] %v5705_v34  ;;  %v1955_v34 = vld [vmem:[%s7146_s3 + $0x20] sm:$0xff]  ;;  %2011 = vmatpush.msrb.mxu0 %v1956_v17  ;;  %v5740_v17 = vperm.slane %v5703_v24, 1 }
 0x161   : > { %1077 = vmatmul.f32.gmra.mxu1 %v5176_v31  ;;  %4132 = vmatmul.msk.f32.gmra.mxu3 %vm440_vm1, %v5298_v29  ;;  %7190 = vst [vmem:[#allocation46_spill] sm:$0xff] %v5695_v20  ;;  %v1982_v29 = vld [vmem:[%s7146_s3 + $0xf8] sm:$0xff]  ;;  %v5716_v20 = vperm.slane %v5703_v24, 0 }
 0x162   : > { %2066 = vmatpush.msra.mxu2 %v1982_v29  ;;  %7193 = vst [vmem:[#allocation49_spill] sm:$0xff] %v5718_v30  ;;  %2012 = vmatpush.msrb.mxu0 %v1955_v34  ;;  %v1953_v29 = vld [vmem:[%s7146_s3 + $0x10] sm:$0xff]  ;;  %v1951_v34 = vld [vmem:[%s7146_s3] sm:$0xff] }
 0x164   : > { %2013 = vmatpush.msrb.mxu0 %v1954_v27  ;;  %v656_v27 = vadd.f32 %v5457_v10, %v5740_v17  ;;  %v1980_v10 = vld [vmem:[%s7146_s3 + $0xe8] sm:$0xff] }
 0x165   : > { %1207 = vmatmul.f32.gmra.mxu0 %v5176_v31  ;;  %4117 = vmatmul.msk.f32.gmra.mxu2 %vm440_vm1, %v5325_v42  ;;  %v526_v31 = vadd.f32 %v5384_v5, %v5716_v20 }
 0x166   : > { %v5713_v41 = vpop.f32.mrf.mxu1  ;;  %2014 = vmatpush.msrb.mxu0 %v1953_v29  ;;  %v529_v29 = vadd.f32 %v5397_v18, %v5716_v20 }
 0x167   : > { %7192 = vst [vmem:[#allocation48_spill] sm:$0xff] %v5713_v41  ;;  %v1952_v41 = vld [vmem:[%s7146_s3 + $0x8] sm:$0xff]  ;;  %v5745_v30 = vpop.f32.mrf.mxu3  ;;  %v5750_v5 = vadd.f32 %v5354_v52, %v526_v31  ;;  %v1981_v52 = vld [vmem:[%s7146_s3 + $0xf0] sm:$0xff] }
 0x168   : > { %v5734_v44 = vpop.f32.mrf.mxu2  ;;  %7195 = vst [vmem:[#allocation51_spill] sm:$0xff] %v5745_v30  ;;  %2015 = vmatpush.msrb.mxu0 %v1952_v41  ;;  %2067 = vmatpush.msra.mxu2 %v1981_v52  ;;  %v1997_v41 = vld [vmem:[%s7146_s3 + $0x170] sm:$0xff]  ;;  %v5788_v30 = vadd.f32 %v5361_v57, %v529_v29  ;;  %v1996_v57 = vld [vmem:[%s7146_s3 + $0x168] sm:$0xff] }
 0x169   : > { %1080 = vmatmul.f32.gmra.mxu1 %v5194_v39  ;;  %4133 = vmatmul.msk.f32.gmra.mxu3 %vm440_vm1, %v5311_v35  ;;  %7194 = vst [vmem:[#allocation50_spill] sm:$0xff] %v5734_v44  ;;  %v5760_v44 = vpop.f32.mrf.mxu0  ;;  %v1304_v31 = vmin.f32 %v5750_v5, 0.0  ;;  %vm1288_vm2 = vcmp.gt.f32.partialorder %v5750_v5, 0.0 }
 0x16a   : > { %7197 = vst [vmem:[#allocation53_spill] sm:$0xff] %v5760_v44  ;;  %2016 = vmatpush.msrb.mxu0 %v1951_v34  ;;  %2068 = vmatpush.msra.mxu2 %v1980_v10  ;;  %v1579_v34 = vld [vmem:[#allocation4 + $0xf8] sm:$0xff]  ;;  %vm1289_vm4 = vcmp.gt.f32.partialorder %v5788_v30, 0.0 }
 0x16b   : > { %v1320_v44 = vmul.f32 1.442695, %v1304_v31  ;;  %1582 = vmatpush.msrb.mxu3 %v1579_v34 }
 0x16d   : > { %1210 = vmatmul.f32.gmra.mxu0 %v5194_v39  ;;  %4118 = vmatmul.msk.f32.gmra.mxu2 %vm440_vm1, %v5337_v46  ;;  %v1998_v39 = vld [vmem:[%s7146_s3 + $0x178] sm:$0xff]  ;;  %4458 = vpow2.f32 %v1320_v44 }
 0x16e   : > { %v5747_v35 = vpop.f32.mrf.mxu1  ;;  %2131 = vmatpush.msra.mxu1 %v1998_v39 }
 0x16f   : > { %7196 = vst [vmem:[#allocation52_spill] sm:$0xff] %v5747_v35  ;;  %v5791_v6 = vpop.f32.mrf.mxu3 }
 0x170   : > { %v5780_v35 = vpop.f32.mrf.mxu2  ;;  %2132 = vmatpush.msra.mxu1 %v1997_v41 }
 0x171   : > { %1083 = vmatmul.f32.gmra.mxu1 %v5212_v47  ;;  %4134 = vmatmul.msk.f32.gmra.mxu3 %vm440_vm1, %v5325_v42  ;;  %v5783_v42 = vadd.f32 %v5378_v63, %v656_v27  ;;  %v659_v63 = vadd.f32 %v5469_v58, %v5740_v17  ;;  %v1305_v27 = vmin.f32 %v5788_v30, 0.0  ;;  %v532_v58 = vadd.f32 %v5412_v14, %v5716_v20  ;;  %v5810_v39 = vpop.f32.mrf.mxu0  ;;  %v4938_v14 = vld [vmem:[%s5116_s19 + $0x8] sm:$0xff] }
 0x172   : > { %2133 = vmatpush.msra.mxu1 %v1996_v57 }
 0x173   : > { %v1711_v18 = vmin.f32 %v5783_v42, 0.0  ;;  %v5815_v41 = vadd.f32 %v5391_v13, %v659_v63  ;;  %v5820_v44 = vadd.f32 %v5368_v60, %v532_v58  ;;  %v1322_v29 = vmul.f32 1.442695, %v1305_v27  ;;  %v1578_v60 = vld [vmem:[#allocation4 + $0xf0] sm:$0xff] }
 0x174   : > { %v1995_v63 = vld [vmem:[%s7146_s3 + $0x160] sm:$0xff]  ;;  %1583 = vmatpush.msrb.mxu3 %v1578_v60  ;;  %v4940_v60 = vld [vmem:[%s5116_s19 + $0x18] sm:$0xff]  ;;  %vm1663_vm3 = vcmp.gt.f32.partialorder %v5783_v42, 0.0 }
 0x175   : > { %1213 = vmatmul.f32.gmra.mxu0 %v5212_v47  ;;  %4119 = vmatmul.msk.f32.gmra.mxu2 %vm440_vm1, %v5346_v50  ;;  %v1979_v47 = vld [vmem:[%s7146_s3 + $0xe0] sm:$0xff]  ;;  %v1714_v34 = vmin.f32 %v5815_v41, 0.0  ;;  %vm1666_vm5 = vcmp.gt.f32.partialorder %v5815_v41, 0.0  ;;  %vm1290_vm6 = vcmp.gt.f32.partialorder %v5820_v44, 0.0 }
 0x176   : > { %v5785_v52 = vpop.f32.mrf.mxu1  ;;  %2069 = vmatpush.msra.mxu2 %v1979_v47  ;;  %v1306_v47 = vmin.f32 %v5820_v44, 0.0  ;;  %2134 = vmatpush.msra.mxu1 %v1995_v63  ;;  %v1977_v63 = vld [vmem:[%s7146_s3 + $0xd0] sm:$0xff] }
 0x177   : > { %7198 = vst [vmem:[#allocation54_spill] sm:$0xff] %v5785_v52  ;;  %v4459_v52 = vpop.eup %4458  ;;  %v5829_v13 = vpop.f32.mrf.mxu3  ;;  %v1765_v58 = vmul.f32 1.442695, %v1714_v34  ;;  %v665_v34 = vadd.f32 %v5498_v9, %v5740_v17 }
 0x178   : > { %v5812_v10 = vpop.f32.mrf.mxu2 }
 0x179   : > { %1086 = vmatmul.f32.gmra.mxu1 %v5230_v55  ;;  %4135 = vmatmul.msk.f32.gmra.mxu3 %vm440_vm1, %v5337_v46  ;;  %v1759_v46 = vmul.f32 1.442695, %v1711_v18  ;;  %v662_v18 = vadd.f32 %v5484_v43, %v5740_v17  ;;  %v5847_v27 = vpop.f32.mrf.mxu0 }
 0x17b   : > { %4460 = vpow2.f32 %v1759_v46  ;;  %v5845_v57 = vadd.f32 %v5408_v21, %v662_v18 }
 0x17c   : > { %4462 = vpow2.f32 %v1322_v29  ;;  %v1324_v29 = vmul.f32 1.442695, %v1306_v47  ;;  %v1994_v47 = vld [vmem:[%s7146_s3 + $0x158] sm:$0xff] }
 0x17d   : > { %1216 = vmatmul.f32.gmra.mxu0 %v5230_v55  ;;  %4138 = vmatmul.msk.f32.vlgmr.msrb.gmra.mxu2 %vm440_vm1, %v4938_v14  ;;  %v1978_v55 = vld [vmem:[%s7146_s3 + $0xd8] sm:$0xff]  ;;  %v1717_v18 = vmin.f32 %v5845_v57, 0.0  ;;  %4464 = vpow2.f32 %v1765_v58  ;;  %v5874_v58 = vadd.f32 %v5421_v26, %v665_v34  ;;  %vm1669_vm7 = vcmp.gt.f32.partialorder %v5845_v57, 0.0 }
 0x17e   : > { %v5817_v31 = vpop.f32.mrf.mxu1  ;;  %2070 = vmatpush.msra.mxu2 %v1978_v55  ;;  %v1577_v55 = vld [vmem:[#allocation4 + $0xe8] sm:$0xff]  ;;  %4466 = vpow2.f32 %v1324_v29  ;;  %2135 = vmatpush.msra.mxu1 %v1994_v47  ;;  %v1993_v47 = vld [vmem:[%s7146_s3 + $0x150] sm:$0xff] }
 0x17f   : > { %7199 = vst [vmem:[#allocation55_spill] sm:$0xff] %v5817_v31  ;;  %1584 = vmatpush.msrb.mxu3 %v1577_v55  ;;  %v4941_v55 = vld [vmem:[%s5116_s19 + $0x28] sm:$0xff]  ;;  %v1720_v34 = vmin.f32 %v5874_v58, 0.0  ;;  %vm1672_vm9 = vcmp.gt.f32.partialorder %v5874_v58, 0.0 }
 0x180   : > { %v5842_v43 = vpop.f32.mrf.mxu2  ;;  %2071 = vmatpush.msra.mxu2 %v1977_v63  ;;  %v1976_v63 = vld [vmem:[%s7146_s3 + $0xc8] sm:$0xff]  ;;  %2136 = vmatpush.msra.mxu1 %v1993_v47  ;;  %v544_v47 = vadd.f32 %v5475_v54, %v5716_v20 }
 0x181   : > { %1089 = vmatmul.f32.gmra.mxu1 %v5248_v2  ;;  %4136 = vmatmul.msk.f32.gmra.mxu3 %vm440_vm1, %v5346_v50  ;;  %v535_v2 = vadd.f32 %v5427_v36, %v5716_v20  ;;  %v4154_v50 = vadd.f32 -1.0, %v4459_v52  ;;  %v4461_v14 = vpop.eup %4460  ;;  %v4939_v36 = vld [vmem:[%s5116_s19 + $0xf0] sm:$0xff]  ;;  %v5883_v29 = vpop.f32.mrf.mxu0 }
 0x182   : > { %v4463_v52 = vpop.eup %4462  ;;  %2072 = vmatpush.msra.mxu2 %v1976_v63  ;;  %v5941_v54 = vadd.f32 %v5410_v23, %v544_v47  ;;  %v1574_v23 = vld [vmem:[#allocation4 + $0xd0] sm:$0xff] }
 0x183   : > { %v5852_v31 = vadd.f32 %v5375_v62, %v535_v2  ;;  %v1368_v21 = vsel %vm1288_vm2, %v5750_v5, %v4154_v50  ;;  %v4186_v62 = vadd.f32 -1.0, %v4461_v14  ;;  %v538_v2 = vadd.f32 %v5443_v7, %v5716_v20 }
 0x184   : > { %v4155_v9 = vadd.f32 -1.0, %v4463_v52  ;;  %v1771_v14 = vmul.f32 1.442695, %v1717_v18  ;;  %vm1294_vm14 = vcmp.gt.f32.partialorder %v5941_v54, 0.0 }
 0x185   : > { %1219 = vmatmul.f32.gmra.mxu0 %v4939_v36  ;;  %4139 = vmatmul.msk.f32.gmra.mxu2 %vm440_vm1, %v4940_v60  ;;  %v1307_v5 = vmin.f32 %v5852_v31, 0.0  ;;  %v1903_v60 = vsel %vm1663_vm3, %v5783_v42, %v4186_v62  ;;  %v5881_v7 = vadd.f32 %v5386_v8, %v538_v2  ;;  %v668_v42 = vadd.f32 %v5512_v49, %v5740_v17  ;;  %v1576_v62 = vld [vmem:[#allocation4 + $0xe0] sm:$0xff] }
 0x186   : > { %v5849_v46 = vpop.f32.mrf.mxu1  ;;  %v1369_v26 = vsel %vm1289_vm4, %v5788_v30, %v4155_v9  ;;  %4468 = vpow2.f32 %v1771_v14  ;;  %1585 = vmatpush.msrb.mxu3 %v1576_v62  ;;  %v1777_v14 = vmul.f32 1.442695, %v1720_v34  ;;  %v1975_v62 = vld [vmem:[%s7146_s3 + $0xc0] sm:$0xff]  ;;  %vm1291_vm8 = vcmp.gt.f32.partialorder %v5852_v31, 0.0 }
 0x187   : > { %7200 = vst [vmem:[#allocation56_spill] sm:$0xff] %v5849_v46  ;;  %v1326_v52 = vmul.f32 1.442695, %v1307_v5  ;;  %v1308_v30 = vmin.f32 %v5881_v7, 0.0  ;;  %v541_v5 = vadd.f32 %v5459_v22, %v5716_v20  ;;  %v5904_v9 = vadd.f32 %v5437_v59, %v668_v42  ;;  %2073 = vmatpush.msra.mxu2 %v1975_v62  ;;  %v7223_v46 = vld [vmem:[#allocation20_spill] sm:$0xff] }
 0x188   : > { %v5871_v50 = vpop.f32.mrf.mxu2  ;;  %v671_v42 = vadd.f32 %v5524_v33, %v5740_v17  ;;  %vm1292_vm10 = vcmp.gt.f32.partialorder %v5881_v7, 0.0 }
 0x189   : > { %1418 = vmatmul.f32.vlgmr.msrb.gmra.mxu1 %v1368_v21  ;;  %v4465_v21 = vpop.eup %4464  ;;  %4470 = vpow2.f32 %v1326_v52  ;;  %v5911_v22 = vadd.f32 %v5399_v4, %v541_v5  ;;  %v1328_v52 = vmul.f32 1.442695, %v1308_v30  ;;  %v1723_v34 = vmin.f32 %v5904_v9, 0.0 }
 0x18a   : > { %v4467_v18 = vpop.eup %4466  ;;  %v4189_v8 = vadd.f32 -1.0, %v4465_v21  ;;  %4472 = vpow2.f32 %v1777_v14  ;;  %v5934_v5 = vadd.f32 %v5453_v1, %v671_v42  ;;  %v1974_v42 = vld [vmem:[%s7146_s3 + $0xb8] sm:$0xff]  ;;  %vm1675_vm11 = vcmp.gt.f32.partialorder %v5904_v9, 0.0 }
 0x18b   : > { %v4156_v49 = vadd.f32 -1.0, %v4467_v18  ;;  %v1309_v63 = vmin.f32 %v5911_v22, 0.0  ;;  %4474 = vpow2.f32 %v1328_v52  ;;  %2074 = vmatpush.msra.mxu2 %v1974_v42  ;;  %v1973_v42 = vld [vmem:[%s7146_s3 + $0xb0] sm:$0xff]  ;;  %vm1293_vm12 = vcmp.gt.f32.partialorder %v5911_v22, 0.0 }
 0x18c   : > { %v1906_v21 = vsel %vm1666_vm5, %v5815_v41, %v4189_v8  ;;  %v5920_v41 = vpop.f32.mrf.mxu0  ;;  %v1575_v8 = vld [vmem:[#allocation4 + $0xd8] sm:$0xff]  ;;  %vm1678_vm13 = vcmp.gt.f32.partialorder %v5934_v5, 0.0 }
 0x18d   : > { %2017 = vmatmul.f32.vlgmr.msrb.gmra.mxu0 %v1903_v60  ;;  %4140 = vmatmul.msk.f32.gmra.mxu2 %vm440_vm1, %v4941_v55  ;;  %v4469_v55 = vpop.eup %4468  ;;  %v1370_v59 = vsel %vm1290_vm6, %v5820_v44, %v4156_v49  ;;  %v1992_v44 = vld [vmem:[%s7146_s3 + $0x148] sm:$0xff]  ;;  %v1783_v49 = vmul.f32 1.442695, %v1723_v34  ;;  %v1330_v52 = vmul.f32 1.442695, %v1309_v63  ;;  %v674_v34 = vadd.f32 %v5536_v38, %v5740_v17  ;;  %v7204_v63 = vld [vmem:[#allocation17_spill] sm:$0xff] }
 0x18e   : > { %v5877_v36 = vpop.f32.mrf.mxu1  ;;  %v4192_v4 = vadd.f32 -1.0, %v4469_v55  ;;  %1586 = vmatpush.msrb.mxu3 %v1575_v8  ;;  %2137 = vmatpush.msra.mxu1 %v1992_v44  ;;  %v547_v8 = vadd.f32 %v5493_v15, %v5716_v20 }
 0x18f   : > { %7201 = vst [vmem:[#allocation57_spill] sm:$0xff] %v5877_v36  ;;  %v4471_v18 = vpop.eup %4470  ;;  %4476 = vpow2.f32 %v1783_v49  ;;  %v5964_v47 = vadd.f32 %v7204_v63, %v674_v34  ;;  %2075 = vmatpush.msra.mxu2 %v1973_v42  ;;  %v4945_v42 = vld [vmem:[%s5116_s19 + $0x68] sm:$0xff] }
 0x190   : > { %v5901_v2 = vpop.f32.mrf.mxu2  ;;  %v4157_v30 = vadd.f32 -1.0, %v4471_v18  ;;  %v4473_v55 = vpop.eup %4472  ;;  %v1726_v18 = vmin.f32 %v5934_v5, 0.0  ;;  %4478 = vpow2.f32 %v1330_v52  ;;  %1587 = vmatpush.msrb.mxu3 %v1574_v23  ;;  %v677_v23 = vadd.f32 %v5550_v12, %v5740_v17 }
 0x191   : > { %1421 = vmatmul.f32.gmra.mxu1 %v1369_v26  ;;  %v4942_v26 = vld [vmem:[%s5116_s19 + $0x38] sm:$0xff]  ;;  %v5991_v12 = vpop.f32.mrf.mxu3  ;;  %vm1681_vm15 = vcmp.gt.f32.partialorder %v5964_v47, 0.0 }
 0x192   : > { %v1371_v1 = vsel %vm1291_vm8, %v5852_v31, %v4157_v30  ;;  %v1310_v31 = vmin.f32 %v5941_v54, 0.0  ;;  %v1789_v30 = vmul.f32 1.442695, %v1726_v18  ;;  %v1729_v18 = vmin.f32 %v5964_v47, 0.0 }
 0x194   : > { %v5959_v62 = vpop.f32.mrf.mxu0  ;;  %v1332_v52 = vmul.f32 1.442695, %v1310_v31  ;;  %4480 = vpow2.f32 %v1789_v30  ;;  %v7207_v31 = vld [vmem:[#allocation23_spill] sm:$0xff] }
 0x195   : > { %2020 = vmatmul.f32.gmra.mxu0 %v1906_v21  ;;  %4141 = vmatmul.msk.f32.gmra.mxu2 %vm440_vm1, %v4942_v26  ;;  %v1909_v21 = vsel %vm1669_vm7, %v5845_v57, %v4192_v4  ;;  %v4943_v26 = vld [vmem:[%s5116_s19 + $0x48] sm:$0xff]  ;;  %v4195_v57 = vadd.f32 -1.0, %v4473_v55  ;;  %v1991_v4 = vld [vmem:[%s7146_s3 + $0x140] sm:$0xff] }
 0x196   : > { %v5907_v60 = vpop.f32.mrf.mxu1  ;;  %2138 = vmatpush.msra.mxu1 %v1991_v4  ;;  %v7206_v55 = vld [vmem:[#allocation11_spill] sm:$0xff]  ;;  %v1990_v4 = vld [vmem:[%s7146_s3 + $0x138] sm:$0xff]  ;;  %4482 = vpow2.f32 %v1332_v52 }
 0x197   : > { %7202 = vst [vmem:[#allocation58_spill] sm:$0xff] %v5907_v60  ;;  %v1912_v15 = vsel %vm1672_vm9, %v5874_v58, %v4195_v57  ;;  %v1573_v57 = vld [vmem:[#allocation4 + $0xc8] sm:$0xff]  ;;  %v7208_v30 = vld [vmem:[#allocation19_spill] sm:$0xff] }
 0x198   : > { %v5931_v33 = vpop.f32.mrf.mxu2  ;;  %1588 = vmatpush.msrb.mxu3 %v1573_v57  ;;  %2139 = vmatpush.msra.mxu1 %v1990_v4  ;;  %v7210_v57 = vld [vmem:[#allocation13_spill] sm:$0xff] }
 0x199   : > { %1424 = vmatmul.f32.gmra.mxu1 %v1370_v59  ;;  %v4475_v59 = vpop.eup %4474 }
 0x19a   : > { %v4158_v44 = vadd.f32 -1.0, %v4475_v59 }
 0x19c   : > { %v1372_v59 = vsel %vm1292_vm10, %v5881_v7, %v4158_v44 }
 0x19d   : > { %2023 = vmatmul.f32.gmra.mxu0 %v1909_v21  ;;  %4142 = vmatmul.msk.f32.gmra.mxu2 %vm440_vm1, %v4943_v26  ;;  %v4477_v21 = vpop.eup %4476  ;;  %v5971_v26 = vadd.f32 %v7206_v55, %v547_v8  ;;  %v550_v8 = vadd.f32 %v7207_v31, %v5716_v20  ;;  %v1795_v55 = vmul.f32 1.442695, %v1729_v18 }
 0x19e   : > { %v5937_v14 = vpop.f32.mrf.mxu1  ;;  %v4479_v34 = vpop.eup %4478  ;;  %v4198_v58 = vadd.f32 -1.0, %v4477_v21 }
 0x19f   : > { %7203 = vst [vmem:[#allocation59_spill] sm:$0xff] %v5937_v14  ;;  %v1311_v7 = vmin.f32 %v5971_v26, 0.0  ;;  %v4159_v63 = vadd.f32 -1.0, %v4479_v34  ;;  %v5996_v21 = vpop.f32.mrf.mxu0  ;;  %v4481_v52 = vpop.eup %4480  ;;  %v6003_v31 = vadd.f32 %v7210_v57, %v550_v8  ;;  %4484 = vpow2.f32 %v1795_v55  ;;  %v1972_v8 = vld [vmem:[%s7146_s3 + $0xa8] sm:$0xff]  ;;  %v7212_v55 = vld [vmem:[#allocation22_spill] sm:$0xff] }
 0x1a0   : > { %v5961_v38 = vpop.f32.mrf.mxu2  ;;  %v4483_v4 = vpop.eup %4482  ;;  %2076 = vmatpush.msra.mxu2 %v1972_v8  ;;  %v7214_v14 = vld [vmem:[#allocation15_spill] sm:$0xff]  ;;  %vm1295_vm0 = vcmp.gt.f32.partialorder %v5971_v26, 0.0 }
 0x1a1   : > { %1427 = vmatmul.f32.gmra.mxu1 %v1371_v1  ;;  %v4944_v1 = vld [vmem:[%s5116_s19 + $0x58] sm:$0xff]  ;;  %v1334_v34 = vmul.f32 1.442695, %v1311_v7  ;;  %v1989_v7 = vld [vmem:[%s7146_s3 + $0x130] sm:$0xff]  ;;  %vm1296_vm3 = vcmp.gt.f32.partialorder %v6003_v31, 0.0 }
 0x1a2   : > { %2140 = vmatpush.msra.mxu1 %v1989_v7 }
 0x1a3   : > { %4486 = vpow2.f32 %v1334_v34 }
 0x1a5   : > { %2026 = vmatmul.f32.gmra.mxu0 %v1912_v15  ;;  %4143 = vmatmul.msk.f32.gmra.mxu2 %vm440_vm1, %v4944_v1  ;;  %v5994_v15 = vadd.f32 %v7208_v30, %v677_v23  ;;  %v1373_v23 = vsel %vm1293_vm12, %v5911_v22, %v4159_v63  ;;  %v680_v30 = vadd.f32 %v5564_v19, %v5740_v17  ;;  %v1312_v22 = vmin.f32 %v6003_v31, 0.0  ;;  %v7211_v63 = vld [vmem:[#allocation26_spill] sm:$0xff] }
 0x1a6   : > { %v5967_v49 = vpop.f32.mrf.mxu1  ;;  %v4160_v19 = vadd.f32 -1.0, %v4483_v4 }
 0x1a7   : > { %7205 = vst [vmem:[#allocation17_spill] sm:$0xff] %v5967_v49  ;;  %v1732_v18 = vmin.f32 %v5994_v15, 0.0  ;;  %v4485_v49 = vpop.eup %4484  ;;  %v1336_v4 = vmul.f32 1.442695, %v1312_v22  ;;  %v1988_v22 = vld [vmem:[%s7146_s3 + $0x128] sm:$0xff]  ;;  %vm1684_vm2 = vcmp.gt.f32.partialorder %v5994_v15, 0.0 }
 0x1a8   : > { %v5989_v44 = vpop.f32.mrf.mxu2  ;;  %2141 = vmatpush.msra.mxu1 %v1988_v22 }
 0x1a9   : > { %1430 = vmatmul.f32.gmra.mxu1 %v1372_v59  ;;  %v1915_v59 = vsel %vm1675_vm11, %v5904_v9, %v4198_v58  ;;  %v4201_v9 = vadd.f32 -1.0, %v4481_v52  ;;  %v1572_v58 = vld [vmem:[#allocation4 + $0xc0] sm:$0xff]  ;;  %v6024_v52 = vadd.f32 %v7212_v55, %v680_v30  ;;  %v4946_v30 = vld [vmem:[%s5116_s19 + $0x78] sm:$0xff]  ;;  %v4487_v8 = vpop.eup %4486 }
 0x1aa   : > { %1589 = vmatpush.msrb.mxu3 %v1572_v58  ;;  %v6035_v58 = vpop.f32.mrf.mxu0 }
 0x1ab   : > { %v1735_v7 = vmin.f32 %v6024_v52, 0.0  ;;  %vm1687_vm4 = vcmp.gt.f32.partialorder %v6024_v52, 0.0 }
 0x1ad   : > { %2029 = vmatmul.f32.gmra.mxu0 %v1915_v59  ;;  %4144 = vmatmul.msk.f32.gmra.mxu2 %vm440_vm1, %v4945_v42  ;;  %v553_v59 = vadd.f32 %v7211_v63, %v5716_v20  ;;  %v1801_v42 = vmul.f32 1.442695, %v1732_v18  ;;  %v1918_v63 = vsel %vm1678_vm13, %v5934_v5, %v4201_v9  ;;  %v1374_v18 = vsel %vm1294_vm14, %v5941_v54, %v4160_v19  ;;  %v1571_v9 = vld [vmem:[#allocation4 + $0xb8] sm:$0xff] }
 0x1ae   : > { %v5999_v1 = vpop.f32.mrf.mxu1  ;;  %v683_v5 = vadd.f32 %v5578_v25, %v5740_v17  ;;  %v556_v19 = vadd.f32 %v5542_v61, %v5716_v20  ;;  %1590 = vmatpush.msrb.mxu3 %v1571_v9  ;;  %v4161_v25 = vadd.f32 -1.0, %v4487_v8  ;;  %v7217_v61 = vld [vmem:[#allocation16_spill] sm:$0xff]  ;;  %v4947_v9 = vld [vmem:[%s5116_s19 + $0x88] sm:$0xff] }
 0x1af   : > { %7209 = vst [vmem:[#allocation11_spill] sm:$0xff] %v5999_v1  ;;  %v6033_v34 = vadd.f32 %v7214_v14, %v553_v59  ;;  %4488 = vpow2.f32 %v1801_v42  ;;  %v4204_v14 = vadd.f32 -1.0, %v4485_v49  ;;  %v1971_v59 = vld [vmem:[%s7146_s3 + $0xa0] sm:$0xff]  ;;  %v7215_v49 = vld [vmem:[#allocation25_spill] sm:$0xff] }
 0x1b0   : > { %v6021_v57 = vpop.f32.mrf.mxu2  ;;  %4490 = vpow2.f32 %v1336_v4  ;;  %2077 = vmatpush.msra.mxu2 %v1971_v59  ;;  %v6056_v42 = vadd.f32 %v7215_v49, %v683_v5  ;;  %v6063_v60 = vadd.f32 %v7217_v61, %v556_v19  ;;  %v1375_v5 = vsel %vm1295_vm0, %v5971_v26, %v4161_v25  ;;  %v1570_v19 = vld [vmem:[#allocation4 + $0xb0] sm:$0xff] }
 0x1b1   : > { %1433 = vmatmul.f32.gmra.mxu1 %v1373_v23  ;;  %v6027_v23 = vpop.f32.mrf.mxu3  ;;  %v1313_v54 = vmin.f32 %v6033_v34, 0.0  ;;  %v1987_v26 = vld [vmem:[%s7146_s3 + $0x120] sm:$0xff]  ;;  %1591 = vmatpush.msrb.mxu3 %v1570_v19  ;;  %v4948_v19 = vld [vmem:[%s5116_s19 + $0x98] sm:$0xff]  ;;  %vm1297_vm5 = vcmp.gt.f32.partialorder %v6033_v34, 0.0 }
 0x1b2   : > { %v1738_v59 = vmin.f32 %v6056_v42, 0.0  ;;  %v1314_v25 = vmin.f32 %v6063_v60, 0.0  ;;  %2142 = vmatpush.msra.mxu1 %v1987_v26  ;;  %v1569_v26 = vld [vmem:[#allocation4 + $0xa8] sm:$0xff]  ;;  %vm1690_vm6 = vcmp.gt.f32.partialorder %v6056_v42, 0.0  ;;  %vm1298_vm7 = vcmp.gt.f32.partialorder %v6063_v60, 0.0 }
 0x1b3   : > { %v1338_v4 = vmul.f32 1.442695, %v1313_v54  ;;  %v1970_v54 = vld [vmem:[%s7146_s3 + $0x98] sm:$0xff]  ;;  %1592 = vmatpush.msrb.mxu3 %v1569_v26 }
 0x1b4   : > { %2078 = vmatpush.msra.mxu2 %v1970_v54  ;;  %v1813_v61 = vmul.f32 1.442695, %v1738_v59  ;;  %v689_v54 = vadd.f32 %v5602_v0, %v5740_v17 }
 0x1b5   : > { %2032 = vmatmul.f32.gmra.mxu0 %v1918_v63  ;;  %4145 = vmatmul.msk.f32.gmra.mxu2 %vm440_vm1, %v4946_v30  ;;  %v1807_v63 = vmul.f32 1.442695, %v1735_v7 }
 0x1b6   : > { %v6029_v1 = vpop.f32.mrf.mxu1 }
 0x1b7   : > { %7213 = vst [vmem:[#allocation23_spill] sm:$0xff] %v6029_v1  ;;  %v4489_v1 = vpop.eup %4488  ;;  %4492 = vpow2.f32 %v1807_v63 }
 0x1b8   : > { %v6053_v55 = vpop.f32.mrf.mxu2  ;;  %v4491_v7 = vpop.eup %4490  ;;  %v4207_v22 = vadd.f32 -1.0, %v4489_v1  ;;  %4494 = vpow2.f32 %v1338_v4  ;;  %v7218_v1 = vld [vmem:[#allocation8_spill] sm:$0xff]  ;;  %v7220_v4 = vld [vmem:[#allocation18_spill] sm:$0xff] }
 0x1b9   : > { %1436 = vmatmul.f32.gmra.mxu1 %v1374_v18  ;;  %v1921_v18 = vsel %vm1681_vm15, %v5964_v47, %v4204_v14  ;;  %v6066_v8 = vpop.f32.mrf.mxu3  ;;  %v686_v47 = vadd.f32 %v5590_v32, %v5740_v17  ;;  %v6074_v14 = vpop.f32.mrf.mxu0  ;;  %v4162_v32 = vadd.f32 -1.0, %v4491_v7  ;;  %v559_v63 = vadd.f32 %v7218_v1, %v5716_v20 }
 0x1ba   : > { %v1340_v7 = vmul.f32 1.442695, %v1314_v25  ;;  %4496 = vpow2.f32 %v1813_v61  ;;  %v1969_v25 = vld [vmem:[%s7146_s3 + $0x90] sm:$0xff] }
 0x1bb   : > { %v6095_v36 = vadd.f32 %v7220_v4, %v559_v63  ;;  %2079 = vmatpush.msra.mxu2 %v1969_v25  ;;  %v692_v25 = vadd.f32 %v5616_v48, %v5740_v17 }
 0x1bc   : > { %4498 = vpow2.f32 %v1340_v7 }
 0x1bd   : > { %2035 = vmatmul.f32.gmra.mxu0 %v1921_v18  ;;  %4146 = vmatmul.msk.f32.gmra.mxu2 %vm440_vm1, %v4947_v9  ;;  %v6088_v18 = vadd.f32 %v5538_v16, %v686_v47  ;;  %v1376_v16 = vsel %vm1296_vm3, %v6003_v31, %v4162_v32  ;;  %v1986_v31 = vld [vmem:[%s7146_s3 + $0x118] sm:$0xff]  ;;  %v1315_v32 = vmin.f32 %v6095_v36, 0.0  ;;  %vm1299_vm9 = vcmp.gt.f32.partialorder %v6095_v36, 0.0 }
 0x1be   : > { %v6059_v30 = vpop.f32.mrf.mxu1  ;;  %2143 = vmatpush.msra.mxu1 %v1986_v31  ;;  %v1985_v31 = vld [vmem:[%s7146_s3 + $0x110] sm:$0xff] }
 0x1bf   : > { %7216 = vst [vmem:[#allocation19_spill] sm:$0xff] %v6059_v30  ;;  %v4493_v30 = vpop.eup %4492  ;;  %v1741_v59 = vmin.f32 %v6088_v18, 0.0  ;;  %v1342_v7 = vmul.f32 1.442695, %v1315_v32  ;;  %vm1693_vm8 = vcmp.gt.f32.partialorder %v6088_v18, 0.0 }
 0x1c0   : > { %v6083_v49 = vpop.f32.mrf.mxu2  ;;  %v4495_v47 = vpop.eup %4494  ;;  %2144 = vmatpush.msra.mxu1 %v1985_v31  ;;  %v4950_v31 = vld [vmem:[%s5116_s19 + $0xb8] sm:$0xff] }
 0x1c1   : > { %1439 = vmatmul.f32.gmra.mxu1 %v1375_v5  ;;  %v1924_v5 = vsel %vm1684_vm2, %v5994_v15, %v4207_v22  ;;  %v6104_v15 = vpop.f32.mrf.mxu3  ;;  %v4210_v22 = vadd.f32 -1.0, %v4493_v30  ;;  %v6113_v1 = vpop.f32.mrf.mxu0  ;;  %v4163_v0 = vadd.f32 -1.0, %v4495_v47  ;;  %v7221_v30 = vld [vmem:[#allocation9_spill] sm:$0xff]  ;;  %v1819_v4 = vmul.f32 1.442695, %v1741_v59  ;;  %v4949_v47 = vld [vmem:[%s5116_s19 + $0xa8] sm:$0xff] }
 0x1c2   : > { %v562_v61 = vadd.f32 %v7221_v30, %v5716_v20 }
 0x1c3   : > { %4500 = vpow2.f32 %v1819_v4 }
 0x1c4   : > { %v6127_v26 = vadd.f32 %v7223_v46, %v562_v61  ;;  %v1968_v46 = vld [vmem:[%s7146_s3 + $0x88] sm:$0xff]  ;;  %4502 = vpow2.f32 %v1342_v7  ;;  %v6150_v61 = vadd.f32 %v5569_v3, %v692_v25 }
 0x1c5   : > { %2038 = vmatmul.f32.gmra.mxu0 %v1924_v5  ;;  %4147 = vmatmul.msk.f32.gmra.mxu2 %vm440_vm1, %v4948_v19  ;;  %v6120_v5 = vadd.f32 %v5552_v51, %v689_v54  ;;  %v1377_v51 = vsel %vm1297_vm5, %v6033_v34, %v4163_v0  ;;  %v7224_v0 = vld [vmem:[#allocation10_spill] sm:$0xff] }
 0x1c6   : > { %v6091_v9 = vpop.f32.mrf.mxu1  ;;  %v1316_v34 = vmin.f32 %v6127_v26, 0.0  ;;  %2080 = vmatpush.msra.mxu2 %v1968_v46  ;;  %v565_v30 = vadd.f32 %v7224_v0, %v5716_v20  ;;  %v7226_v46 = vld [vmem:[#allocation21_spill] sm:$0xff]  ;;  %v695_v0 = vadd.f32 %v5630_v56, %v5740_v17  ;;  %vm1300_vm11 = vcmp.gt.f32.partialorder %v6127_v26, 0.0 }
 0x1c7   : > { %7219 = vst [vmem:[#allocation13_spill] sm:$0xff] %v6091_v9  ;;  %v4497_v9 = vpop.eup %4496  ;;  %v1744_v59 = vmin.f32 %v6120_v5, 0.0  ;;  %vm1696_vm10 = vcmp.gt.f32.partialorder %v6120_v5, 0.0  ;;  %vm1699_vm12 = vcmp.gt.f32.partialorder %v6150_v61, 0.0 }
 0x1c8   : > { %v6115_v63 = vpop.f32.mrf.mxu2  ;;  %v4499_v54 = vpop.eup %4498 }
 0x1c9   : > { %1442 = vmatmul.f32.gmra.mxu1 %v1376_v16  ;;  %v1927_v16 = vsel %vm1687_vm4, %v6024_v52, %v4210_v22  ;;  %v4213_v52 = vadd.f32 -1.0, %v4497_v9  ;;  %v1568_v22 = vld [vmem:[#allocation4 + $0xa0] sm:$0xff]  ;;  %v6145_v48 = vpop.f32.mrf.mxu3  ;;  %v4164_v9 = vadd.f32 -1.0, %v4499_v54  ;;  %v6152_v4 = vpop.f32.mrf.mxu0  ;;  %v6159_v54 = vadd.f32 %v7226_v46, %v565_v30  ;;  %v1984_v30 = vld [vmem:[%s7146_s3 + $0x108] sm:$0xff] }
 0x1ca   : > { %1593 = vmatpush.msrb.mxu3 %v1568_v22  ;;  %v1344_v22 = vmul.f32 1.442695, %v1316_v34  ;;  %v1967_v34 = vld [vmem:[%s7146_s3 + $0x80] sm:$0xff]  ;;  %2145 = vmatpush.msra.mxu1 %v1984_v30 }
 0x1cb   : > { %v1378_v3 = vsel %vm1298_vm7, %v6063_v60, %v4164_v9  ;;  %v1317_v60 = vmin.f32 %v6159_v54, 0.0  ;;  %2081 = vmatpush.msra.mxu2 %v1967_v34  ;;  %vm1301_vm13 = vcmp.gt.f32.partialorder %v6159_v54, 0.0 }
 0x1cd   : > { %2041 = vmatmul.f32.gmra.mxu0 %v1927_v16  ;;  %4148 = vmatmul.msk.f32.gmra.mxu2 %vm440_vm1, %v4949_v47  ;;  %v1825_v16 = vmul.f32 1.442695, %v1744_v59  ;;  %v1930_v47 = vsel %vm1690_vm6, %v6056_v42, %v4213_v52  ;;  %v1747_v59 = vmin.f32 %v6150_v61, 0.0  ;;  %v1567_v52 = vld [vmem:[#allocation4 + $0x98] sm:$0xff]  ;;  %v1346_v34 = vmul.f32 1.442695, %v1317_v60 }
 0x1ce   : > { %v6123_v19 = vpop.f32.mrf.mxu1  ;;  %1594 = vmatpush.msrb.mxu3 %v1567_v52 }
 0x1cf   : > { %7222 = vst [vmem:[#allocation26_spill] sm:$0xff] %v6123_v19  ;;  %4504 = vpow2.f32 %v1825_v16  ;;  %v7227_v16 = vld [vmem:[#allocation12_spill] sm:$0xff]  ;;  %v1831_v46 = vmul.f32 1.442695, %v1747_v59  ;;  %v4951_v59 = vld [vmem:[%s5116_s19 + $0xc8] sm:$0xff] }
 0x1d0   : > { %v6143_v32 = vpop.f32.mrf.mxu2  ;;  %4506 = vpow2.f32 %v1344_v22 }
 0x1d1   : > { %1445 = vmatmul.f32.gmra.mxu1 %v1377_v51  ;;  %v4501_v51 = vpop.eup %4500  ;;  %v6191_v30 = vpop.f32.mrf.mxu0  ;;  %4508 = vpow2.f32 %v1831_v46  ;;  %v7232_v46 = vld [vmem:[#allocation14_spill] sm:$0xff] }
 0x1d2   : > { %v4503_v25 = vpop.eup %4502  ;;  %v4216_v42 = vadd.f32 -1.0, %v4501_v51  ;;  %v6180_v51 = vadd.f32 %v5586_v53, %v695_v0  ;;  %7230 = vst [vmem:[#allocation25_spill] sm:$0xff] %v6191_v30  ;;  %v6195_v53 = vperm.slane %v5703_v24, 2  ;;  %4510 = vpow2.f32 %v1346_v34  ;;  %v7234_v30 = vld [vmem:[#allocation27_spill] sm:$0xff] }
 0x1d3   : > { %v4165_v56 = vadd.f32 -1.0, %v4503_v25  ;;  %v7229_v25 = vld [vmem:[#allocation24_spill] sm:$0xff] }
 0x1d4   : > { %vm1702_vm14 = vcmp.gt.f32.partialorder %v6180_v51, 0.0 }
 0x1d5   : > { %2044 = vmatmul.f32.gmra.mxu0 %v1930_v47  ;;  %4149 = vmatmul.msk.f32.gmra.mxu2 %vm440_vm1, %v4950_v31  ;;  %v568_v47 = vadd.f32 %v7227_v16, %v5716_v20  ;;  %v6183_v31 = vpop.f32.mrf.mxu3  ;;  %v4505_v52 = vpop.eup %4504  ;;  %v1379_v0 = vsel %vm1299_vm9, %v6095_v36, %v4165_v56  ;;  %v7231_v36 = vld [vmem:[#allocation28_spill] sm:$0xff] }
 0x1d6   : > { %v6155_v7 = vpop.f32.mrf.mxu1  ;;  %v4507_v16 = vpop.eup %4506  ;;  %v4219_v60 = vadd.f32 -1.0, %v4505_v52  ;;  %v786_v56 = vadd.f32 %v7231_v36, %v6195_v53  ;;  %v571_v52 = vadd.f32 %v7232_v46, %v5716_v20 }
 0x1d7   : > { %7225 = vst [vmem:[#allocation22_spill] sm:$0xff] %v6155_v7  ;;  %v6189_v7 = vadd.f32 %v7229_v25, %v568_v47  ;;  %v1566_v47 = vld [vmem:[#allocation4 + $0x90] sm:$0xff] }
 0x1d8   : > { %v6175_v9 = vpop.f32.mrf.mxu2  ;;  %1595 = vmatpush.msrb.mxu3 %v1566_v47  ;;  %v1936_v47 = vsel %vm1696_vm10, %v6120_v5, %v4219_v60  ;;  %v6227_v20 = vadd.f32 %v7234_v30, %v571_v52 }
 0x1d9   : > { %1448 = vmatmul.f32.gmra.mxu1 %v1378_v3  ;;  %v1933_v3 = vsel %vm1693_vm8, %v6088_v18, %v4216_v42  ;;  %v1750_v18 = vmin.f32 %v6180_v51, 0.0  ;;  %v698_v42 = vadd.f32 %v5650_v45, %v5740_v17  ;;  %v1318_v25 = vmin.f32 %v6189_v7, 0.0  ;;  %v6238_v60 = vpop.f32.mrf.mxu0 }
 0x1da   : > { %v4166_v45 = vadd.f32 -1.0, %v4507_v16  ;;  %v6224_v16 = vperm.slane %v5703_v24, 3  ;;  %v701_v24 = vadd.f32 %v5674_v11, %v5740_v17  ;;  %7235 = vst [vmem:[#allocation8_spill] sm:$0xff] %v6238_v60  ;;  %v1319_v52 = vmin.f32 %v6227_v20, 0.0 }
 0x1db   : > { %v1837_v34 = vmul.f32 1.442695, %v1750_v18  ;;  %v1348_v36 = vmul.f32 1.442695, %v1318_v25  ;;  %v4952_v18 = vld [vmem:[%s5116_s19 + $0xd8] sm:$0xff]  ;;  %vm1302_vm15 = vcmp.gt.f32.partialorder %v6189_v7, 0.0 }
 0x1dc   : > { %v6249_v17 = vadd.f32 %v5618_v37, %v701_v24  ;;  %v4953_v37 = vld [vmem:[%s5116_s19 + $0xe8] sm:$0xff]  ;;  %vm1303_vm2 = vcmp.gt.f32.partialorder %v6227_v20, 0.0 }
 0x1dd   : > { %2047 = vmatmul.f32.gmra.mxu0 %v1933_v3  ;;  %4150 = vmatmul.msk.f32.gmra.mxu2 %vm440_vm1, %v4951_v59  ;;  %v1983_v3 = vld [vmem:[%s7146_s3 + $0x100] sm:$0xff]  ;;  %4512 = vpow2.f32 %v1837_v34 }
 0x1de   : > { %v6185_v22 = vpop.f32.mrf.mxu1  ;;  %2146 = vmatpush.msra.mxu1 %v1983_v3  ;;  %v4509_v3 = vpop.eup %4508  ;;  %4514 = vpow2.f32 %v1348_v36  ;;  %vm1708_vm3 = vcmp.gt.f32.partialorder %v6249_v17, 0.0 }
 0x1df   : > { %7228 = vst [vmem:[#allocation15_spill] sm:$0xff] %v6185_v22  ;;  %v6218_v22 = vadd.f32 %v5780_v35, %v786_v56  ;;  %v1380_v35 = vsel %vm1300_vm11, %v6127_v26, %v4166_v45  ;;  %v4222_v25 = vadd.f32 -1.0, %v4509_v3  ;;  %v7236_v56 = vld [vmem:[#allocation30_spill] sm:$0xff]  ;;  %v7237_v45 = vld [vmem:[#allocation29_spill] sm:$0xff] }
 0x1e0   : > { %v6207_v59 = vpop.f32.mrf.mxu2  ;;  %v916_v46 = vadd.f32 %v7236_v56, %v6224_v16 }
 0x1e1   : > { %1451 = vmatmul.f32.gmra.mxu1 %v1379_v0  ;;  %v6214_v0 = vadd.f32 %v5604_v28, %v698_v42  ;;  %v6230_v28 = vpop.f32.mrf.mxu3  ;;  %v4511_v42 = vpop.eup %4510  ;;  %v1712_v30 = vmin.f32 %v6218_v22, 0.0  ;;  %vm1664_vm0 = vcmp.gt.f32.partialorder %v6218_v22, 0.0 }
 0x1e2   : > { %v4167_v11 = vadd.f32 -1.0, %v4511_v42  ;;  %v6259_v60 = vadd.f32 %v5842_v43, %v916_v46  ;;  %v7240_v46 = vld [vmem:[#allocation32_spill] sm:$0xff] }
 0x1e3   : > { %v1753_v5 = vmin.f32 %v6214_v0, 0.0  ;;  %v1761_v3 = vmul.f32 1.442695, %v1712_v30  ;;  %v4513_v56 = vpop.eup %4512  ;;  %v1756_v30 = vmin.f32 %v6249_v17, 0.0 }
 0x1e4   : > { %v1381_v42 = vsel %vm1301_vm13, %v6159_v54, %v4167_v11  ;;  %v1713_v54 = vmin.f32 %v6259_v60, 0.0  ;;  %vm1665_vm4 = vcmp.gt.f32.partialorder %v6259_v60, 0.0 }
 0x1e5   : > { %2050 = vmatmul.f32.gmra.mxu0 %v1936_v47  ;;  %4151 = vmatmul.msk.f32.gmra.mxu2 %vm440_vm1, %v4952_v18  ;;  %v789_v47 = vadd.f32 %v7237_v45, %v6195_v53  ;;  %v1843_v34 = vmul.f32 1.442695, %v1753_v5  ;;  %v4515_v5 = vpop.eup %4514  ;;  %v6274_v45 = vpop.f32.mrf.mxu0 }
 0x1e6   : > { %v6220_v19 = vpop.f32.mrf.mxu1  ;;  %7241 = vst [vmem:[#allocation9_spill] sm:$0xff] %v6274_v45  ;;  %v4168_v11 = vadd.f32 -1.0, %v4515_v5  ;;  %v4954_v5 = vld [vmem:[%s5116_s19 + $0xf8] sm:$0xff] }
 0x1e7   : > { %7233 = vst [vmem:[#allocation16_spill] sm:$0xff] %v6220_v19  ;;  %v6253_v36 = vadd.f32 %v5812_v10, %v789_v47  ;;  %v1350_v19 = vmul.f32 1.442695, %v1319_v52  ;;  %v7239_v10 = vld [vmem:[#allocation31_spill] sm:$0xff]  ;;  %4516 = vpow2.f32 %v1843_v34  ;;  %v919_v52 = vadd.f32 %v7240_v46, %v6224_v16 }
 0x1e8   : > { %v6244_v26 = vpop.f32.mrf.mxu2  ;;  %v792_v24 = vadd.f32 %v7239_v10, %v6195_v53  ;;  %4518 = vpow2.f32 %v1761_v3  ;;  %v1849_v3 = vmul.f32 1.442695, %v1756_v30  ;;  %v1763_v46 = vmul.f32 1.442695, %v1713_v54 }
 0x1e9   : > { %1454 = vmatmul.f32.gmra.mxu1 %v1380_v35  ;;  %v1939_v35 = vsel %vm1699_vm12, %v6150_v61, %v4222_v25  ;;  %v1715_v43 = vmin.f32 %v6253_v36, 0.0  ;;  %v6269_v61 = vpop.f32.mrf.mxu3  ;;  %v4225_v25 = vadd.f32 -1.0, %v4513_v56  ;;  %4520 = vpow2.f32 %v1350_v19  ;;  %v1564_v19 = vld [vmem:[#allocation4 + $0x80] sm:$0xff] }
 0x1ea   : > { %v6279_v34 = vadd.f32 %v5635_v40, %v792_v24  ;;  %v1382_v24 = vsel %vm1302_vm15, %v6189_v7, %v4168_v11  ;;  %4522 = vpow2.f32 %v1849_v3  ;;  %vm1667_vm5 = vcmp.gt.f32.partialorder %v6253_v36, 0.0 }
 0x1eb   : > { %v1767_v56 = vmul.f32 1.442695, %v1715_v43 }
 0x1ec   : > { %v1718_v43 = vmin.f32 %v6279_v34, 0.0  ;;  %vm1670_vm6 = vcmp.gt.f32.partialorder %v6279_v34, 0.0 }
 0x1ed   : > { %2053 = vmatmul.f32.gmra.mxu0 %v1939_v35  ;;  %4152 = vmatmul.msk.f32.gmra.mxu2 %vm440_vm1, %v4953_v37  ;;  %v1565_v35 = vld [vmem:[#allocation4 + $0x88] sm:$0xff]  ;;  %v4517_v10 = vpop.eup %4516  ;;  %4524 = vpow2.f32 %v1767_v56  ;;  %v2308_v56 = vld [vmem:[#allocation4 + $0x178] sm:$0xff] }
 0x1ee   : > { %v6255_v18 = vpop.f32.mrf.mxu1  ;;  %1596 = vmatpush.msrb.mxu3 %v1565_v35  ;;  %v4519_v40 = vpop.eup %4518  ;;  %4526 = vpow2.f32 %v1763_v46  ;;  %v1773_v3 = vmul.f32 1.442695, %v1718_v43 }
 0x1ef   : > { %7238 = vst [vmem:[#allocation18_spill] sm:$0xff] %v6255_v18  ;;  %v6286_v18 = vadd.f32 %v5871_v50, %v919_v52  ;;  %v4521_v30 = vpop.eup %4520  ;;  %v4228_v50 = vadd.f32 -1.0, %v4517_v10  ;;  %v7244_v52 = vld [vmem:[#allocation34_spill] sm:$0xff]  ;;  %v4187_v35 = vadd.f32 -1.0, %v4519_v40 }
 0x1f0   : > { %v6276_v47 = vpop.f32.mrf.mxu2  ;;  %1597 = vmatpush.msrb.mxu3 %v1564_v19  ;;  %v922_v54 = vadd.f32 %v7244_v52, %v6224_v16  ;;  %v4169_v11 = vadd.f32 -1.0, %v4521_v30  ;;  %v4523_v40 = vpop.eup %4522  ;;  %4528 = vpow2.f32 %v1773_v3 }
 0x1f1   : > { %1457 = vmatmul.f32.gmra.mxu1 %v1381_v42  ;;  %v1942_v42 = vsel %vm1702_vm14, %v6180_v51, %v4225_v25  ;;  %v7243_v51 = vld [vmem:[#allocation33_spill] sm:$0xff]  ;;  %v1716_v19 = vmin.f32 %v6286_v18, 0.0  ;;  %v6300_v7 = vpop.f32.mrf.mxu3  ;;  %vm1668_vm7 = vcmp.gt.f32.partialorder %v6286_v18, 0.0 }
 0x1f2   : > { %v795_v25 = vadd.f32 %v7243_v51, %v6195_v53  ;;  %7245 = vst [vmem:[#allocation10_spill] sm:$0xff] %v6300_v7  ;;  %v6305_v51 = vpop.f32.mrf.mxu0  ;;  %2311 = vmatpush.msra.mxu3 %v2308_v56  ;;  %v6313_v30 = vadd.f32 %v5901_v2, %v922_v54  ;;  %v1383_v43 = vsel %vm1303_vm2, %v6227_v20, %v4169_v11  ;;  %v7250_v2 = vld [vmem:[#allocation37_spill] sm:$0xff]  ;;  %v6329_v20 = vld [vmem:[%s7148_s5] ss:$0 sm:$0xff] }
 0x1f3   : > { %7247 = vst [vmem:[#allocation21_spill] sm:$0xff] %v6305_v51  ;;  %v4525_v52 = vpop.eup %4524  ;;  %v925_v54 = vadd.f32 %v7250_v2, %v6224_v16 }
 0x1f4   : > { %v4190_v11 = vadd.f32 -1.0, %v4525_v52  ;;  %vm1671_vm10 = vcmp.gt.f32.partialorder %v6313_v30, 0.0 }
 0x1f5   : > { %2056 = vmatmul.f32.gmra.mxu0 %v1942_v42  ;;  %4153 = vmatmul.msk.f32.gmra.mxu2 %vm440_vm1, %v4954_v5  ;;  %v7246_v5 = vld [vmem:[#allocation43_spill] sm:$0xff]  ;;  %vm1705_vm1 = vcmp.gt.f32.partialorder %v6214_v0, 0.0 }
 0x1f6   : > { %v6282_v37 = vpop.f32.mrf.mxu1  ;;  %v1945_v46 = vsel %vm1705_vm1, %v6214_v0, %v4228_v50  ;;  %v7249_v0 = vld [vmem:[#allocation35_spill] sm:$0xff] }
 0x1f7   : > { %7242 = vst [vmem:[#allocation20_spill] sm:$0xff] %v6282_v37  ;;  %v6303_v37 = vadd.f32 %v7246_v5, %v795_v25  ;;  %v1904_v25 = vsel %vm1664_vm0, %v6218_v22, %v4187_v35  ;;  %v4527_v5 = vpop.eup %4526  ;;  %v798_v50 = vadd.f32 %v7249_v0, %v6195_v53  ;;  %v1719_v22 = vmin.f32 %v6313_v30, 0.0 }
 0x1f8   : > { %v6298_v42 = vpop.f32.mrf.mxu2  ;;  %v4188_v56 = vadd.f32 -1.0, %v4527_v5  ;;  %v4529_v2 = vpop.eup %4528  ;;  %v6341_v5 = vadd.f32 %v5931_v33, %v925_v54  ;;  %v7255_v54 = vld [vmem:[#allocation39_spill] sm:$0xff] }
 0x1f9   : > { %1460 = vmatmul.f32.gmra.mxu1 %v1382_v24  ;;  %v1769_v24 = vmul.f32 1.442695, %v1716_v19  ;;  %v4231_v19 = vadd.f32 -1.0, %v4523_v40  ;;  %v2307_v40 = vld [vmem:[#allocation4 + $0x170] sm:$0xff]  ;;  %v1775_v52 = vmul.f32 1.442695, %v1719_v22 }
 0x1fa   : > { %2312 = vmatpush.msra.mxu3 %v2307_v40  ;;  %v1905_v51 = vsel %vm1665_vm4, %v6259_v60, %v4188_v56  ;;  %v4193_v33 = vadd.f32 -1.0, %v4529_v2  ;;  %v7256_v56 = vld [vmem:[#allocation51_spill] sm:$0xff]  ;;  %vm1673_vm8 = vcmp.gt.f32.partialorder %v6303_v37, 0.0  ;;  %vm1674_vm13 = vcmp.gt.f32.partialorder %v6341_v5, 0.0 }
 0x1fb   : > { %4530 = vpow2.f32 %v1769_v24  ;;  %v6336_v24 = vpop.f32.mrf.mxu3  ;;  %v1948_v0 = vsel %vm1708_vm3, %v6249_v17, %v4231_v19  ;;  %v7254_v19 = vld [vmem:[#allocation36_spill] sm:$0xff] }
 0x1fc   : > { %7252 = vst [vmem:[#allocation24_spill] sm:$0xff] %v6336_v24  ;;  %v801_v40 = vadd.f32 %v7254_v19, %v6195_v53  ;;  %v1910_v2 = vsel %vm1670_vm6, %v6279_v34, %v4193_v33  ;;  %v7258_v34 = vld [vmem:[#allocation38_spill] sm:$0xff] }
 0x1fd   : > { %2059 = vmatmul.f32.gmra.mxu0 %v1945_v46  ;;  %2082 = vmatmul.f32.vlgmr.msra.gmra.mxu2 %v1904_v25  ;;  %v7251_v46 = vld [vmem:[#allocation47_spill] sm:$0xff]  ;;  %v804_v33 = vadd.f32 %v7258_v34, %v6195_v53 }
 0x1fe   : > { %v6309_v10 = vpop.f32.mrf.mxu1  ;;  %v6332_v25 = vadd.f32 %v7251_v46, %v798_v50  ;;  %v6343_v50 = vpop.f32.mrf.mxu0  ;;  %v1907_v46 = vsel %vm1667_vm5, %v6253_v36, %v4190_v11 }
 0x1ff   : > { %7248 = vst [vmem:[#allocation12_spill] sm:$0xff] %v6309_v10  ;;  %v1721_v10 = vmin.f32 %v6303_v37, 0.0 }
 0x200   : > { %v6324_v35 = vpop.f32.mrf.mxu2  ;;  %7253 = vst [vmem:[#allocation28_spill] sm:$0xff] %v6343_v50  ;;  %v1724_v17 = vmin.f32 %v6332_v25, 0.0  ;;  %v928_v50 = vadd.f32 %v7255_v54, %v6224_v16  ;;  %vm1676_vm11 = vcmp.gt.f32.partialorder %v6332_v25, 0.0 }
 0x201   : > { %1463 = vmatmul.f32.gmra.mxu1 %v1383_v43  ;;  %v1779_v3 = vmul.f32 1.442695, %v1721_v10  ;;  %v4531_v45 = vpop.eup %4530 }
 0x202   : > { %v4191_v60 = vadd.f32 -1.0, %v4531_v45  ;;  %v6362_v54 = vadd.f32 %v5961_v38, %v928_v50 }
 0x203   : > { %4532 = vpow2.f32 %v1779_v3  ;;  %v6368_v45 = vpop.f32.mrf.mxu3 }
 0x204   : > { %4534 = vpow2.f32 %v1775_v52  ;;  %7257 = vst [vmem:[#allocation14_spill] sm:$0xff] %v6368_v45  ;;  %vm1677_vm1 = vcmp.gt.f32.partialorder %v6362_v54, 0.0 }
 0x205   : > { %2062 = vmatmul.f32.gmra.mxu0 %v1948_v0  ;;  %2085 = vmatmul.f32.gmra.mxu2 %v1907_v46  ;;  %v6357_v0 = vadd.f32 %v7256_v56, %v801_v40  ;;  %v1785_v46 = vmul.f32 1.442695, %v1724_v17  ;;  %v1908_v17 = vsel %vm1668_vm7, %v6286_v18, %v4191_v60  ;;  %v1725_v18 = vmin.f32 %v6362_v54, 0.0 }
 0x206   : > { %v1419_v43 = vpop.f32.mrf.mxu1  ;;  %v6375_v38 = vpop.f32.mrf.mxu0 }
 0x207   : > { %v1420_v10 = vadd.f32 %v6329_v20, %v1419_v43  ;;  %v1722_v43 = vmin.f32 %v6341_v5, 0.0  ;;  %7259 = vst [vmem:[#allocation27_spill] sm:$0xff] %v6375_v38  ;;  %vm1679_vm14 = vcmp.gt.f32.partialorder %v6357_v0, 0.0 }
 0x208   : > { %v6354_v11 = vpop.f32.mrf.mxu2 }
 0x209   : > { %v1483_v22 = vmin.f32 %v1420_v10, 0.0  ;;  %2147 = vmatmul.f32.vlgmr.msra.gmra.mxu1 %v1905_v51  ;;  %v2306_v51 = vld [vmem:[#allocation4 + $0x168] sm:$0xff]  ;;  %v4533_v19 = vpop.eup %4532  ;;  %v1781_v52 = vmul.f32 1.442695, %v1722_v43  ;;  %vm1467_vm9 = vcmp.gt.f32.partialorder %v1420_v10, 0.0 }
 0x20a   : > { %2313 = vmatpush.msra.mxu3 %v2306_v51  ;;  %v4535_v40 = vpop.eup %4534  ;;  %v4196_v50 = vadd.f32 -1.0, %v4533_v19  ;;  %v7260_v51 = vld [vmem:[#allocation41_spill] sm:$0xff]  ;;  %v2305_v19 = vld [vmem:[#allocation4 + $0x160] sm:$0xff] }
 0x20b   : > { %v1499_v36 = vmul.f32 1.442695, %v1483_v22  ;;  %v4194_v34 = vadd.f32 -1.0, %v4535_v40 }
 0x20c   : > { %2314 = vmatpush.msra.mxu3 %v2305_v19 }
 0x20d   : > { %4536 = vpow2.f32 %v1499_v36  ;;  %2088 = vmatmul.f32.gmra.mxu2 %v1910_v2  ;;  %v1727_v36 = vmin.f32 %v6357_v0, 0.0 }
 0x20e   : > { %v1422_v3 = vpop.f32.mrf.mxu1  ;;  %4538 = vpow2.f32 %v1785_v46 }
 0x20f   : > { %v6365_v22 = vadd.f32 %v6329_v20, %v1422_v3  ;;  %v931_v3 = vadd.f32 %v7260_v51, %v6224_v16  ;;  %4540 = vpow2.f32 %v1781_v52  ;;  %v1791_v46 = vmul.f32 1.442695, %v1727_v36 }
 0x210   : > { %v6380_v2 = vpop.f32.mrf.mxu2  ;;  %v1913_v52 = vsel %vm1673_vm8, %v6303_v37, %v4196_v50  ;;  %v7261_v37 = vld [vmem:[#allocation40_spill] sm:$0xff] }
 0x211   : > { %v1484_v43 = vmin.f32 %v6365_v22, 0.0  ;;  %2150 = vmatmul.f32.gmra.mxu1 %v1908_v17  ;;  %v6384_v17 = vadd.f32 %v5791_v6, %v804_v33  ;;  %v6388_v7 = vadd.f32 %v5989_v44, %v931_v3  ;;  %v1911_v6 = vsel %vm1671_vm10, %v6313_v30, %v4194_v34  ;;  %v6399_v44 = vpop.f32.mrf.mxu3 }
 0x212   : > { %vm1468_vm12 = vcmp.gt.f32.partialorder %v6365_v22, 0.0 }
 0x213   : > { %v4537_v56 = vpop.eup %4536  ;;  %v1501_v60 = vmul.f32 1.442695, %v1484_v43  ;;  %v1787_v43 = vmul.f32 1.442695, %v1725_v18  ;;  %v1728_v30 = vmin.f32 %v6388_v7, 0.0  ;;  %vm1682_vm0 = vcmp.gt.f32.partialorder %v6384_v17, 0.0 }
 0x214   : > { %v4170_v45 = vadd.f32 -1.0, %v4537_v56  ;;  %v4539_v51 = vpop.eup %4538  ;;  %vm1680_vm3 = vcmp.gt.f32.partialorder %v6388_v7, 0.0 }
 0x215   : > { %4542 = vpow2.f32 %v1501_v60  ;;  %2091 = vmatmul.f32.gmra.mxu2 %v1913_v52  ;;  %v4541_v40 = vpop.eup %4540  ;;  %v4199_v33 = vadd.f32 -1.0, %v4539_v51  ;;  %v6406_v60 = vpop.f32.mrf.mxu0  ;;  %v2304_v51 = vld [vmem:[#allocation4 + $0x158] sm:$0xff] }
 0x216   : > { %v1425_v38 = vpop.f32.mrf.mxu1  ;;  %v1547_v24 = vsel %vm1467_vm9, %v1420_v10, %v4170_v45  ;;  %v1730_v10 = vmin.f32 %v6384_v17, 0.0  ;;  %v807_v45 = vadd.f32 %v7261_v37, %v6195_v53  ;;  %4544 = vpow2.f32 %v1791_v46  ;;  %2315 = vmatpush.msra.mxu3 %v2304_v51 }
 0x217   : > { %v6391_v56 = vadd.f32 %v6329_v20, %v1425_v38  ;;  %1598 = vmatmul.f32.vlgmr.msrb.gmra.mxu3 %v1547_v24  ;;  %v7262_v24 = vld [vmem:[#allocation44_spill] sm:$0xff]  ;;  %4546 = vpow2.f32 %v1787_v43  ;;  %v4197_v19 = vadd.f32 -1.0, %v4541_v40  ;;  %v1916_v37 = vsel %vm1676_vm11, %v6332_v25, %v4199_v33  ;;  %v7263_v25 = vld [vmem:[#allocation42_spill] sm:$0xff] }
 0x218   : > { %v934_v50 = vadd.f32 %v7262_v24, %v6224_v16  ;;  %v6404_v18 = vpop.f32.mrf.mxu2  ;;  %v6410_v46 = vadd.f32 %v5829_v13, %v807_v45  ;;  %v1797_v52 = vmul.f32 1.442695, %v1730_v10  ;;  %v1793_v24 = vmul.f32 1.442695, %v1728_v30  ;;  %v7264_v30 = vld [vmem:[#allocation49_spill] sm:$0xff] }
 0x219   : > { %v1485_v36 = vmin.f32 %v6391_v56, 0.0  ;;  %2153 = vmatmul.f32.gmra.mxu1 %v1911_v6  ;;  %v1914_v13 = vsel %vm1674_vm13, %v6341_v5, %v4197_v19  ;;  %v810_v45 = vadd.f32 %v7263_v25, %v6195_v53  ;;  %v6432_v19 = vpop.f32.mrf.mxu3  ;;  %vm1469_vm15 = vcmp.gt.f32.partialorder %v6391_v56, 0.0 }
 0x21a   : > { %vm1685_vm4 = vcmp.gt.f32.partialorder %v6410_v46, 0.0 }
 0x21b   : > { %v4543_v38 = vpop.eup %4542  ;;  %v1503_v3 = vmul.f32 1.442695, %v1485_v36 }
 0x21c   : > { %v4171_v34 = vadd.f32 -1.0, %v4543_v38  ;;  %v4545_v36 = vpop.eup %4544  ;;  %v6416_v38 = vadd.f32 %v6021_v57, %v934_v50 }
 0x21d   : > { %4548 = vpow2.f32 %v1503_v3  ;;  %2094 = vmatmul.f32.gmra.mxu2 %v1916_v37  ;;  %v4547_v10 = vpop.eup %4546  ;;  %v4202_v57 = vadd.f32 -1.0, %v4545_v36  ;;  %v937_v3 = vadd.f32 %v7264_v30, %v6224_v16  ;;  %v6436_v37 = vadd.f32 %v5991_v12, %v810_v45  ;;  %v2303_v36 = vld [vmem:[#allocation4 + $0x150] sm:$0xff] }
 0x21e   : > { %v1428_v43 = vpop.f32.mrf.mxu1  ;;  %v1548_v6 = vsel %vm1468_vm12, %v6365_v22, %v4171_v34  ;;  %v1733_v22 = vmin.f32 %v6410_v46, 0.0  ;;  %4550 = vpow2.f32 %v1797_v52  ;;  %v1731_v34 = vmin.f32 %v6416_v38, 0.0  ;;  %2316 = vmatpush.msra.mxu3 %v2303_v36 }
 0x21f   : > { %v6419_v40 = vadd.f32 %v6329_v20, %v1428_v43  ;;  %1601 = vmatmul.f32.gmra.mxu3 %v1548_v6  ;;  %4552 = vpow2.f32 %v1793_v24  ;;  %v4200_v6 = vadd.f32 -1.0, %v4547_v10  ;;  %v6439_v24 = vpop.f32.mrf.mxu0  ;;  %v6444_v10 = vadd.f32 %v6053_v55, %v937_v3 }
 0x220   : > { %v6430_v5 = vpop.f32.mrf.mxu2  ;;  %v1803_v52 = vmul.f32 1.442695, %v1733_v22  ;;  %v1799_v30 = vmul.f32 1.442695, %v1731_v34  ;;  %vm1683_vm6 = vcmp.gt.f32.partialorder %v6416_v38, 0.0  ;;  %vm1688_vm7 = vcmp.gt.f32.partialorder %v6436_v37, 0.0 }
 0x221   : > { %v1486_v33 = vmin.f32 %v6419_v40, 0.0  ;;  %2156 = vmatmul.f32.gmra.mxu1 %v1914_v13  ;;  %v1917_v22 = vsel %vm1677_vm1, %v6362_v54, %v4200_v6  ;;  %v1734_v36 = vmin.f32 %v6444_v10, 0.0  ;;  %vm1470_vm2 = vcmp.gt.f32.partialorder %v6419_v40, 0.0 }
 0x222   : > { %vm1686_vm9 = vcmp.gt.f32.partialorder %v6444_v10, 0.0 }
 0x223   : > { %v4549_v50 = vpop.eup %4548  ;;  %v1505_v51 = vmul.f32 1.442695, %v1486_v33  ;;  %v1919_v33 = vsel %vm1679_vm14, %v6357_v0, %v4202_v57  ;;  %v7265_v0 = vld [vmem:[#allocation45_spill] sm:$0xff] }
 0x224   : > { %v4172_v43 = vadd.f32 -1.0, %v4549_v50  ;;  %v4551_v50 = vpop.eup %4550  ;;  %v813_v57 = vadd.f32 %v7265_v0, %v6195_v53 }
 0x225   : > { %4554 = vpow2.f32 %v1505_v51  ;;  %2097 = vmatmul.f32.gmra.mxu2 %v1919_v33  ;;  %v4553_v45 = vpop.eup %4552  ;;  %v4205_v55 = vadd.f32 -1.0, %v4551_v50  ;;  %v7266_v51 = vld [vmem:[#allocation53_spill] sm:$0xff] }
 0x226   : > { %v1431_v13 = vpop.f32.mrf.mxu1  ;;  %v1549_v25 = vsel %vm1469_vm15, %v6391_v56, %v4172_v43  ;;  %v1736_v56 = vmin.f32 %v6436_v37, 0.0  ;;  %4556 = vpow2.f32 %v1803_v52  ;;  %v940_v43 = vadd.f32 %v7266_v51, %v6224_v16  ;;  %v2302_v50 = vld [vmem:[#allocation4 + $0x148] sm:$0xff] }
 0x227   : > { %v6447_v12 = vadd.f32 %v6329_v20, %v1431_v13  ;;  %1604 = vmatmul.f32.gmra.mxu3 %v1549_v25  ;;  %4558 = vpow2.f32 %v1799_v30  ;;  %v4203_v25 = vadd.f32 -1.0, %v4553_v45  ;;  %v6462_v33 = vadd.f32 %v6027_v23, %v813_v57 }
 0x228   : > { %v6458_v54 = vpop.f32.mrf.mxu2  ;;  %v1809_v52 = vmul.f32 1.442695, %v1736_v56  ;;  %2317 = vmatpush.msra.mxu3 %v2302_v50  ;;  %v1805_v51 = vmul.f32 1.442695, %v1734_v36  ;;  %v6470_v45 = vadd.f32 %v6083_v49, %v940_v43  ;;  %v6476_v56 = vpop.f32.mrf.mxu0 }
 0x229   : > { %v1487_v34 = vmin.f32 %v6447_v12, 0.0  ;;  %2159 = vmatmul.f32.gmra.mxu1 %v1917_v22  ;;  %v6465_v22 = vpop.f32.mrf.mxu3  ;;  %v1920_v57 = vsel %vm1680_vm3, %v6388_v7, %v4203_v25  ;;  %vm1471_vm5 = vcmp.gt.f32.partialorder %v6447_v12, 0.0  ;;  %vm1691_vm10 = vcmp.gt.f32.partialorder %v6462_v33, 0.0 }
 0x22a   : > { %v1737_v50 = vmin.f32 %v6470_v45, 0.0  ;;  %vm1689_vm12 = vcmp.gt.f32.partialorder %v6470_v45, 0.0 }
 0x22b   : > { %v4555_v3 = vpop.eup %4554  ;;  %v1507_v13 = vmul.f32 1.442695, %v1487_v34  ;;  %v1922_v34 = vsel %vm1682_vm0, %v6384_v17, %v4205_v55  ;;  %v1739_v17 = vmin.f32 %v6462_v33, 0.0  ;;  %v7267_v55 = vld [vmem:[#allocation48_spill] sm:$0xff] }
 0x22c   : > { %v4173_v6 = vadd.f32 -1.0, %v4555_v3  ;;  %v4557_v3 = vpop.eup %4556  ;;  %v816_v36 = vadd.f32 %v7267_v55, %v6195_v53 }
 0x22d   : > { %4560 = vpow2.f32 %v1507_v13  ;;  %2100 = vmatmul.f32.gmra.mxu2 %v1922_v34  ;;  %v4208_v43 = vadd.f32 -1.0, %v4557_v3  ;;  %v2301_v3 = vld [vmem:[#allocation4 + $0x140] sm:$0xff] }
 0x22e   : > { %v1434_v30 = vpop.f32.mrf.mxu1  ;;  %v1550_v0 = vsel %vm1470_vm2, %v6419_v40, %v4173_v6  ;;  %v4559_v40 = vpop.eup %4558  ;;  %4562 = vpow2.f32 %v1809_v52  ;;  %v943_v6 = vadd.f32 %v5810_v39, %v6224_v16  ;;  %v6490_v34 = vadd.f32 %v6066_v8, %v816_v36  ;;  %2318 = vmatpush.msra.mxu3 %v2301_v3  ;;  %v7268_v36 = vld [vmem:[#allocation52_spill] sm:$0xff] }
 0x22f   : > { %v6473_v23 = vadd.f32 %v6329_v20, %v1434_v30  ;;  %1607 = vmatmul.f32.gmra.mxu3 %v1550_v0  ;;  %4564 = vpow2.f32 %v1805_v51  ;;  %v4206_v0 = vadd.f32 -1.0, %v4559_v40  ;;  %v1815_v52 = vmul.f32 1.442695, %v1739_v17 }
 0x230   : > { %v6486_v7 = vpop.f32.mrf.mxu2  ;;  %v1925_v51 = vsel %vm1685_vm4, %v6410_v46, %v4208_v43  ;;  %v1742_v46 = vmin.f32 %v6490_v34, 0.0  ;;  %v819_v43 = vadd.f32 %v7268_v36, %v6195_v53  ;;  %vm1694_vm13 = vcmp.gt.f32.partialorder %v6490_v34, 0.0 }
 0x231   : > { %v1488_v49 = vmin.f32 %v6473_v23, 0.0  ;;  %2162 = vmatmul.f32.gmra.mxu1 %v1920_v57  ;;  %v6502_v8 = vpop.f32.mrf.mxu3  ;;  %v1923_v17 = vsel %vm1683_vm6, %v6416_v38, %v4206_v0  ;;  %vm1472_vm8 = vcmp.gt.f32.partialorder %v6473_v23, 0.0 }
 0x233   : > { %v4561_v13 = vpop.eup %4560  ;;  %v1509_v30 = vmul.f32 1.442695, %v1488_v49  ;;  %v1811_v49 = vmul.f32 1.442695, %v1737_v50 }
 0x234   : > { %v4174_v25 = vadd.f32 -1.0, %v4561_v13  ;;  %v4563_v55 = vpop.eup %4562  ;;  %v6496_v13 = vadd.f32 %v6115_v63, %v943_v6  ;;  %v6509_v6 = vpop.f32.mrf.mxu0 }
 0x235   : > { %4566 = vpow2.f32 %v1509_v30  ;;  %2103 = vmatmul.f32.gmra.mxu2 %v1925_v51  ;;  %v4211_v50 = vadd.f32 -1.0, %v4563_v55  ;;  %v6518_v51 = vadd.f32 %v6104_v15, %v819_v43  ;;  %v2300_v55 = vld [vmem:[#allocation4 + $0x138] sm:$0xff] }
 0x236   : > { %v1437_v57 = vpop.f32.mrf.mxu1  ;;  %v1551_v39 = vsel %vm1471_vm5, %v6447_v12, %v4174_v25  ;;  %v4565_v12 = vpop.eup %4564  ;;  %4568 = vpow2.f32 %v1815_v52  ;;  %v946_v25 = vadd.f32 %v5847_v27, %v6224_v16  ;;  %v1740_v38 = vmin.f32 %v6496_v13, 0.0  ;;  %2319 = vmatpush.msra.mxu3 %v2300_v55 }
 0x237   : > { %v6499_v40 = vadd.f32 %v6329_v20, %v1437_v57  ;;  %1610 = vmatmul.f32.gmra.mxu3 %v1551_v39  ;;  %4570 = vpow2.f32 %v1811_v49  ;;  %v4209_v39 = vadd.f32 -1.0, %v4565_v12  ;;  %v1821_v52 = vmul.f32 1.442695, %v1742_v46 }
 0x238   : > { %v6514_v3 = vpop.f32.mrf.mxu2  ;;  %v1928_v49 = vsel %vm1688_vm7, %v6436_v37, %v4211_v50  ;;  %v7269_v37 = vld [vmem:[#allocation54_spill] sm:$0xff]  ;;  %vm1692_vm15 = vcmp.gt.f32.partialorder %v6496_v13, 0.0  ;;  %vm1697_vm0 = vcmp.gt.f32.partialorder %v6518_v51, 0.0 }
 0x239   : > { %v1489_v63 = vmin.f32 %v6499_v40, 0.0  ;;  %2165 = vmatmul.f32.gmra.mxu1 %v1923_v17  ;;  %v1926_v15 = vsel %vm1686_vm9, %v6444_v10, %v4209_v39  ;;  %v822_v43 = vadd.f32 %v7269_v37, %v6195_v53  ;;  %vm1473_vm11 = vcmp.gt.f32.partialorder %v6499_v40, 0.0 }
 0x23b   : > { %v4567_v30 = vpop.eup %4566  ;;  %v1511_v0 = vmul.f32 1.442695, %v1489_v63  ;;  %v1817_v63 = vmul.f32 1.442695, %v1740_v38 }
 0x23c   : > { %v4175_v57 = vadd.f32 -1.0, %v4567_v30  ;;  %v4569_v36 = vpop.eup %4568  ;;  %v6524_v30 = vadd.f32 %v6143_v32, %v946_v25  ;;  %v6535_v32 = vpop.f32.mrf.mxu3 }
 0x23d   : > { %4572 = vpow2.f32 %v1511_v0  ;;  %2106 = vmatmul.f32.gmra.mxu2 %v1928_v49  ;;  %v4571_v46 = vpop.eup %4570  ;;  %v4214_v25 = vadd.f32 -1.0, %v4569_v36  ;;  %v949_v0 = vadd.f32 %v5883_v29, %v6224_v16  ;;  %v6542_v55 = vpop.f32.mrf.mxu0  ;;  %v2299_v29 = vld [vmem:[#allocation4 + $0x130] sm:$0xff] }
 0x23e   : > { %v1440_v17 = vpop.f32.mrf.mxu1  ;;  %v1552_v27 = vsel %vm1472_vm8, %v6473_v23, %v4175_v57  ;;  %v1745_v23 = vmin.f32 %v6518_v51, 0.0  ;;  %4574 = vpow2.f32 %v1821_v52  ;;  %v1743_v10 = vmin.f32 %v6524_v30, 0.0  ;;  %2320 = vmatpush.msra.mxu3 %v2299_v29 }
 0x23f   : > { %v6527_v12 = vadd.f32 %v6329_v20, %v1440_v17  ;;  %1613 = vmatmul.f32.gmra.mxu3 %v1552_v27  ;;  %4576 = vpow2.f32 %v1817_v63  ;;  %v4212_v27 = vadd.f32 -1.0, %v4571_v46  ;;  %v6546_v52 = vadd.f32 %v6145_v48, %v822_v43 }
 0x240   : > { %v6540_v39 = vpop.f32.mrf.mxu2  ;;  %v1827_v49 = vmul.f32 1.442695, %v1745_v23  ;;  %vm1695_vm2 = vcmp.gt.f32.partialorder %v6524_v30, 0.0 }
 0x241   : > { %v1490_v50 = vmin.f32 %v6527_v12, 0.0  ;;  %2168 = vmatmul.f32.gmra.mxu1 %v1926_v15  ;;  %v1931_v15 = vsel %vm1691_vm10, %v6462_v33, %v4214_v25  ;;  %v1929_v48 = vsel %vm1689_vm12, %v6470_v45, %v4212_v27  ;;  %v7270_v33 = vld [vmem:[#allocation55_spill] sm:$0xff]  ;;  %vm1474_vm14 = vcmp.gt.f32.partialorder %v6527_v12, 0.0 }
 0x242   : > { %v825_v43 = vadd.f32 %v7270_v33, %v6195_v53  ;;  %vm1700_vm4 = vcmp.gt.f32.partialorder %v6546_v52, 0.0 }
 0x243   : > { %v4573_v38 = vpop.eup %4572  ;;  %v1513_v57 = vmul.f32 1.442695, %v1490_v50  ;;  %v1823_v50 = vmul.f32 1.442695, %v1743_v10  ;;  %v952_v10 = vadd.f32 %v5920_v41, %v6224_v16  ;;  %v2298_v41 = vld [vmem:[#allocation4 + $0x128] sm:$0xff] }
 0x244   : > { %v4176_v17 = vadd.f32 -1.0, %v4573_v38  ;;  %v4575_v37 = vpop.eup %4574  ;;  %v6552_v38 = vadd.f32 %v6175_v9, %v949_v0  ;;  %v6568_v27 = vpop.f32.mrf.mxu3  ;;  %2321 = vmatpush.msra.mxu3 %v2298_v41 }
 0x245   : > { %4578 = vpow2.f32 %v1513_v57  ;;  %2109 = vmatmul.f32.gmra.mxu2 %v1931_v15  ;;  %v4577_v23 = vpop.eup %4576  ;;  %v4217_v9 = vadd.f32 -1.0, %v4575_v37  ;;  %v6575_v15 = vpop.f32.mrf.mxu0 }
 0x246   : > { %v1443_v36 = vpop.f32.mrf.mxu1  ;;  %v1553_v63 = vsel %vm1473_vm11, %v6499_v40, %v4176_v17  ;;  %v1748_v40 = vmin.f32 %v6546_v52, 0.0  ;;  %4580 = vpow2.f32 %v1827_v49  ;;  %v1746_v57 = vmin.f32 %v6552_v38, 0.0 }
 0x247   : > { %v6555_v46 = vadd.f32 %v6329_v20, %v1443_v36  ;;  %1616 = vmatmul.f32.gmra.mxu3 %v1553_v63  ;;  %4582 = vpow2.f32 %v1823_v50  ;;  %v4215_v36 = vadd.f32 -1.0, %v4577_v23  ;;  %v6572_v63 = vadd.f32 %v6183_v31, %v825_v43 }
 0x248   : > { %v6566_v45 = vpop.f32.mrf.mxu2  ;;  %v1833_v49 = vmul.f32 1.442695, %v1748_v40  ;;  %v6580_v23 = vadd.f32 %v6207_v59, %v952_v10  ;;  %v955_v59 = vadd.f32 %v5959_v62, %v6224_v16  ;;  %vm1698_vm5 = vcmp.gt.f32.partialorder %v6552_v38, 0.0 }
 0x249   : > { %v1491_v25 = vmin.f32 %v6555_v46, 0.0  ;;  %2171 = vmatmul.f32.gmra.mxu1 %v1929_v48  ;;  %v1934_v48 = vsel %vm1694_vm13, %v6490_v34, %v4217_v9  ;;  %v1932_v40 = vsel %vm1692_vm15, %v6496_v13, %v4215_v36  ;;  %v7271_v13 = vld [vmem:[#allocation46_spill] sm:$0xff]  ;;  %vm1475_vm1 = vcmp.gt.f32.partialorder %v6555_v46, 0.0 }
 0x24a   : > { %v1749_v10 = vmin.f32 %v6580_v23, 0.0  ;;  %vm1703_vm7 = vcmp.gt.f32.partialorder %v6572_v63, 0.0  ;;  %vm1701_vm8 = vcmp.gt.f32.partialorder %v6580_v23, 0.0 }
 0x24b   : > { %v4579_v0 = vpop.eup %4578  ;;  %v1515_v17 = vmul.f32 1.442695, %v1491_v25  ;;  %v1829_v25 = vmul.f32 1.442695, %v1746_v57 }
 0x24c   : > { %v4177_v29 = vadd.f32 -1.0, %v4579_v0  ;;  %v4581_v33 = vpop.eup %4580 }
 0x24d   : > { %4584 = vpow2.f32 %v1515_v17  ;;  %2112 = vmatmul.f32.gmra.mxu2 %v1934_v48  ;;  %v4583_v43 = vpop.eup %4582  ;;  %v4220_v9 = vadd.f32 -1.0, %v4581_v33 }
 0x24e   : > { %v1446_v37 = vpop.f32.mrf.mxu1  ;;  %v1554_v50 = vsel %vm1474_vm14, %v6527_v12, %v4177_v29  ;;  %v1751_v12 = vmin.f32 %v6572_v63, 0.0  ;;  %4586 = vpow2.f32 %v1833_v49  ;;  %v828_v29 = vadd.f32 %v7271_v13, %v6195_v53 }
 0x24f   : > { %v6583_v31 = vadd.f32 %v6329_v20, %v1446_v37  ;;  %1619 = vmatmul.f32.gmra.mxu3 %v1554_v50  ;;  %4588 = vpow2.f32 %v1829_v25  ;;  %v4218_v41 = vadd.f32 -1.0, %v4583_v43  ;;  %v2297_v37 = vld [vmem:[#allocation4 + $0x120] sm:$0xff]  ;;  %v6601_v50 = vpop.f32.mrf.mxu3  ;;  %v1937_v25 = vsel %vm1697_vm0, %v6518_v51, %v4220_v9 }
 0x250   : > { %v6592_v17 = vpop.f32.mrf.mxu2  ;;  %v1839_v49 = vmul.f32 1.442695, %v1751_v12  ;;  %v6599_v62 = vadd.f32 %v6230_v28, %v828_v29  ;;  %2322 = vmatpush.msra.mxu3 %v2297_v37  ;;  %v1835_v43 = vmul.f32 1.442695, %v1749_v10  ;;  %v6612_v28 = vpop.f32.mrf.mxu0  ;;  %v958_v10 = vadd.f32 %v5996_v21, %v6224_v16 }
 0x251   : > { %v1492_v34 = vmin.f32 %v6583_v31, 0.0  ;;  %2174 = vmatmul.f32.gmra.mxu1 %v1932_v40  ;;  %v1935_v12 = vsel %vm1695_vm2, %v6524_v30, %v4218_v41  ;;  %v7272_v30 = vld [vmem:[#allocation50_spill] sm:$0xff]  ;;  %vm1476_vm3 = vcmp.gt.f32.partialorder %v6583_v31, 0.0 }
 0x252   : > { %v1754_v9 = vmin.f32 %v6599_v62, 0.0  ;;  %vm1706_vm10 = vcmp.gt.f32.partialorder %v6599_v62, 0.0 }
 0x253   : > { %v4585_v0 = vpop.eup %4584  ;;  %v1517_v57 = vmul.f32 1.442695, %v1492_v34  ;;  %v6606_v34 = vadd.f32 %v6244_v26, %v955_v59 }
 0x254   : > { %v4178_v36 = vadd.f32 -1.0, %v4585_v0  ;;  %v4587_v40 = vpop.eup %4586 }
 0x255   : > { %4590 = vpow2.f32 %v1517_v57  ;;  %2115 = vmatmul.f32.gmra.mxu2 %v1937_v25  ;;  %v4223_v26 = vadd.f32 -1.0, %v4587_v40  ;;  %v1752_v57 = vmin.f32 %v6606_v34, 0.0  ;;  %vm1704_vm11 = vcmp.gt.f32.partialorder %v6606_v34, 0.0 }
 0x256   : > { %v1449_v48 = vpop.f32.mrf.mxu1  ;;  %v1555_v33 = vsel %vm1475_vm1, %v6555_v46, %v4178_v36  ;;  %v4589_v46 = vpop.eup %4588  ;;  %4592 = vpow2.f32 %v1839_v49  ;;  %v831_v36 = vadd.f32 %v7272_v30, %v6195_v53  ;;  %v2296_v49 = vld [vmem:[#allocation4 + $0x118] sm:$0xff] }
 0x257   : > { %v6609_v0 = vadd.f32 %v6329_v20, %v1449_v48  ;;  %1622 = vmatmul.f32.gmra.mxu3 %v1555_v33  ;;  %4594 = vpow2.f32 %v1835_v43  ;;  %v4221_v37 = vadd.f32 -1.0, %v4589_v46  ;;  %v1845_v48 = vmul.f32 1.442695, %v1754_v9 }
 0x258   : > { %v6620_v29 = vpop.f32.mrf.mxu2  ;;  %v6627_v21 = vadd.f32 %v6269_v61, %v831_v36  ;;  %v1940_v40 = vsel %vm1700_vm4, %v6546_v52, %v4223_v26  ;;  %2323 = vmatpush.msra.mxu3 %v2296_v49  ;;  %v1841_v53 = vmul.f32 1.442695, %v1752_v57 }
 0x259   : > { %v1493_v51 = vmin.f32 %v6609_v0, 0.0  ;;  %2177 = vmatmul.f32.gmra.mxu1 %v1935_v12  ;;  %v6632_v12 = vadd.f32 %v6276_v47, %v958_v10  ;;  %v1938_v61 = vsel %vm1698_vm5, %v6552_v38, %v4221_v37  ;;  %v6643_v47 = vpop.f32.mrf.mxu0  ;;  %v961_v10 = vadd.f32 %v6035_v58, %v6224_v16  ;;  %v2668_v37 = vld [vmem:[#allocation4 + $0x278] sm:$0xff] }
 0x25a   : > { %v1757_v9 = vmin.f32 %v6627_v21, 0.0  ;;  %vm1477_vm6 = vcmp.gt.f32.partialorder %v6609_v0, 0.0  ;;  %2669 = vmatpush.msrb.mxu2 %v2668_v37  ;;  %vm1709_vm13 = vcmp.gt.f32.partialorder %v6627_v21, 0.0 }
 0x25b   : > { %v4591_v59 = vpop.eup %4590  ;;  %v1519_v13 = vmul.f32 1.442695, %v1493_v51  ;;  %v6638_v51 = vpop.f32.mrf.mxu3  ;;  %v1755_v57 = vmin.f32 %v6632_v12, 0.0  ;;  %vm1707_vm14 = vcmp.gt.f32.partialorder %v6632_v12, 0.0 }
 0x25c   : > { %v4179_v41 = vadd.f32 -1.0, %v4591_v59  ;;  %v4593_v43 = vpop.eup %4592  ;;  %v1851_v49 = vmul.f32 1.442695, %v1757_v9 }
 0x25d   : > { %4596 = vpow2.f32 %v1519_v13  ;;  %2118 = vmatmul.f32.gmra.mxu2 %v1940_v40  ;;  %v4226_v26 = vadd.f32 -1.0, %v4593_v43  ;;  %v1847_v16 = vmul.f32 1.442695, %v1755_v57  ;;  %v2667_v43 = vld [vmem:[#allocation4 + $0x270] sm:$0xff]  ;;  %v2665_v57 = vld [vmem:[#allocation4 + $0x260] sm:$0xff] }
 0x25e   : > { %v1452_v33 = vpop.f32.mrf.mxu1  ;;  %v1556_v25 = vsel %vm1476_vm3, %v6583_v31, %v4179_v41  ;;  %v4595_v31 = vpop.eup %4594  ;;  %4598 = vpow2.f32 %v1845_v48  ;;  %v2295_v41 = vld [vmem:[#allocation4 + $0x110] sm:$0xff]  ;;  %2670 = vmatpush.msrb.mxu2 %v2667_v43 }
 0x25f   : > { %v6635_v46 = vadd.f32 %v6329_v20, %v1452_v33  ;;  %1625 = vmatmul.f32.gmra.mxu3 %v1556_v25  ;;  %4600 = vpow2.f32 %v1841_v53  ;;  %v4224_v36 = vadd.f32 -1.0, %v4595_v31  ;;  %v1943_v58 = vsel %vm1703_vm7, %v6572_v63, %v4226_v26  ;;  %v2666_v31 = vld [vmem:[#allocation4 + $0x268] sm:$0xff] }
 0x260   : > { %v6648_v30 = vpop.f32.mrf.mxu2  ;;  %2324 = vmatpush.msra.mxu3 %v2295_v41  ;;  %v6655_v25 = vadd.f32 %v6298_v42, %v961_v10  ;;  %2671 = vmatpush.msrb.mxu2 %v2666_v31 }
 0x261   : > { %v1494_v52 = vmin.f32 %v6635_v46, 0.0  ;;  %2180 = vmatmul.f32.gmra.mxu1 %v1938_v61  ;;  %v1941_v61 = vsel %vm1701_vm8, %v6580_v23, %v4224_v36  ;;  %v6668_v23 = vpop.f32.mrf.mxu0  ;;  %vm1478_vm9 = vcmp.gt.f32.partialorder %v6635_v46, 0.0  ;;  %v2664_v36 = vld [vmem:[#allocation4 + $0x258] sm:$0xff] }
 0x262   : > { %v1758_v9 = vmin.f32 %v6655_v25, 0.0  ;;  %2672 = vmatpush.msrb.mxu2 %v2665_v57  ;;  %v2294_v57 = vld [vmem:[#allocation4 + $0x108] sm:$0xff]  ;;  %vm1710_vm1 = vcmp.gt.f32.partialorder %v6655_v25, 0.0 }
 0x263   : > { %v4597_v59 = vpop.eup %4596  ;;  %v1521_v13 = vmul.f32 1.442695, %v1494_v52  ;;  %v6663_v42 = vpop.f32.mrf.mxu3  ;;  %2325 = vmatpush.msra.mxu3 %v2294_v57 }
 0x264   : > { %v4180_v38 = vadd.f32 -1.0, %v4597_v59  ;;  %v4599_v53 = vpop.eup %4598  ;;  %2673 = vmatpush.msrb.mxu2 %v2664_v36 }
 0x265   : > { %4602 = vpow2.f32 %v1521_v13  ;;  %2121 = vmatmul.f32.gmra.mxu2 %v1943_v58  ;;  %v4229_v10 = vadd.f32 -1.0, %v4599_v53  ;;  %v2663_v58 = vld [vmem:[#allocation4 + $0x250] sm:$0xff] }
 0x266   : > { %v1455_v48 = vpop.f32.mrf.mxu1  ;;  %v1557_v33 = vsel %vm1477_vm6, %v6609_v0, %v4180_v38  ;;  %v4601_v0 = vpop.eup %4600  ;;  %4604 = vpow2.f32 %v1851_v49  ;;  %v1853_v49 = vmul.f32 1.442695, %v1758_v9  ;;  %2674 = vmatpush.msrb.mxu2 %v2663_v58 }
 0x267   : > { %v6658_v40 = vadd.f32 %v6329_v20, %v1455_v48  ;;  %1628 = vmatmul.f32.gmra.mxu3 %v1557_v33  ;;  %4606 = vpow2.f32 %v1847_v16  ;;  %v4227_v38 = vadd.f32 -1.0, %v4601_v0  ;;  %v1946_v33 = vsel %vm1706_vm10, %v6599_v62, %v4229_v10 }
 0x268   : > { %v6666_v59 = vpop.f32.mrf.mxu2 }
 0x269   : > { %v1495_v63 = vmin.f32 %v6658_v40, 0.0  ;;  %2183 = vmatmul.f32.gmra.mxu1 %v1941_v61  ;;  %v1944_v43 = vsel %vm1704_vm11, %v6606_v34, %v4227_v38  ;;  %v2662_v61 = vld [vmem:[#allocation4 + $0x248] sm:$0xff]  ;;  %vm1479_vm12 = vcmp.gt.f32.partialorder %v6658_v40, 0.0  ;;  %v2293_v34 = vld [vmem:[#allocation4 + $0x100] sm:$0xff]  ;;  %v6685_v38 = vpop.f32.mrf.mxu0 }
 0x26a   : > { %2675 = vmatpush.msrb.mxu2 %v2662_v61  ;;  %2326 = vmatpush.msra.mxu3 %v2293_v34  ;;  %v2655_v34 = vld [vmem:[#allocation4 + $0x210] sm:$0xff] }
 0x26b   : > { %v4603_v52 = vpop.eup %4602  ;;  %v1523_v26 = vmul.f32 1.442695, %v1495_v63  ;;  %v6682_v9 = vpop.f32.mrf.mxu3 }
 0x26c   : > { %v4181_v13 = vadd.f32 -1.0, %v4603_v52  ;;  %v4605_v16 = vpop.eup %4604  ;;  %v2661_v52 = vld [vmem:[#allocation4 + $0x240] sm:$0xff] }
 0x26d   : > { %4608 = vpow2.f32 %v1523_v26  ;;  %2124 = vmatmul.f32.gmra.mxu2 %v1946_v33  ;;  %v4607_v53 = vpop.eup %4606  ;;  %v4232_v62 = vadd.f32 -1.0, %v4605_v16  ;;  %v2659_v33 = vld [vmem:[#allocation4 + $0x230] sm:$0xff] }
 0x26e   : > { %v1458_v41 = vpop.f32.mrf.mxu1  ;;  %v1558_v37 = vsel %vm1478_vm9, %v6635_v46, %v4181_v13  ;;  %4610 = vpow2.f32 %v1853_v49  ;;  %v4230_v10 = vadd.f32 -1.0, %v4607_v53  ;;  %2676 = vmatpush.msrb.mxu2 %v2661_v52  ;;  %v2660_v13 = vld [vmem:[#allocation4 + $0x238] sm:$0xff] }
 0x26f   : > { %v6674_v48 = vadd.f32 %v6329_v20, %v1458_v41  ;;  %1631 = vmatmul.f32.gmra.mxu3 %v1558_v37  ;;  %v1949_v49 = vsel %vm1709_vm13, %v6627_v21, %v4232_v62 }
 0x270   : > { %v6680_v31 = vpop.f32.mrf.mxu2  ;;  %2677 = vmatpush.msrb.mxu2 %v2660_v13  ;;  %v1947_v58 = vsel %vm1707_vm14, %v6632_v12, %v4230_v10  ;;  %v4955_v10 = vld [vmem:[%s7148_s5] ss:$0 sm:$0xff] }
 0x271   : > { %v1496_v46 = vmin.f32 %v6674_v48, 0.0  ;;  %2186 = vmatmul.f32.gmra.mxu1 %v1944_v43  ;;  %vm1480_vm15 = vcmp.gt.f32.partialorder %v6674_v48, 0.0  ;;  %v2027_v13 = vpop.f32.mrf.mxu0 }
 0x272   : > { %2678 = vmatpush.msrb.mxu2 %v2659_v33 }
 0x273   : > { %v4609_v0 = vpop.eup %4608  ;;  %v1525_v63 = vmul.f32 1.442695, %v1496_v46  ;;  %v6696_v12 = vpop.f32.mrf.mxu3 }
 0x274   : > { %v4182_v26 = vadd.f32 -1.0, %v4609_v0  ;;  %v4611_v16 = vpop.eup %4610 }
 0x275   : > { %4612 = vpow2.f32 %v1525_v63  ;;  %2127 = vmatmul.f32.gmra.mxu2 %v1949_v49  ;;  %v4233_v0 = vadd.f32 -1.0, %v4611_v16  ;;  %v2656_v63 = vld [vmem:[#allocation4 + $0x218] sm:$0xff] }
 0x276   : > { %v1461_v36 = vpop.f32.mrf.mxu1  ;;  %v1559_v41 = vsel %vm1479_vm12, %v6658_v40, %v4182_v26  ;;  %v2658_v40 = vld [vmem:[#allocation4 + $0x228] sm:$0xff]  ;;  %v6702_v26 = vld [vmem:[%s7148_s5 + $0xc] ss:$0 sm:$0xff] }
 0x277   : > { %v1462_v37 = vadd.f32 %v6329_v20, %v1461_v36  ;;  %1634 = vmatmul.f32.gmra.mxu3 %v1559_v41  ;;  %2679 = vmatpush.msrb.mxu2 %v2658_v40  ;;  %v2657_v20 = vld [vmem:[#allocation4 + $0x220] sm:$0xff]  ;;  %v1950_v36 = vsel %vm1710_vm1, %v6655_v25, %v4233_v0  ;;  %v2019_v33 = vadd.f32 %v6702_v26, %v6643_v47 }
 0x278   : > { %v6693_v61 = vpop.f32.mrf.mxu2  ;;  %v2022_v47 = vadd.f32 %v6702_v26, %v6668_v23 }
 0x279   : > { %v1497_v43 = vmin.f32 %v1462_v37, 0.0  ;;  %2189 = vmatmul.f32.gmra.mxu1 %v1947_v58  ;;  %2680 = vmatpush.msrb.mxu2 %v2657_v20  ;;  %vm1481_vm0 = vcmp.gt.f32.partialorder %v1462_v37, 0.0 }
 0x27b   : > { %v4613_v53 = vpop.eup %4612  ;;  %v1527_v46 = vmul.f32 1.442695, %v1497_v43  ;;  %2681 = vmatpush.msrb.mxu2 %v2656_v63  ;;  %v2653_v43 = vld [vmem:[#allocation4 + $0x200] sm:$0xff]  ;;  %v2030_v63 = vpop.f32.mrf.mxu0 }
 0x27c   : > { %v4183_v21 = vadd.f32 -1.0, %v4613_v53 }
 0x27d   : > { %4614 = vpow2.f32 %v1527_v46  ;;  %2682 = vmatpush.msrb.mxu2 %v2655_v34 }
 0x27e   : > { %v1464_v62 = vpop.f32.mrf.mxu1  ;;  %v1560_v52 = vsel %vm1480_vm15, %v6674_v48, %v4183_v21  ;;  %v2654_v48 = vld [vmem:[#allocation4 + $0x208] sm:$0xff]  ;;  %v6711_v21 = vpop.f32.mrf.mxu3 }
 0x27f   : > { %v1465_v57 = vadd.f32 %v4955_v10, %v1464_v62  ;;  %1637 = vmatmul.f32.gmra.mxu3 %v1560_v52  ;;  %2683 = vmatpush.msrb.mxu2 %v2654_v48 }
 0x280   : > { %v2083_v16 = vpop.f32.mrf.mxu2 }
 0x281   : > { %v1498_v41 = vmin.f32 %v1465_v57, 0.0  ;;  %2192 = vmatmul.f32.gmra.mxu1 %v1950_v36  ;;  %v2084_v53 = vadd.f32 %v2083_v16, %v2019_v33  ;;  %2684 = vmatpush.msrb.mxu2 %v2653_v43  ;;  %vm1482_vm2 = vcmp.gt.f32.partialorder %v1465_v57, 0.0  ;;  %v2025_v43 = vadd.f32 %v6702_v26, %v6685_v38 }
 0x283   : > { %v4615_v49 = vpop.eup %4614  ;;  %v1529_v58 = vmul.f32 1.442695, %v1498_v41 }
 0x284   : > { %v4184_v40 = vadd.f32 -1.0, %v4615_v49  ;;  %v2488_v49 = vld [vmem:[#allocation4 + $0x1f8] sm:$0xff] }
 0x285   : > { %4616 = vpow2.f32 %v1529_v58  ;;  %2491 = vmatpush.msra.mxu0 %v2488_v49 }
 0x286   : > { %v2148_v46 = vpop.f32.mrf.mxu1  ;;  %v1561_v20 = vsel %vm1481_vm0, %v1462_v37, %v4184_v40  ;;  %v6715_v58 = vpop.f32.mrf.mxu3 }
 0x287   : > { %v2149_v25 = vadd.f32 %v2148_v46, %v2084_v53  ;;  %1640 = vmatmul.f32.gmra.mxu3 %v1561_v20  ;;  %v2033_v53 = vpop.f32.mrf.mxu0 }
 0x288   : > { %v2086_v10 = vpop.f32.mrf.mxu2 }
 0x289   : > { %v2212_v0 = vmin.f32 %v2149_v25, 0.0  ;;  %v2087_v36 = vadd.f32 %v2086_v10, %v2022_v47  ;;  %vm2196_vm3 = vcmp.gt.f32.partialorder %v2149_v25, 0.0 }
 0x28b   : > { %v4617_v62 = vpop.eup %4616  ;;  %v2228_v52 = vmul.f32 1.442695, %v2212_v0 }
 0x28c   : > { %v4185_v34 = vadd.f32 -1.0, %v4617_v62  ;;  %v2487_v62 = vld [vmem:[#allocation4 + $0x1f0] sm:$0xff] }
 0x28d   : > { %4618 = vpow2.f32 %v2228_v52  ;;  %v6722_v52 = vld [vmem:[%s7148_s5 + $0x1] ss:$0 sm:$0xff]  ;;  %2492 = vmatpush.msra.mxu0 %v2487_v62 }
 0x28e   : > { %v2151_v41 = vpop.f32.mrf.mxu1  ;;  %v1562_v48 = vsel %vm1482_vm2, %v1465_v57, %v4185_v34 }
 0x28f   : > { %v2152_v37 = vadd.f32 %v2151_v41, %v2087_v36  ;;  %1643 = vmatmul.f32.gmra.mxu3 %v1562_v48  ;;  %v2028_v36 = vadd.f32 %v6702_v26, %v2027_v13  ;;  %v2031_v13 = vadd.f32 %v6702_v26, %v2030_v63 }
 0x290   : > { %v2089_v40 = vpop.f32.mrf.mxu2 }
 0x291   : > { %v2213_v33 = vmin.f32 %v2152_v37, 0.0  ;;  %v2090_v20 = vadd.f32 %v2089_v40, %v2025_v43  ;;  %vm2197_vm4 = vcmp.gt.f32.partialorder %v2152_v37, 0.0  ;;  %v2486_v40 = vld [vmem:[#allocation4 + $0x1e8] sm:$0xff] }
 0x292   : > { %2493 = vmatpush.msra.mxu0 %v2486_v40  ;;  %v2034_v40 = vadd.f32 %v6702_v26, %v2033_v53 }
 0x293   : > { %v4619_v16 = vpop.eup %4618  ;;  %v2230_v23 = vmul.f32 1.442695, %v2213_v33 }
 0x294   : > { %v4234_v46 = vadd.f32 -1.0, %v4619_v16  ;;  %v2036_v16 = vpop.f32.mrf.mxu0 }
 0x295   : > { %4620 = vpow2.f32 %v2230_v23 }
 0x296   : > { %v2154_v0 = vpop.f32.mrf.mxu1  ;;  %v2276_v57 = vsel %vm2196_vm3, %v2149_v25, %v4234_v46 }
 0x297   : > { %v2155_v47 = vadd.f32 %v2154_v0, %v2090_v20  ;;  %2327 = vmatmul.f32.vlgmr.msra.gmra.mxu3 %v2276_v57 }
 0x298   : > { %v2092_v49 = vpop.f32.mrf.mxu2 }
 0x299   : > { %v2214_v10 = vmin.f32 %v2155_v47, 0.0  ;;  %v2093_v25 = vadd.f32 %v2092_v49, %v2028_v36  ;;  %vm2198_vm5 = vcmp.gt.f32.partialorder %v2155_v47, 0.0  ;;  %v2485_v49 = vld [vmem:[#allocation4 + $0x1e0] sm:$0xff] }
 0x29a   : > { %v1599_v38 = vpop.f32.mrf.mxu3  ;;  %2494 = vmatpush.msra.mxu0 %v2485_v49  ;;  %v2037_v49 = vadd.f32 %v6702_v26, %v2036_v16 }
 0x29b   : > { %v4621_v34 = vpop.eup %4620  ;;  %v2232_v41 = vmul.f32 1.442695, %v2214_v10  ;;  %v1600_v48 = vadd.f32 %v6722_v52, %v1599_v38 }
 0x29c   : > { %v4235_v33 = vadd.f32 -1.0, %v4621_v34 }
 0x29d   : > { %4622 = vpow2.f32 %v2232_v41 }
 0x29e   : > { %4624 = vtanh.f32 %v1600_v48  ;;  %v2157_v43 = vpop.f32.mrf.mxu1  ;;  %v2277_v23 = vsel %vm2197_vm4, %v2152_v37, %v4235_v33 }
 0x29f   : > { %v2158_v46 = vadd.f32 %v2157_v43, %v2093_v25  ;;  %2330 = vmatmul.f32.gmra.mxu3 %v2277_v23  ;;  %v2039_v25 = vpop.f32.mrf.mxu0 }
 0x2a0   : > { %v2095_v38 = vpop.f32.mrf.mxu2 }
 0x2a1   : > { %v2215_v20 = vmin.f32 %v2158_v46, 0.0  ;;  %v2096_v41 = vadd.f32 %v2095_v38, %v2031_v13  ;;  %vm2199_vm6 = vcmp.gt.f32.partialorder %v2158_v46, 0.0 }
 0x2a2   : > { %v1602_v0 = vpop.f32.mrf.mxu3 }
 0x2a3   : > { %v4623_v57 = vpop.eup %4622  ;;  %v2234_v62 = vmul.f32 1.442695, %v2215_v20  ;;  %v1603_v10 = vadd.f32 %v6722_v52, %v1602_v0 }
 0x2a4   : > { %v4625_v34 = vpop.eup %4624  ;;  %v4236_v36 = vadd.f32 -1.0, %v4623_v57 }
 0x2a5   : > { %4626 = vpow2.f32 %v2234_v62  ;;  %2685 = vmatmul.f32.vlgmr.msrb.gmra.mxu2 %v4625_v34  ;;  %v2484_v34 = vld [vmem:[#allocation4 + $0x1d8] sm:$0xff] }
 0x2a6   : > { %4628 = vtanh.f32 %v1603_v10  ;;  %v2160_v37 = vpop.f32.mrf.mxu1  ;;  %v2278_v48 = vsel %vm2198_vm5, %v2155_v47, %v4236_v36  ;;  %2495 = vmatpush.msra.mxu0 %v2484_v34 }
 0x2a7   : > { %v2161_v33 = vadd.f32 %v2160_v37, %v2096_v41  ;;  %2333 = vmatmul.f32.gmra.mxu3 %v2278_v48  ;;  %v2042_v37 = vpop.f32.mrf.mxu0 }
 0x2a8   : > { %v2098_v57 = vpop.f32.mrf.mxu2 }
 0x2a9   : > { %v2216_v43 = vmin.f32 %v2161_v33, 0.0  ;;  %v2099_v10 = vadd.f32 %v2098_v57, %v2034_v40  ;;  %vm2200_vm7 = vcmp.gt.f32.partialorder %v2161_v33, 0.0 }
 0x2aa   : > { %v1605_v63 = vpop.f32.mrf.mxu3 }
 0x2ab   : > { %v4627_v23 = vpop.eup %4626  ;;  %v2236_v20 = vmul.f32 1.442695, %v2216_v43  ;;  %v1606_v0 = vadd.f32 %v6722_v52, %v1605_v63 }
 0x2ac   : > { %v4629_v13 = vpop.eup %4628  ;;  %v4237_v62 = vadd.f32 -1.0, %v4627_v23 }
 0x2ad   : > { %4630 = vpow2.f32 %v2236_v20  ;;  %2688 = vmatmul.f32.gmra.mxu2 %v4629_v13  ;;  %v2483_v13 = vld [vmem:[#allocation4 + $0x1d0] sm:$0xff] }
 0x2ae   : > { %4632 = vtanh.f32 %v1606_v0  ;;  %v2163_v47 = vpop.f32.mrf.mxu1  ;;  %v2279_v38 = vsel %vm2199_vm6, %v2158_v46, %v4237_v62  ;;  %2496 = vmatpush.msra.mxu0 %v2483_v13 }
 0x2af   : > { %v2164_v36 = vadd.f32 %v2163_v47, %v2099_v10  ;;  %2336 = vmatmul.f32.gmra.mxu3 %v2279_v38  ;;  %v2040_v38 = vadd.f32 %v6702_v26, %v2039_v25 }
 0x2b0   : > { %v2101_v23 = vpop.f32.mrf.mxu2 }
 0x2b1   : > { %v2217_v41 = vmin.f32 %v2164_v36, 0.0  ;;  %v2102_v0 = vadd.f32 %v2101_v23, %v2037_v49  ;;  %v2045_v49 = vpop.f32.mrf.mxu0  ;;  %vm2201_vm8 = vcmp.gt.f32.partialorder %v2164_v36, 0.0 }
 0x2b2   : > { %v1608_v53 = vpop.f32.mrf.mxu3 }
 0x2b3   : > { %v4631_v48 = vpop.eup %4630  ;;  %v2238_v43 = vmul.f32 1.442695, %v2217_v41  ;;  %v1609_v63 = vadd.f32 %v6722_v52, %v1608_v53 }
 0x2b4   : > { %v4633_v40 = vpop.eup %4632  ;;  %v4238_v20 = vadd.f32 -1.0, %v4631_v48 }
 0x2b5   : > { %4634 = vpow2.f32 %v2238_v43  ;;  %2691 = vmatmul.f32.gmra.mxu2 %v4633_v40  ;;  %v2482_v40 = vld [vmem:[#allocation4 + $0x1c8] sm:$0xff] }
 0x2b6   : > { %4636 = vtanh.f32 %v1609_v63  ;;  %v2166_v46 = vpop.f32.mrf.mxu1  ;;  %v2280_v57 = vsel %vm2200_vm7, %v2161_v33, %v4238_v20  ;;  %2497 = vmatpush.msra.mxu0 %v2482_v40 }
 0x2b7   : > { %v2167_v62 = vadd.f32 %v2166_v46, %v2102_v0  ;;  %2339 = vmatmul.f32.gmra.mxu3 %v2280_v57  ;;  %v2043_v57 = vadd.f32 %v6702_v26, %v2042_v37 }
 0x2b8   : > { %v2104_v53 = vpop.f32.mrf.mxu2 }
 0x2b9   : > { %v2218_v10 = vmin.f32 %v2167_v62, 0.0  ;;  %v2105_v63 = vadd.f32 %v2104_v53, %v2040_v38  ;;  %vm2202_vm9 = vcmp.gt.f32.partialorder %v2167_v62, 0.0 }
 0x2ba   : > { %v1611_v47 = vpop.f32.mrf.mxu3 }
 0x2bb   : > { %v4635_v16 = vpop.eup %4634  ;;  %v2240_v34 = vmul.f32 1.442695, %v2218_v10  ;;  %v1612_v41 = vadd.f32 %v6722_v52, %v1611_v47 }
 0x2bc   : > { %v4637_v48 = vpop.eup %4636  ;;  %v4239_v43 = vadd.f32 -1.0, %v4635_v16 }
 0x2bd   : > { %4638 = vpow2.f32 %v2240_v34  ;;  %2694 = vmatmul.f32.gmra.mxu2 %v4637_v48  ;;  %v2481_v48 = vld [vmem:[#allocation4 + $0x1c0] sm:$0xff] }
 0x2be   : > { %4640 = vtanh.f32 %v1612_v41  ;;  %v2169_v33 = vpop.f32.mrf.mxu1  ;;  %v2281_v23 = vsel %vm2201_vm8, %v2164_v36, %v4239_v43  ;;  %v2048_v36 = vpop.f32.mrf.mxu0  ;;  %2498 = vmatpush.msra.mxu0 %v2481_v48 }
 0x2bf   : > { %v2170_v20 = vadd.f32 %v2169_v33, %v2105_v63  ;;  %2342 = vmatmul.f32.gmra.mxu3 %v2281_v23  ;;  %v2046_v23 = vadd.f32 %v6702_v26, %v2045_v49 }
 0x2c0   : > { %v2107_v47 = vpop.f32.mrf.mxu2 }
 0x2c1   : > { %v2219_v0 = vmin.f32 %v2170_v20, 0.0  ;;  %v2108_v34 = vadd.f32 %v2107_v47, %v2043_v57  ;;  %vm2203_vm10 = vcmp.gt.f32.partialorder %v2170_v20, 0.0  ;;  %v2480_v47 = vld [vmem:[#allocation4 + $0x1b8] sm:$0xff] }
 0x2c2   : > { %v1614_v25 = vpop.f32.mrf.mxu3  ;;  %2499 = vmatpush.msra.mxu0 %v2480_v47 }
 0x2c3   : > { %v4639_v46 = vpop.eup %4638  ;;  %v2242_v13 = vmul.f32 1.442695, %v2219_v0  ;;  %v1615_v10 = vadd.f32 %v6722_v52, %v1614_v25 }
 0x2c4   : > { %v4641_v16 = vpop.eup %4640  ;;  %v4240_v38 = vadd.f32 -1.0, %v4639_v46 }
 0x2c5   : > { %4642 = vpow2.f32 %v2242_v13  ;;  %2697 = vmatmul.f32.gmra.mxu2 %v4641_v16 }
 0x2c6   : > { %4644 = vtanh.f32 %v1615_v10  ;;  %v2172_v41 = vpop.f32.mrf.mxu1  ;;  %v2282_v53 = vsel %vm2202_vm9, %v2167_v62, %v4240_v38  ;;  %v2051_v38 = vpop.f32.mrf.mxu0 }
 0x2c7   : > { %v2173_v43 = vadd.f32 %v2172_v41, %v2108_v34  ;;  %2345 = vmatmul.f32.gmra.mxu3 %v2282_v53  ;;  %v2049_v53 = vadd.f32 %v6702_v26, %v2048_v36 }
 0x2c8   : > { %v2110_v25 = vpop.f32.mrf.mxu2 }
 0x2c9   : > { %v2220_v63 = vmin.f32 %v2173_v43, 0.0  ;;  %v2111_v13 = vadd.f32 %v2110_v25, %v2046_v23  ;;  %vm2204_vm11 = vcmp.gt.f32.partialorder %v2173_v43, 0.0  ;;  %v2479_v25 = vld [vmem:[#allocation4 + $0x1b0] sm:$0xff] }
 0x2ca   : > { %v1617_v37 = vpop.f32.mrf.mxu3  ;;  %2500 = vmatpush.msra.mxu0 %v2479_v25 }
 0x2cb   : > { %v4643_v33 = vpop.eup %4642  ;;  %v2244_v40 = vmul.f32 1.442695, %v2220_v63  ;;  %v1618_v0 = vadd.f32 %v6722_v52, %v1617_v37 }
 0x2cc   : > { %v4645_v46 = vpop.eup %4644  ;;  %v4241_v57 = vadd.f32 -1.0, %v4643_v33 }
 0x2cd   : > { %4646 = vpow2.f32 %v2244_v40  ;;  %2700 = vmatmul.f32.gmra.mxu2 %v4645_v46 }
 0x2ce   : > { %4648 = vtanh.f32 %v1618_v0  ;;  %v2175_v62 = vpop.f32.mrf.mxu1  ;;  %v2283_v10 = vsel %vm2203_vm10, %v2170_v20, %v4241_v57 }
 0x2cf   : > { %v2176_v16 = vadd.f32 %v2175_v62, %v2111_v13  ;;  %2348 = vmatmul.f32.gmra.mxu3 %v2283_v10  ;;  %v2054_v13 = vpop.f32.mrf.mxu0  ;;  %v2052_v10 = vadd.f32 %v6702_v26, %v2051_v38 }
 0x2d0   : > { %v2113_v37 = vpop.f32.mrf.mxu2 }
 0x2d1   : > { %v2221_v34 = vmin.f32 %v2176_v16, 0.0  ;;  %v2114_v40 = vadd.f32 %v2113_v37, %v2049_v53  ;;  %vm2205_vm12 = vcmp.gt.f32.partialorder %v2176_v16, 0.0  ;;  %v2478_v37 = vld [vmem:[#allocation4 + $0x1a8] sm:$0xff] }
 0x2d2   : > { %v1620_v49 = vpop.f32.mrf.mxu3  ;;  %2501 = vmatpush.msra.mxu0 %v2478_v37 }
 0x2d3   : > { %v4647_v41 = vpop.eup %4646  ;;  %v2246_v48 = vmul.f32 1.442695, %v2221_v34  ;;  %v1621_v63 = vadd.f32 %v6722_v52, %v1620_v49 }
 0x2d4   : > { %v4649_v33 = vpop.eup %4648  ;;  %v4242_v23 = vadd.f32 -1.0, %v4647_v41 }
 0x2d5   : > { %4650 = vpow2.f32 %v2246_v48  ;;  %2703 = vmatmul.f32.gmra.mxu2 %v4649_v33 }
 0x2d6   : > { %4652 = vtanh.f32 %v1621_v63  ;;  %v2178_v20 = vpop.f32.mrf.mxu1  ;;  %v2284_v0 = vsel %vm2204_vm11, %v2173_v43, %v4242_v23 }
 0x2d7   : > { %v2179_v46 = vadd.f32 %v2178_v20, %v2114_v40  ;;  %2351 = vmatmul.f32.gmra.mxu3 %v2284_v0  ;;  %v2055_v20 = vadd.f32 %v6702_v26, %v2054_v13 }
 0x2d8   : > { %v2116_v49 = vpop.f32.mrf.mxu2 }
 0x2d9   : > { %v2222_v57 = vmin.f32 %v2179_v46, 0.0  ;;  %v2117_v48 = vadd.f32 %v2116_v49, %v2052_v10  ;;  %vm2206_vm13 = vcmp.gt.f32.partialorder %v2179_v46, 0.0  ;;  %v2477_v49 = vld [vmem:[#allocation4 + $0x1a0] sm:$0xff] }
 0x2da   : > { %v1623_v36 = vpop.f32.mrf.mxu3  ;;  %2502 = vmatpush.msra.mxu0 %v2477_v49 }
 0x2db   : > { %v4651_v62 = vpop.eup %4650  ;;  %v2248_v47 = vmul.f32 1.442695, %v2222_v57  ;;  %v1624_v34 = vadd.f32 %v6722_v52, %v1623_v36 }
 0x2dc   : > { %v4653_v41 = vpop.eup %4652  ;;  %v4243_v53 = vadd.f32 -1.0, %v4651_v62  ;;  %v2057_v62 = vpop.f32.mrf.mxu0 }
 0x2dd   : > { %4654 = vpow2.f32 %v2248_v47  ;;  %2706 = vmatmul.f32.gmra.mxu2 %v4653_v41 }
 0x2de   : > { %4656 = vtanh.f32 %v1624_v34  ;;  %v2181_v43 = vpop.f32.mrf.mxu1  ;;  %v2285_v63 = vsel %vm2205_vm12, %v2176_v16, %v4243_v53 }
 0x2df   : > { %v2182_v33 = vadd.f32 %v2181_v43, %v2117_v48  ;;  %2354 = vmatmul.f32.gmra.mxu3 %v2285_v63  ;;  %v2058_v43 = vadd.f32 %v6702_v26, %v2057_v62 }
 0x2e0   : > { %v2119_v57 = vpop.f32.mrf.mxu2 }
 0x2e1   : > { %v2223_v23 = vmin.f32 %v2182_v33, 0.0  ;;  %v2120_v47 = vadd.f32 %v2119_v57, %v2055_v20  ;;  %vm2207_vm14 = vcmp.gt.f32.partialorder %v2182_v33, 0.0 }
 0x2e2   : > { %v1626_v40 = vpop.f32.mrf.mxu3 }
 0x2e3   : > { %v4655_v38 = vpop.eup %4654  ;;  %v2250_v0 = vmul.f32 1.442695, %v2223_v23  ;;  %v1627_v25 = vadd.f32 %v6722_v52, %v1626_v40 }
 0x2e4   : > { %v4657_v36 = vpop.eup %4656  ;;  %v4244_v10 = vadd.f32 -1.0, %v4655_v38 }
 0x2e5   : > { %4658 = vpow2.f32 %v2250_v0  ;;  %2709 = vmatmul.f32.gmra.mxu2 %v4657_v36  ;;  %v2060_v0 = vpop.f32.mrf.mxu0 }
 0x2e6   : > { %4660 = vtanh.f32 %v1627_v25  ;;  %v2184_v16 = vpop.f32.mrf.mxu1  ;;  %v2286_v34 = vsel %vm2206_vm13, %v2179_v46, %v4244_v10  ;;  %v2476_v46 = vld [vmem:[#allocation4 + $0x198] sm:$0xff] }
 0x2e7   : > { %v2185_v41 = vadd.f32 %v2184_v16, %v2120_v47  ;;  %2357 = vmatmul.f32.gmra.mxu3 %v2286_v34  ;;  %2503 = vmatpush.msra.mxu0 %v2476_v46  ;;  %v2061_v16 = vadd.f32 %v6702_v26, %v2060_v0 }
 0x2e8   : > { %v2122_v23 = vpop.f32.mrf.mxu2 }
 0x2e9   : > { %v2224_v53 = vmin.f32 %v2185_v41, 0.0  ;;  %v2123_v20 = vadd.f32 %v2122_v23, %v2058_v43  ;;  %vm2208_vm15 = vcmp.gt.f32.partialorder %v2185_v41, 0.0 }
 0x2ea   : > { %v1629_v13 = vpop.f32.mrf.mxu3 }
 0x2eb   : > { %v4659_v48 = vpop.eup %4658  ;;  %v2252_v63 = vmul.f32 1.442695, %v2224_v53  ;;  %v1630_v37 = vadd.f32 %v6722_v52, %v1629_v13 }
 0x2ec   : > { %v4661_v40 = vpop.eup %4660  ;;  %v4245_v38 = vadd.f32 -1.0, %v4659_v48 }
 0x2ed   : > { %4662 = vpow2.f32 %v2252_v63  ;;  %2712 = vmatmul.f32.gmra.mxu2 %v4661_v40  ;;  %v2475_v63 = vld [vmem:[#allocation4 + $0x190] sm:$0xff]  ;;  %v2063_v40 = vpop.f32.mrf.mxu0 }
 0x2ee   : > { %4664 = vtanh.f32 %v1630_v37  ;;  %v2187_v25 = vpop.f32.mrf.mxu1  ;;  %v2287_v57 = vsel %vm2207_vm14, %v2182_v33, %v4245_v38  ;;  %2504 = vmatpush.msra.mxu0 %v2475_v63  ;;  %v2064_v0 = vadd.f32 %v6702_v26, %v2063_v40  ;;  %v2474_v40 = vld [vmem:[#allocation4 + $0x188] sm:$0xff] }
 0x2ef   : > { %v2188_v36 = vadd.f32 %v2187_v25, %v2123_v20  ;;  %2360 = vmatmul.f32.gmra.mxu3 %v2287_v57 }
 0x2f0   : > { %v2125_v53 = vpop.f32.mrf.mxu2  ;;  %2505 = vmatpush.msra.mxu0 %v2474_v40  ;;  %v2764_v40 = vld [vmem:[#allocation4 + $0x2e8] sm:$0xff] }
 0x2f1   : > { %v2225_v10 = vmin.f32 %v2188_v36, 0.0  ;;  %v2126_v43 = vadd.f32 %v2125_v53, %v2061_v16  ;;  %vm2209_vm1 = vcmp.gt.f32.partialorder %v2188_v36, 0.0 }
 0x2f2   : > { %v1632_v62 = vpop.f32.mrf.mxu3 }
 0x2f3   : > { %v4663_v47 = vpop.eup %4662  ;;  %v2254_v34 = vmul.f32 1.442695, %v2225_v10  ;;  %v1633_v49 = vadd.f32 %v6722_v52, %v1632_v62 }
 0x2f4   : > { %v4665_v13 = vpop.eup %4664  ;;  %v4246_v48 = vadd.f32 -1.0, %v4663_v47 }
 0x2f5   : > { %4666 = vpow2.f32 %v2254_v34  ;;  %2715 = vmatmul.f32.gmra.mxu2 %v4665_v13 }
 0x2f6   : > { %4668 = vtanh.f32 %v1633_v49  ;;  %v2190_v33 = vpop.f32.mrf.mxu1  ;;  %v2288_v37 = vsel %vm2208_vm15, %v2185_v41, %v4246_v48 }
 0x2f7   : > { %v2191_v23 = vadd.f32 %v2190_v33, %v2126_v43  ;;  %2363 = vmatmul.f32.gmra.mxu3 %v2288_v37 }
 0x2f8   : > { %v2128_v10 = vpop.f32.mrf.mxu2 }
 0x2f9   : > { %v2226_v38 = vmin.f32 %v2191_v23, 0.0  ;;  %v2129_v16 = vadd.f32 %v2128_v10, %v2064_v0  ;;  %vm2210_vm0 = vcmp.gt.f32.partialorder %v2191_v23, 0.0 }
 0x2fa   : > { %v1635_v20 = vpop.f32.mrf.mxu3 }
 0x2fb   : > { %v4667_v46 = vpop.eup %4666  ;;  %v2256_v25 = vmul.f32 1.442695, %v2226_v38  ;;  %v1636_v57 = vadd.f32 %v6722_v52, %v1635_v20  ;;  %v2473_v38 = vld [vmem:[#allocation4 + $0x180] sm:$0xff] }
 0x2fc   : > { %v4669_v62 = vpop.eup %4668  ;;  %v4247_v47 = vadd.f32 -1.0, %v4667_v46  ;;  %2506 = vmatpush.msra.mxu0 %v2473_v38 }
 0x2fd   : > { %4670 = vpow2.f32 %v2256_v25  ;;  %2718 = vmatmul.f32.gmra.mxu2 %v4669_v62 }
 0x2fe   : > { %4672 = vtanh.f32 %v1636_v57  ;;  %v2193_v41 = vpop.f32.mrf.mxu1  ;;  %v2289_v34 = vsel %vm2209_vm1, %v2188_v36, %v4247_v47  ;;  %v6756_v47 = vld [vmem:[%s7148_s5 + $0x2] ss:$0 sm:$0xff] }
 0x2ff   : > { %v2194_v49 = vadd.f32 %v2193_v41, %v2129_v16  ;;  %2366 = vmatmul.f32.gmra.mxu3 %v2289_v34  ;;  %v2766_v16 = vld [vmem:[#allocation4 + $0x2f8] sm:$0xff] }
 0x300   : > { %2767 = vmatpush.msrb.mxu1 %v2766_v16 }
 0x301   : > { %v2227_v53 = vmin.f32 %v2194_v49, 0.0  ;;  %vm2211_vm2 = vcmp.gt.f32.partialorder %v2194_v49, 0.0 }
 0x302   : > { %v1638_v13 = vpop.f32.mrf.mxu3 }
 0x303   : > { %v4671_v48 = vpop.eup %4670  ;;  %v2258_v43 = vmul.f32 1.442695, %v2227_v53  ;;  %v1639_v26 = vadd.f32 %v6722_v52, %v1638_v13 }
 0x304   : > { %v4673_v63 = vpop.eup %4672  ;;  %v4248_v33 = vadd.f32 -1.0, %v4671_v48  ;;  %v2765_v48 = vld [vmem:[#allocation4 + $0x2f0] sm:$0xff] }
 0x305   : > { %4674 = vpow2.f32 %v2258_v43  ;;  %2721 = vmatmul.f32.gmra.mxu2 %v4673_v63  ;;  %2768 = vmatpush.msrb.mxu1 %v2765_v48 }
 0x306   : > { %4676 = vtanh.f32 %v1639_v26  ;;  %v2290_v37 = vsel %vm2210_vm0, %v2191_v23, %v4248_v33 }
 0x307   : > { %2369 = vmatmul.f32.gmra.mxu3 %v2290_v37  ;;  %2769 = vmatpush.msrb.mxu1 %v2764_v40  ;;  %v2761_v40 = vld [vmem:[#allocation4 + $0x2d0] sm:$0xff] }
 0x30a   : > { %v1641_v36 = vpop.f32.mrf.mxu3 }
 0x30b   : > { %v4675_v20 = vpop.eup %4674  ;;  %v1642_v46 = vadd.f32 %v6722_v52, %v1641_v36 }
 0x30c   : > { %v4677_v0 = vpop.eup %4676  ;;  %v4249_v25 = vadd.f32 -1.0, %v4675_v20 }
 0x30d   : > { %4678 = vtanh.f32 %v1642_v46  ;;  %2724 = vmatmul.f32.gmra.mxu2 %v4677_v0 }
 0x30e   : > { %v2291_v57 = vsel %vm2211_vm2, %v2194_v49, %v4249_v25 }
 0x30f   : > { %2372 = vmatmul.f32.gmra.mxu3 %v2291_v57 }
 0x312   : > { %v1644_v10 = vpop.f32.mrf.mxu3 }
 0x313   : > { %v4679_v62 = vpop.eup %4678  ;;  %v1645_v23 = vadd.f32 %v6722_v52, %v1644_v10  ;;  %v2763_v10 = vld [vmem:[#allocation4 + $0x2e0] sm:$0xff] }
 0x314   : > { %2770 = vmatpush.msrb.mxu1 %v2763_v10  ;;  %v2760_v10 = vld [vmem:[#allocation4 + $0x2c8] sm:$0xff] }
 0x315   : > { %4680 = vtanh.f32 %v1645_v23  ;;  %2727 = vmatmul.f32.gmra.mxu2 %v4679_v62 }
 0x31a   : > { %v2328_v41 = vpop.f32.mrf.mxu3 }
 0x31b   : > { %v4681_v34 = vpop.eup %4680  ;;  %v2329_v53 = vadd.f32 %v6756_v47, %v2328_v41 }
 0x31d   : > { %v2392_v13 = vmin.f32 %v2329_v53, 0.0  ;;  %2730 = vmatmul.f32.gmra.mxu2 %v4681_v34  ;;  %vm2376_vm3 = vcmp.gt.f32.partialorder %v2329_v53, 0.0 }
 0x31f   : > { %v2408_v49 = vmul.f32 1.442695, %v2392_v13 }
 0x321   : > { %4682 = vpow2.f32 %v2408_v49  ;;  %v2762_v49 = vld [vmem:[#allocation4 + $0x2d8] sm:$0xff] }
 0x322   : > { %v2331_v43 = vpop.f32.mrf.mxu3  ;;  %2771 = vmatpush.msrb.mxu1 %v2762_v49  ;;  %v2759_v49 = vld [vmem:[#allocation4 + $0x2c0] sm:$0xff] }
 0x323   : > { %v2332_v52 = vadd.f32 %v6756_v47, %v2331_v43 }
 0x324   : > { %2772 = vmatpush.msrb.mxu1 %v2761_v40  ;;  %v2758_v40 = vld [vmem:[#allocation4 + $0x2b8] sm:$0xff] }
 0x325   : > { %v2393_v26 = vmin.f32 %v2332_v52, 0.0  ;;  %vm2377_vm4 = vcmp.gt.f32.partialorder %v2332_v52, 0.0 }
 0x326   : > { %2773 = vmatpush.msrb.mxu1 %v2760_v10  ;;  %v2757_v10 = vld [vmem:[#allocation4 + $0x2b0] sm:$0xff] }
 0x327   : > { %v4683_v63 = vpop.eup %4682  ;;  %v2410_v33 = vmul.f32 1.442695, %v2393_v26 }
 0x328   : > { %v4250_v37 = vadd.f32 -1.0, %v4683_v63  ;;  %2774 = vmatpush.msrb.mxu1 %v2759_v49  ;;  %v2756_v49 = vld [vmem:[#allocation4 + $0x2a8] sm:$0xff] }
 0x329   : > { %4684 = vpow2.f32 %v2410_v33 }
 0x32a   : > { %v2334_v38 = vpop.f32.mrf.mxu3  ;;  %v2456_v36 = vsel %vm2376_vm3, %v2329_v53, %v4250_v37  ;;  %2775 = vmatpush.msrb.mxu1 %v2758_v40  ;;  %v2755_v40 = vld [vmem:[#allocation4 + $0x2a0] sm:$0xff] }
 0x32b   : > { %v2335_v20 = vadd.f32 %v6756_v47, %v2334_v38  ;;  %2507 = vmatmul.f32.vlgmr.msra.gmra.mxu0 %v2456_v36 }
 0x32c   : > { %2776 = vmatpush.msrb.mxu1 %v2757_v10  ;;  %v2754_v10 = vld [vmem:[#allocation4 + $0x298] sm:$0xff] }
 0x32d   : > { %v2394_v46 = vmin.f32 %v2335_v20, 0.0  ;;  %vm2378_vm5 = vcmp.gt.f32.partialorder %v2335_v20, 0.0 }
 0x32e   : > { %2777 = vmatpush.msrb.mxu1 %v2756_v49  ;;  %v2753_v49 = vld [vmem:[#allocation4 + $0x290] sm:$0xff] }
 0x32f   : > { %v4685_v0 = vpop.eup %4684  ;;  %v2412_v25 = vmul.f32 1.442695, %v2394_v46 }
 0x330   : > { %v4251_v57 = vadd.f32 -1.0, %v4685_v0  ;;  %2778 = vmatpush.msrb.mxu1 %v2755_v40 }
 0x331   : > { %4686 = vpow2.f32 %v2412_v25 }
 0x332   : > { %v2337_v62 = vpop.f32.mrf.mxu3  ;;  %v2457_v23 = vsel %vm2377_vm4, %v2332_v52, %v4251_v57  ;;  %2779 = vmatpush.msrb.mxu1 %v2754_v10 }
 0x333   : > { %v2338_v16 = vadd.f32 %v6756_v47, %v2337_v62  ;;  %2510 = vmatmul.f32.gmra.mxu0 %v2457_v23 }
 0x334   : > { %2780 = vmatpush.msrb.mxu1 %v2753_v49 }
 0x335   : > { %v2395_v41 = vmin.f32 %v2338_v16, 0.0  ;;  %vm2379_vm6 = vcmp.gt.f32.partialorder %v2338_v16, 0.0 }
 0x337   : > { %v4687_v34 = vpop.eup %4686  ;;  %v2414_v53 = vmul.f32 1.442695, %v2395_v41 }
 0x338   : > { %v4252_v13 = vadd.f32 -1.0, %v4687_v34 }
 0x339   : > { %4688 = vpow2.f32 %v2414_v53 }
 0x33a   : > { %v2340_v48 = vpop.f32.mrf.mxu3  ;;  %v2458_v43 = vsel %vm2378_vm5, %v2335_v20, %v4252_v13 }
 0x33b   : > { %v2341_v26 = vadd.f32 %v6756_v47, %v2340_v48  ;;  %2513 = vmatmul.f32.gmra.mxu0 %v2458_v43 }
 0x33d   : > { %v2396_v63 = vmin.f32 %v2341_v26, 0.0  ;;  %vm2380_vm7 = vcmp.gt.f32.partialorder %v2341_v26, 0.0 }
 0x33f   : > { %v4689_v33 = vpop.eup %4688  ;;  %v2416_v52 = vmul.f32 1.442695, %v2396_v63 }
 0x340   : > { %v4253_v37 = vadd.f32 -1.0, %v4689_v33 }
 0x341   : > { %4690 = vpow2.f32 %v2416_v52 }
 0x342   : > { %v2343_v38 = vpop.f32.mrf.mxu3  ;;  %v2459_v36 = vsel %vm2379_vm6, %v2338_v16, %v4253_v37 }
 0x343   : > { %v2344_v46 = vadd.f32 %v6756_v47, %v2343_v38  ;;  %2516 = vmatmul.f32.gmra.mxu0 %v2459_v36 }
 0x345   : > { %v2397_v0 = vmin.f32 %v2344_v46, 0.0  ;;  %vm2381_vm8 = vcmp.gt.f32.partialorder %v2344_v46, 0.0 }
 0x347   : > { %v4691_v25 = vpop.eup %4690  ;;  %v2418_v20 = vmul.f32 1.442695, %v2397_v0 }
 0x348   : > { %v4254_v57 = vadd.f32 -1.0, %v4691_v25 }
 0x349   : > { %4692 = vpow2.f32 %v2418_v20 }
 0x34a   : > { %v2346_v62 = vpop.f32.mrf.mxu3  ;;  %v2460_v23 = vsel %vm2380_vm7, %v2341_v26, %v4254_v57 }
 0x34b   : > { %v2347_v41 = vadd.f32 %v6756_v47, %v2346_v62  ;;  %2519 = vmatmul.f32.gmra.mxu0 %v2460_v23 }
 0x34d   : > { %v2398_v34 = vmin.f32 %v2347_v41, 0.0  ;;  %vm2382_vm9 = vcmp.gt.f32.partialorder %v2347_v41, 0.0 }
 0x34f   : > { %v4693_v53 = vpop.eup %4692  ;;  %v2420_v16 = vmul.f32 1.442695, %v2398_v34 }
 0x350   : > { %v4255_v13 = vadd.f32 -1.0, %v4693_v53 }
 0x351   : > { %4694 = vpow2.f32 %v2420_v16 }
 0x352   : > { %v2349_v48 = vpop.f32.mrf.mxu3  ;;  %v2461_v43 = vsel %vm2381_vm8, %v2344_v46, %v4255_v13 }
 0x353   : > { %v2350_v63 = vadd.f32 %v6756_v47, %v2349_v48  ;;  %2522 = vmatmul.f32.gmra.mxu0 %v2461_v43 }
 0x355   : > { %v2399_v33 = vmin.f32 %v2350_v63, 0.0  ;;  %vm2383_vm10 = vcmp.gt.f32.partialorder %v2350_v63, 0.0 }
 0x357   : > { %v4695_v52 = vpop.eup %4694  ;;  %v2422_v26 = vmul.f32 1.442695, %v2399_v33 }
 0x358   : > { %v4256_v37 = vadd.f32 -1.0, %v4695_v52 }
 0x359   : > { %4696 = vpow2.f32 %v2422_v26 }
 0x35a   : > { %v2352_v38 = vpop.f32.mrf.mxu3  ;;  %v2462_v36 = vsel %vm2382_vm9, %v2347_v41, %v4256_v37 }
 0x35b   : > { %v2353_v0 = vadd.f32 %v6756_v47, %v2352_v38  ;;  %2525 = vmatmul.f32.gmra.mxu0 %v2462_v36 }
 0x35d   : > { %v2400_v25 = vmin.f32 %v2353_v0, 0.0  ;;  %vm2384_vm11 = vcmp.gt.f32.partialorder %v2353_v0, 0.0 }
 0x35f   : > { %v4697_v20 = vpop.eup %4696  ;;  %v2424_v46 = vmul.f32 1.442695, %v2400_v25 }
 0x360   : > { %v4257_v57 = vadd.f32 -1.0, %v4697_v20 }
 0x361   : > { %4698 = vpow2.f32 %v2424_v46 }
 0x362   : > { %v2355_v62 = vpop.f32.mrf.mxu3  ;;  %v2463_v23 = vsel %vm2383_vm10, %v2350_v63, %v4257_v57 }
 0x363   : > { %v2356_v34 = vadd.f32 %v6756_v47, %v2355_v62  ;;  %2528 = vmatmul.f32.gmra.mxu0 %v2463_v23 }
 0x365   : > { %v2401_v53 = vmin.f32 %v2356_v34, 0.0  ;;  %vm2385_vm12 = vcmp.gt.f32.partialorder %v2356_v34, 0.0 }
 0x367   : > { %v4699_v16 = vpop.eup %4698  ;;  %v2426_v41 = vmul.f32 1.442695, %v2401_v53 }
 0x368   : > { %v4258_v13 = vadd.f32 -1.0, %v4699_v16 }
 0x369   : > { %4700 = vpow2.f32 %v2426_v41 }
 0x36a   : > { %v2358_v48 = vpop.f32.mrf.mxu3  ;;  %v2464_v43 = vsel %vm2384_vm11, %v2353_v0, %v4258_v13 }
 0x36b   : > { %v2359_v33 = vadd.f32 %v6756_v47, %v2358_v48  ;;  %2531 = vmatmul.f32.gmra.mxu0 %v2464_v43 }
 0x36d   : > { %v2402_v52 = vmin.f32 %v2359_v33, 0.0  ;;  %vm2386_vm13 = vcmp.gt.f32.partialorder %v2359_v33, 0.0 }
 0x36f   : > { %v4701_v26 = vpop.eup %4700  ;;  %v2428_v63 = vmul.f32 1.442695, %v2402_v52 }
 0x370   : > { %v4259_v37 = vadd.f32 -1.0, %v4701_v26 }
 0x371   : > { %4702 = vpow2.f32 %v2428_v63 }
 0x372   : > { %v2361_v38 = vpop.f32.mrf.mxu3  ;;  %v2465_v36 = vsel %vm2385_vm12, %v2356_v34, %v4259_v37 }
 0x373   : > { %v2362_v25 = vadd.f32 %v6756_v47, %v2361_v38  ;;  %2534 = vmatmul.f32.gmra.mxu0 %v2465_v36 }
 0x375   : > { %v2403_v20 = vmin.f32 %v2362_v25, 0.0  ;;  %vm2387_vm14 = vcmp.gt.f32.partialorder %v2362_v25, 0.0 }
 0x377   : > { %v4703_v46 = vpop.eup %4702  ;;  %v2430_v0 = vmul.f32 1.442695, %v2403_v20 }
 0x378   : > { %v4260_v57 = vadd.f32 -1.0, %v4703_v46 }
 0x379   : > { %4704 = vpow2.f32 %v2430_v0 }
 0x37a   : > { %v2364_v62 = vpop.f32.mrf.mxu3  ;;  %v2466_v23 = vsel %vm2386_vm13, %v2359_v33, %v4260_v57 }
 0x37b   : > { %v2365_v53 = vadd.f32 %v6756_v47, %v2364_v62  ;;  %2537 = vmatmul.f32.gmra.mxu0 %v2466_v23 }
 0x37d   : > { %v2404_v16 = vmin.f32 %v2365_v53, 0.0  ;;  %vm2388_vm15 = vcmp.gt.f32.partialorder %v2365_v53, 0.0 }
 0x37f   : > { %v4705_v41 = vpop.eup %4704  ;;  %v2432_v34 = vmul.f32 1.442695, %v2404_v16  ;;  %v2752_v16 = vld [vmem:[#allocation4 + $0x288] sm:$0xff] }
 0x380   : > { %v4261_v13 = vadd.f32 -1.0, %v4705_v41  ;;  %2781 = vmatpush.msrb.mxu1 %v2752_v16 }
 0x381   : > { %4706 = vpow2.f32 %v2432_v34 }
 0x382   : > { %v2367_v48 = vpop.f32.mrf.mxu3  ;;  %v2467_v43 = vsel %vm2387_vm14, %v2362_v25, %v4261_v13 }
 0x383   : > { %v2368_v52 = vadd.f32 %v6756_v47, %v2367_v48  ;;  %2540 = vmatmul.f32.gmra.mxu0 %v2467_v43 }
 0x385   : > { %v2405_v26 = vmin.f32 %v2368_v52, 0.0  ;;  %vm2389_vm1 = vcmp.gt.f32.partialorder %v2368_v52, 0.0 }
 0x387   : > { %v4707_v63 = vpop.eup %4706  ;;  %v2434_v33 = vmul.f32 1.442695, %v2405_v26 }
 0x388   : > { %v4262_v37 = vadd.f32 -1.0, %v4707_v63 }
 0x389   : > { %4708 = vpow2.f32 %v2434_v33 }
 0x38a   : > { %v2370_v40 = vpop.f32.mrf.mxu3  ;;  %v2468_v38 = vsel %vm2388_vm15, %v2365_v53, %v4262_v37  ;;  %v2751_v53 = vld [vmem:[#allocation4 + $0x280] sm:$0xff] }
 0x38b   : > { %v2371_v36 = vadd.f32 %v6756_v47, %v2370_v40  ;;  %2543 = vmatmul.f32.gmra.mxu0 %v2468_v38  ;;  %2782 = vmatpush.msrb.mxu1 %v2751_v53  ;;  %v3500_v38 = vld [vmem:[#allocation4 + $0x4f8] sm:$0xff] }
 0x38d   : > { %v2406_v20 = vmin.f32 %v2371_v36, 0.0  ;;  %vm2390_vm0 = vcmp.gt.f32.partialorder %v2371_v36, 0.0  ;;  %3503 = vmatpush.msra.mxu1 %v3500_v38 }
 0x38f   : > { %v4709_v46 = vpop.eup %4708  ;;  %v2436_v0 = vmul.f32 1.442695, %v2406_v20 }
 0x390   : > { %v4263_v57 = vadd.f32 -1.0, %v4709_v46 }
 0x391   : > { %4710 = vpow2.f32 %v2436_v0 }
 0x392   : > { %v2373_v25 = vpop.f32.mrf.mxu3  ;;  %v2469_v10 = vsel %vm2389_vm1, %v2368_v52, %v4263_v57  ;;  %v2960_v52 = vld [vmem:[#allocation4 + $0x378] sm:$0xff] }
 0x393   : > { %v2374_v62 = vadd.f32 %v6756_v47, %v2373_v25  ;;  %2546 = vmatmul.f32.gmra.mxu0 %v2469_v10  ;;  %v6777_v47 = vld [vmem:[%s7148_s5 + $0x3] ss:$0 sm:$0xff]  ;;  %2963 = vmatpush.msrb.mxu3 %v2960_v52 }
 0x395   : > { %v2407_v23 = vmin.f32 %v2374_v62, 0.0  ;;  %vm2391_vm2 = vcmp.gt.f32.partialorder %v2374_v62, 0.0 }
 0x397   : > { %v4711_v41 = vpop.eup %4710  ;;  %v2438_v34 = vmul.f32 1.442695, %v2407_v23  ;;  %v2958_v23 = vld [vmem:[#allocation4 + $0x368] sm:$0xff] }
 0x398   : > { %v4264_v13 = vadd.f32 -1.0, %v4711_v41 }
 0x399   : > { %4712 = vpow2.f32 %v2438_v34 }
 0x39a   : > { %v2470_v49 = vsel %vm2390_vm0, %v2371_v36, %v4264_v13  ;;  %v2959_v36 = vld [vmem:[#allocation4 + $0x370] sm:$0xff] }
 0x39b   : > { %2549 = vmatmul.f32.gmra.mxu0 %v2470_v49  ;;  %2964 = vmatpush.msrb.mxu3 %v2959_v36 }
 0x39d   : > { %2965 = vmatpush.msrb.mxu3 %v2958_v23 }
 0x39f   : > { %v4713_v48 = vpop.eup %4712 }
 0x3a0   : > { %v4265_v43 = vadd.f32 -1.0, %v4713_v48 }
 0x3a2   : > { %v2471_v26 = vsel %vm2391_vm2, %v2374_v62, %v4265_v43  ;;  %v3499_v62 = vld [vmem:[#allocation4 + $0x4f0] sm:$0xff]  ;;  %v3498_v43 = vld [vmem:[#allocation4 + $0x4e8] sm:$0xff] }
 0x3a3   : > { %2552 = vmatmul.f32.gmra.mxu0 %v2471_v26  ;;  %3504 = vmatpush.msra.mxu1 %v3499_v62  ;;  %v2957_v26 = vld [vmem:[#allocation4 + $0x360] sm:$0xff] }
 0x3a4   : > { %2966 = vmatpush.msrb.mxu3 %v2957_v26 }
 0x3a5   : > { %3505 = vmatpush.msra.mxu1 %v3498_v43 }
 0x3a8   : > { %v2508_v63 = vpop.f32.mrf.mxu0 }
 0x3a9   : > { %v2509_v33 = vadd.f32 %v6777_v47, %v2508_v63 }
 0x3ab   : > { %v2572_v37 = vmin.f32 %v2509_v33, 0.0  ;;  %vm2556_vm3 = vcmp.gt.f32.partialorder %v2509_v33, 0.0 }
 0x3ad   : > { %v2588_v40 = vmul.f32 1.442695, %v2572_v37 }
 0x3af   : > { %4714 = vpow2.f32 %v2588_v40 }
 0x3b0   : > { %v2511_v20 = vpop.f32.mrf.mxu0 }
 0x3b1   : > { %v2512_v46 = vadd.f32 %v6777_v47, %v2511_v20  ;;  %v3497_v20 = vld [vmem:[#allocation4 + $0x4e0] sm:$0xff] }
 0x3b2   : > { %3506 = vmatpush.msra.mxu1 %v3497_v20 }
 0x3b3   : > { %v2573_v0 = vmin.f32 %v2512_v46, 0.0  ;;  %vm2557_vm4 = vcmp.gt.f32.partialorder %v2512_v46, 0.0 }
 0x3b5   : > { %v4715_v57 = vpop.eup %4714  ;;  %v2590_v25 = vmul.f32 1.442695, %v2573_v0  ;;  %v2956_v0 = vld [vmem:[#allocation4 + $0x358] sm:$0xff] }
 0x3b6   : > { %v4266_v10 = vadd.f32 -1.0, %v4715_v57  ;;  %2967 = vmatpush.msrb.mxu3 %v2956_v0 }
 0x3b7   : > { %4716 = vpow2.f32 %v2590_v25 }
 0x3b8   : > { %v2514_v16 = vpop.f32.mrf.mxu0  ;;  %v2636_v41 = vsel %vm2556_vm3, %v2509_v33, %v4266_v10 }
 0x3b9   : > { %v2515_v34 = vadd.f32 %v6777_v47, %v2514_v16  ;;  %2783 = vmatmul.f32.vlgmr.msrb.gmra.mxu1 %v2636_v41  ;;  %v3496_v41 = vld [vmem:[#allocation4 + $0x4d8] sm:$0xff] }
 0x3ba   : > { %3507 = vmatpush.msra.mxu1 %v3496_v41 }
 0x3bb   : > { %v2574_v53 = vmin.f32 %v2515_v34, 0.0  ;;  %vm2558_vm5 = vcmp.gt.f32.partialorder %v2515_v34, 0.0 }
 0x3bd   : > { %v4717_v13 = vpop.eup %4716  ;;  %v2592_v49 = vmul.f32 1.442695, %v2574_v53  ;;  %v2955_v53 = vld [vmem:[#allocation4 + $0x350] sm:$0xff] }
 0x3be   : > { %v4267_v48 = vadd.f32 -1.0, %v4717_v13  ;;  %2968 = vmatpush.msrb.mxu3 %v2955_v53 }
 0x3bf   : > { %4718 = vpow2.f32 %v2592_v49 }
 0x3c0   : > { %v2517_v52 = vpop.f32.mrf.mxu0  ;;  %v2637_v63 = vsel %vm2557_vm4, %v2512_v46, %v4267_v48 }
 0x3c1   : > { %v2518_v37 = vadd.f32 %v6777_v47, %v2517_v52  ;;  %2786 = vmatmul.f32.gmra.mxu1 %v2637_v63  ;;  %v3495_v63 = vld [vmem:[#allocation4 + $0x4d0] sm:$0xff] }
 0x3c2   : > { %3508 = vmatpush.msra.mxu1 %v3495_v63 }
 0x3c3   : > { %v2575_v33 = vmin.f32 %v2518_v37, 0.0  ;;  %vm2559_vm6 = vcmp.gt.f32.partialorder %v2518_v37, 0.0 }
 0x3c5   : > { %v4719_v40 = vpop.eup %4718  ;;  %v2594_v38 = vmul.f32 1.442695, %v2575_v33  ;;  %v2954_v33 = vld [vmem:[#allocation4 + $0x348] sm:$0xff] }
 0x3c6   : > { %v4268_v36 = vadd.f32 -1.0, %v4719_v40  ;;  %2969 = vmatpush.msrb.mxu3 %v2954_v33 }
 0x3c7   : > { %4720 = vpow2.f32 %v2594_v38 }
 0x3c8   : > { %v2520_v57 = vpop.f32.mrf.mxu0  ;;  %v2638_v25 = vsel %vm2558_vm5, %v2515_v34, %v4268_v36 }
 0x3c9   : > { %v2521_v10 = vadd.f32 %v6777_v47, %v2520_v57  ;;  %2789 = vmatmul.f32.gmra.mxu1 %v2638_v25  ;;  %v3494_v25 = vld [vmem:[#allocation4 + $0x4c8] sm:$0xff] }
 0x3ca   : > { %3509 = vmatpush.msra.mxu1 %v3494_v25 }
 0x3cb   : > { %v2576_v46 = vmin.f32 %v2521_v10, 0.0  ;;  %vm2560_vm7 = vcmp.gt.f32.partialorder %v2521_v10, 0.0 }
 0x3cd   : > { %v4721_v62 = vpop.eup %4720  ;;  %v2596_v23 = vmul.f32 1.442695, %v2576_v46  ;;  %v2953_v46 = vld [vmem:[#allocation4 + $0x340] sm:$0xff] }
 0x3ce   : > { %v4269_v16 = vadd.f32 -1.0, %v4721_v62  ;;  %2970 = vmatpush.msrb.mxu3 %v2953_v46 }
 0x3cf   : > { %4722 = vpow2.f32 %v2596_v23 }
 0x3d0   : > { %v2523_v13 = vpop.f32.mrf.mxu0  ;;  %v2639_v49 = vsel %vm2559_vm6, %v2518_v37, %v4269_v16 }
 0x3d1   : > { %v2524_v48 = vadd.f32 %v6777_v47, %v2523_v13  ;;  %2792 = vmatmul.f32.gmra.mxu1 %v2639_v49  ;;  %v3493_v49 = vld [vmem:[#allocation4 + $0x4c0] sm:$0xff] }
 0x3d2   : > { %3510 = vmatpush.msra.mxu1 %v3493_v49 }
 0x3d3   : > { %v2577_v34 = vmin.f32 %v2524_v48, 0.0  ;;  %vm2561_vm8 = vcmp.gt.f32.partialorder %v2524_v48, 0.0 }
 0x3d5   : > { %v4723_v43 = vpop.eup %4722  ;;  %v2598_v26 = vmul.f32 1.442695, %v2577_v34  ;;  %v2952_v34 = vld [vmem:[#allocation4 + $0x338] sm:$0xff] }
 0x3d6   : > { %v4270_v52 = vadd.f32 -1.0, %v4723_v43  ;;  %2971 = vmatpush.msrb.mxu3 %v2952_v34 }
 0x3d7   : > { %4724 = vpow2.f32 %v2598_v26 }
 0x3d8   : > { %v2526_v40 = vpop.f32.mrf.mxu0  ;;  %v2640_v38 = vsel %vm2560_vm7, %v2521_v10, %v4270_v52 }
 0x3d9   : > { %v2527_v36 = vadd.f32 %v6777_v47, %v2526_v40  ;;  %2795 = vmatmul.f32.gmra.mxu1 %v2640_v38  ;;  %v3492_v38 = vld [vmem:[#allocation4 + $0x4b8] sm:$0xff] }
 0x3da   : > { %3511 = vmatpush.msra.mxu1 %v3492_v38 }
 0x3db   : > { %v2578_v37 = vmin.f32 %v2527_v36, 0.0  ;;  %vm2562_vm9 = vcmp.gt.f32.partialorder %v2527_v36, 0.0 }
 0x3dd   : > { %v4725_v20 = vpop.eup %4724  ;;  %v2600_v0 = vmul.f32 1.442695, %v2578_v37  ;;  %v2951_v37 = vld [vmem:[#allocation4 + $0x330] sm:$0xff] }
 0x3de   : > { %v4271_v57 = vadd.f32 -1.0, %v4725_v20  ;;  %2972 = vmatpush.msrb.mxu3 %v2951_v37 }
 0x3df   : > { %4726 = vpow2.f32 %v2600_v0 }
 0x3e0   : > { %v2529_v62 = vpop.f32.mrf.mxu0  ;;  %v2641_v23 = vsel %vm2561_vm8, %v2524_v48, %v4271_v57 }
 0x3e1   : > { %v2530_v16 = vadd.f32 %v6777_v47, %v2529_v62  ;;  %2798 = vmatmul.f32.gmra.mxu1 %v2641_v23  ;;  %v3491_v23 = vld [vmem:[#allocation4 + $0x4b0] sm:$0xff] }
 0x3e2   : > { %3512 = vmatpush.msra.mxu1 %v3491_v23  ;;  %v2947_v23 = vld [vmem:[#allocation4 + $0x310] sm:$0xff] }
 0x3e3   : > { %v2579_v10 = vmin.f32 %v2530_v16, 0.0  ;;  %vm2563_vm10 = vcmp.gt.f32.partialorder %v2530_v16, 0.0 }
 0x3e5   : > { %v4727_v41 = vpop.eup %4726  ;;  %v2602_v53 = vmul.f32 1.442695, %v2579_v10  ;;  %v2950_v10 = vld [vmem:[#allocation4 + $0x328] sm:$0xff] }
 0x3e6   : > { %v4272_v13 = vadd.f32 -1.0, %v4727_v41  ;;  %2973 = vmatpush.msrb.mxu3 %v2950_v10 }
 0x3e7   : > { %4728 = vpow2.f32 %v2602_v53 }
 0x3e8   : > { %v2532_v43 = vpop.f32.mrf.mxu0  ;;  %v2642_v26 = vsel %vm2562_vm9, %v2527_v36, %v4272_v13 }
 0x3e9   : > { %v2533_v52 = vadd.f32 %v6777_v47, %v2532_v43  ;;  %2801 = vmatmul.f32.gmra.mxu1 %v2642_v26  ;;  %v3490_v26 = vld [vmem:[#allocation4 + $0x4a8] sm:$0xff] }
 0x3ea   : > { %3513 = vmatpush.msra.mxu1 %v3490_v26 }
 0x3eb   : > { %v2580_v48 = vmin.f32 %v2533_v52, 0.0  ;;  %vm2564_vm11 = vcmp.gt.f32.partialorder %v2533_v52, 0.0 }
 0x3ed   : > { %v4729_v63 = vpop.eup %4728  ;;  %v2604_v33 = vmul.f32 1.442695, %v2580_v48  ;;  %v2949_v48 = vld [vmem:[#allocation4 + $0x320] sm:$0xff] }
 0x3ee   : > { %v4273_v40 = vadd.f32 -1.0, %v4729_v63  ;;  %2974 = vmatpush.msrb.mxu3 %v2949_v48  ;;  %v6793_v48 = vpop.f32.mrf.mxu2 }
 0x3ef   : > { %4730 = vpow2.f32 %v2604_v33 }
 0x3f0   : > { %v2535_v20 = vpop.f32.mrf.mxu0  ;;  %v2643_v0 = vsel %vm2563_vm10, %v2530_v16, %v4273_v40 }
 0x3f1   : > { %v2536_v57 = vadd.f32 %v6777_v47, %v2535_v20  ;;  %2804 = vmatmul.f32.gmra.mxu1 %v2643_v0  ;;  %v3489_v0 = vld [vmem:[#allocation4 + $0x4a0] sm:$0xff] }
 0x3f2   : > { %3514 = vmatpush.msra.mxu1 %v3489_v0 }
 0x3f3   : > { %v2581_v36 = vmin.f32 %v2536_v57, 0.0  ;;  %vm2565_vm12 = vcmp.gt.f32.partialorder %v2536_v57, 0.0 }
 0x3f5   : > { %v4731_v25 = vpop.eup %4730  ;;  %v2606_v46 = vmul.f32 1.442695, %v2581_v36  ;;  %v2948_v36 = vld [vmem:[#allocation4 + $0x318] sm:$0xff] }
 0x3f6   : > { %v4274_v62 = vadd.f32 -1.0, %v4731_v25  ;;  %2975 = vmatpush.msrb.mxu3 %v2948_v36  ;;  %v3485_v36 = vld [vmem:[#allocation4 + $0x480] sm:$0xff] }
 0x3f7   : > { %4732 = vpow2.f32 %v2606_v46 }
 0x3f8   : > { %v2538_v41 = vpop.f32.mrf.mxu0  ;;  %v2644_v53 = vsel %vm2564_vm11, %v2533_v52, %v4274_v62  ;;  %2976 = vmatpush.msrb.mxu3 %v2947_v23 }
 0x3f9   : > { %v2539_v13 = vadd.f32 %v6777_v47, %v2538_v41  ;;  %2807 = vmatmul.f32.gmra.mxu1 %v2644_v53 }
 0x3fb   : > { %v2582_v16 = vmin.f32 %v2539_v13, 0.0  ;;  %vm2566_vm13 = vcmp.gt.f32.partialorder %v2539_v13, 0.0 }
 0x3fd   : > { %v4733_v49 = vpop.eup %4732  ;;  %v2608_v34 = vmul.f32 1.442695, %v2582_v16 }
 0x3fe   : > { %v4275_v43 = vadd.f32 -1.0, %v4733_v49 }
 0x3ff   : > { %4734 = vpow2.f32 %v2608_v34 }
 0x400   : > { %v2541_v63 = vpop.f32.mrf.mxu0  ;;  %v2645_v33 = vsel %vm2565_vm12, %v2536_v57, %v4275_v43  ;;  %v3488_v57 = vld [vmem:[#allocation4 + $0x498] sm:$0xff] }
 0x401   : > { %v2542_v40 = vadd.f32 %v6777_v47, %v2541_v63  ;;  %2810 = vmatmul.f32.gmra.mxu1 %v2645_v33 }
 0x402   : > { %3515 = vmatpush.msra.mxu1 %v3488_v57 }
 0x403   : > { %v2583_v52 = vmin.f32 %v2542_v40, 0.0  ;;  %vm2567_vm14 = vcmp.gt.f32.partialorder %v2542_v40, 0.0 }
 0x405   : > { %v4735_v38 = vpop.eup %4734  ;;  %v2610_v37 = vmul.f32 1.442695, %v2583_v52 }
 0x406   : > { %v4276_v20 = vadd.f32 -1.0, %v4735_v38  ;;  %v3486_v38 = vld [vmem:[#allocation4 + $0x488] sm:$0xff] }
 0x407   : > { %4736 = vpow2.f32 %v2610_v37  ;;  %v4956_v37 = vld [vmem:[%s7145_s2] sm:$0x3f] }
 0x408   : > { %v2544_v25 = vpop.f32.mrf.mxu0  ;;  %v2646_v46 = vsel %vm2566_vm13, %v2539_v13, %v4276_v20  ;;  %v3487_v13 = vld [vmem:[#allocation4 + $0x490] sm:$0xff]  ;;  %v6798_v20 = vperm.slane %v4956_v37, 5 }
 0x409   : > { %v2545_v62 = vadd.f32 %v6777_v47, %v2544_v25  ;;  %2813 = vmatmul.f32.gmra.mxu1 %v2646_v46 }
 0x40a   : > { %3516 = vmatpush.msra.mxu1 %v3487_v13  ;;  %v1176_v46 = vadd.f32 %v6074_v14, %v6798_v20  ;;  %v1179_v13 = vadd.f32 %v6113_v1, %v6798_v20  ;;  %v1182_v1 = vadd.f32 %v6152_v4, %v6798_v20  ;;  %v7274_v4 = vld [vmem:[#allocation10_spill] sm:$0xff] }
 0x40b   : > { %v2584_v10 = vmin.f32 %v2545_v62, 0.0  ;;  %vm2568_vm15 = vcmp.gt.f32.partialorder %v2545_v62, 0.0 }
 0x40c   : > { %3517 = vmatpush.msra.mxu1 %v3486_v38  ;;  %v2945_v38 = vld [vmem:[#allocation4 + $0x300] sm:$0xff] }
 0x40d   : > { %v4737_v41 = vpop.eup %4736  ;;  %v2612_v53 = vmul.f32 1.442695, %v2584_v10 }
 0x40e   : > { %v4277_v16 = vadd.f32 -1.0, %v4737_v41  ;;  %3518 = vmatpush.msra.mxu1 %v3485_v36  ;;  %v6803_v41 = vpop.f32.mrf.mxu2 }
 0x40f   : > { %4738 = vpow2.f32 %v2612_v53 }
 0x410   : > { %v2547_v49 = vpop.f32.mrf.mxu0  ;;  %v2647_v34 = vsel %vm2567_vm14, %v2542_v40, %v4277_v16  ;;  %v1241_v16 = vadd.f32 %v6324_v35, %v1176_v46  ;;  %v1244_v35 = vadd.f32 %v6354_v11, %v1179_v13 }
 0x411   : > { %v2548_v43 = vadd.f32 %v6777_v47, %v2547_v49  ;;  %2816 = vmatmul.f32.gmra.mxu1 %v2647_v34 }
 0x412   : > { %v3405_v36 = vmin.f32 %v1244_v35, 0.0  ;;  %vm3388_vm3 = vcmp.gt.f32.partialorder %v1241_v16, 0.0  ;;  %vm3389_vm4 = vcmp.gt.f32.partialorder %v1244_v35, 0.0 }
 0x413   : > { %v2585_v26 = vmin.f32 %v2548_v43, 0.0  ;;  %vm2569_vm1 = vcmp.gt.f32.partialorder %v2548_v43, 0.0 }
 0x415   : > { %v4739_v63 = vpop.eup %4738  ;;  %v2614_v33 = vmul.f32 1.442695, %v2585_v26  ;;  %v3404_v26 = vmin.f32 %v1241_v16, 0.0 }
 0x416   : > { %v4278_v52 = vadd.f32 -1.0, %v4739_v63  ;;  %v2946_v63 = vld [vmem:[#allocation4 + $0x308] sm:$0xff] }
 0x417   : > { %4740 = vpow2.f32 %v2614_v33  ;;  %2977 = vmatpush.msrb.mxu3 %v2946_v63 }
 0x418   : > { %v2550_v40 = vpop.f32.mrf.mxu0  ;;  %v2648_v0 = vsel %vm2568_vm15, %v2545_v62, %v4278_v52 }
 0x419   : > { %v2551_v25 = vadd.f32 %v6777_v47, %v2550_v40  ;;  %2819 = vmatmul.f32.gmra.mxu1 %v2648_v0  ;;  %v3420_v0 = vmul.f32 1.442695, %v3404_v26  ;;  %2978 = vmatpush.msrb.mxu3 %v2945_v38 }
 0x41b   : > { %v2586_v57 = vmin.f32 %v2551_v25, 0.0  ;;  %vm2570_vm0 = vcmp.gt.f32.partialorder %v2551_v25, 0.0 }
 0x41d   : > { %v4741_v23 = vpop.eup %4740  ;;  %v2616_v10 = vmul.f32 1.442695, %v2586_v57  ;;  %v6814_v57 = vperm.slane %v4956_v37, 4 }
 0x41e   : > { %v4279_v53 = vadd.f32 -1.0, %v4741_v23 }
 0x41f   : > { %4742 = vpow2.f32 %v2616_v10  ;;  %v3422_v10 = vmul.f32 1.442695, %v3405_v36 }
 0x420   : > { %v2553_v49 = vpop.f32.mrf.mxu0  ;;  %v2649_v62 = vsel %vm2569_vm1, %v2548_v43, %v4279_v53  ;;  %v6810_v43 = vpop.f32.mrf.mxu2  ;;  %v6817_v53 = vadd.f32 %v6380_v2, %v1182_v1 }
 0x421   : > { %v2554_v34 = vadd.f32 %v6777_v47, %v2553_v49  ;;  %2822 = vmatmul.f32.gmra.mxu1 %v2649_v62  ;;  %v7273_v62 = vld [vmem:[#allocation56_spill] sm:$0xff] }
 0x422   : > { %v3406_v63 = vmin.f32 %v6817_v53, 0.0  ;;  %vm3390_vm6 = vcmp.gt.f32.partialorder %v6817_v53, 0.0 }
 0x423   : > { %v2587_v14 = vmin.f32 %v2554_v34, 0.0  ;;  %vm2571_vm2 = vcmp.gt.f32.partialorder %v2554_v34, 0.0 }
 0x425   : > { %v4743_v33 = vpop.eup %4742  ;;  %v2618_v52 = vmul.f32 1.442695, %v2587_v14  ;;  %v7275_v14 = vld [vmem:[#allocation25_spill] sm:$0xff] }
 0x426   : > { %v4280_v40 = vadd.f32 -1.0, %v4743_v33  ;;  %v1185_v37 = vadd.f32 %v7275_v14, %v6798_v20 }
 0x427   : > { %4744 = vpow2.f32 %v2618_v52 }
 0x428   : > { %v2650_v47 = vsel %vm2570_vm0, %v2551_v25, %v4280_v40  ;;  %4746 = vpow2.f32 %v3420_v0  ;;  %v1046_v25 = vadd.f32 %v7273_v62, %v6814_v57  ;;  %v6821_v13 = vpop.f32.mrf.mxu2  ;;  %v6829_v38 = vadd.f32 %v6404_v18, %v1185_v37  ;;  %v7276_v0 = vld [vmem:[#allocation57_spill] sm:$0xff] }
 0x429   : > { %2825 = vmatmul.f32.gmra.mxu1 %v2650_v47  ;;  %4748 = vpow2.f32 %v3422_v10  ;;  %v1049_v47 = vadd.f32 %v7276_v0, %v6814_v57 }
 0x42a   : > { %v1111_v26 = vadd.f32 %v7274_v4, %v1046_v25  ;;  %vm3391_vm8 = vcmp.gt.f32.partialorder %v6829_v38, 0.0 }
 0x42c   : > { %v2734_v2 = vadd.f32 %v6793_v48, %v1111_v26  ;;  %v3407_v48 = vmin.f32 %v6829_v38, 0.0  ;;  %v3140_v26 = vld [vmem:[#allocation4 + $0x3f8] sm:$0xff] }
 0x42d   : > { %v4745_v46 = vpop.eup %4744  ;;  %3143 = vmatpush.msrb.mxu0 %v3140_v26 }
 0x42e   : > { %v4281_v23 = vadd.f32 -1.0, %v4745_v46  ;;  %v4747_v49 = vpop.eup %4746  ;;  %v3426_v37 = vmul.f32 1.442695, %v3407_v48 }
 0x42f   : > { %v4330_v33 = vadd.f32 -1.0, %v4747_v49  ;;  %v4749_v36 = vpop.eup %4748 }
 0x430   : > { %v2651_v11 = vsel %vm2571_vm2, %v2554_v34, %v4281_v23  ;;  %v3424_v34 = vmul.f32 1.442695, %v3406_v63  ;;  %v7277_v23 = vld [vmem:[#allocation24_spill] sm:$0xff]  ;;  %v6837_v25 = vpop.f32.mrf.mxu2  ;;  %v4331_v18 = vadd.f32 -1.0, %v4749_v36 }
 0x431   : > { %2828 = vmatmul.f32.gmra.mxu1 %v2651_v11  ;;  %v3468_v1 = vsel %vm3388_vm3, %v1241_v16, %v4330_v33  ;;  %v1114_v10 = vadd.f32 %v7277_v23, %v1049_v47  ;;  %v7278_v11 = vld [vmem:[#allocation8_spill] sm:$0xff]  ;;  %v3680_v16 = vld [vmem:[#allocation4 + $0x578] sm:$0xff] }
 0x432   : > { %v1188_v49 = vadd.f32 %v7278_v11, %v6798_v20  ;;  %4750 = vpow2.f32 %v3424_v34  ;;  %3683 = vmatpush.msra.mxu3 %v3680_v16  ;;  %v3469_v34 = vsel %vm3389_vm4, %v1244_v35, %v4331_v18  ;;  %v3139_v35 = vld [vmem:[#allocation4 + $0x3f0] sm:$0xff] }
 0x433   : > { %v2735_v4 = vadd.f32 %v6803_v41, %v1114_v10  ;;  %v7280_v41 = vld [vmem:[#allocation14_spill] sm:$0xff]  ;;  %3144 = vmatpush.msrb.mxu0 %v3139_v35 }
 0x434   : > { %v6841_v63 = vadd.f32 %v6430_v5, %v1188_v49 }
 0x436   : > { %v2784_v52 = vpop.f32.mrf.mxu1  ;;  %v3408_v10 = vmin.f32 %v6841_v63, 0.0  ;;  %vm3392_vm10 = vcmp.gt.f32.partialorder %v6841_v63, 0.0 }
 0x437   : > { %v2832_v40 = vadd.f32 %v2784_v52, %v2734_v2  ;;  %v7279_v2 = vld [vmem:[#allocation58_spill] sm:$0xff] }
 0x438   : > { %v1052_v52 = vadd.f32 %v7279_v2, %v6814_v57  ;;  %v4751_v0 = vpop.eup %4750  ;;  %v6850_v18 = vpop.f32.mrf.mxu2  ;;  %v3428_v16 = vmul.f32 1.442695, %v3408_v10 }
 0x439   : > { %v2864_v46 = vmin.f32 %v2832_v40, 0.0  ;;  %3519 = vmatmul.f32.vlgmr.msra.gmra.mxu1 %v3468_v1  ;;  %v4332_v49 = vadd.f32 -1.0, %v4751_v0  ;;  %vm2848_vm5 = vcmp.gt.f32.partialorder %v2832_v40, 0.0 }
 0x43a   : > { %v1117_v1 = vadd.f32 %v7280_v41, %v1052_v52  ;;  %v7283_v41 = vld [vmem:[#allocation21_spill] sm:$0xff] }
 0x43b   : > { %v2880_v62 = vmul.f32 1.442695, %v2864_v46  ;;  %v7281_v46 = vld [vmem:[#allocation9_spill] sm:$0xff]  ;;  %v3470_v52 = vsel %vm3390_vm6, %v6817_v53, %v4332_v49 }
 0x43c   : > { %v1191_v23 = vadd.f32 %v7281_v46, %v6798_v20  ;;  %v2736_v48 = vadd.f32 %v6810_v43, %v1117_v1  ;;  %v7282_v43 = vld [vmem:[#allocation59_spill] sm:$0xff]  ;;  %v1194_v1 = vadd.f32 %v7283_v41, %v6798_v20  ;;  %v3138_v53 = vld [vmem:[#allocation4 + $0x3e8] sm:$0xff] }
 0x43d   : > { %4752 = vpow2.f32 %v2880_v62  ;;  %v3679_v62 = vld [vmem:[#allocation4 + $0x570] sm:$0xff]  ;;  %v1055_v2 = vadd.f32 %v7282_v43, %v6814_v57  ;;  %3145 = vmatpush.msrb.mxu0 %v3138_v53 }
 0x43e   : > { %v2787_v14 = vpop.f32.mrf.mxu1  ;;  %4754 = vpow2.f32 %v3426_v37  ;;  %3684 = vmatpush.msra.mxu3 %v3679_v62  ;;  %v7284_v62 = vld [vmem:[#allocation17_spill] sm:$0xff] }
 0x43f   : > { %v2833_v33 = vadd.f32 %v2787_v14, %v2735_v4  ;;  %v6853_v14 = vadd.f32 %v6458_v54, %v1191_v23 }
 0x441   : > { %v2865_v47 = vmin.f32 %v2833_v33, 0.0  ;;  %3522 = vmatmul.f32.gmra.mxu1 %v3469_v34  ;;  %v3409_v54 = vmin.f32 %v6853_v14, 0.0  ;;  %vm2849_vm7 = vcmp.gt.f32.partialorder %v2833_v33, 0.0  ;;  %vm3393_vm12 = vcmp.gt.f32.partialorder %v6853_v14, 0.0 }
 0x443   : > { %v4753_v36 = vpop.eup %4752  ;;  %v2882_v5 = vmul.f32 1.442695, %v2865_v47 }
 0x444   : > { %v4282_v11 = vadd.f32 -1.0, %v4753_v36  ;;  %v4755_v34 = vpop.eup %4754 }
 0x445   : > { %4756 = vpow2.f32 %v2882_v5  ;;  %v4333_v23 = vadd.f32 -1.0, %v4755_v34  ;;  %v3678_v5 = vld [vmem:[#allocation4 + $0x568] sm:$0xff] }
 0x446   : > { %v2790_v4 = vpop.f32.mrf.mxu1  ;;  %v2928_v26 = vsel %vm2848_vm5, %v2832_v40, %v4282_v11  ;;  %v1120_v40 = vadd.f32 %v6399_v44, %v1055_v2  ;;  %4758 = vpow2.f32 %v3428_v16  ;;  %3685 = vmatpush.msra.mxu3 %v3678_v5  ;;  %v3430_v44 = vmul.f32 1.442695, %v3409_v54 }
 0x447   : > { %v2834_v37 = vadd.f32 %v2790_v4, %v2736_v48  ;;  %2979 = vmatmul.f32.vlgmr.msrb.gmra.mxu3 %v2928_v26  ;;  %v6865_v48 = vadd.f32 %v6486_v7, %v1194_v1  ;;  %v1058_v4 = vadd.f32 %v7284_v62, %v6814_v57  ;;  %v3471_v26 = vsel %vm3391_vm8, %v6829_v38, %v4333_v23  ;;  %v7285_v7 = vld [vmem:[#allocation28_spill] sm:$0xff] }
 0x448   : > { %v2737_v10 = vadd.f32 %v6821_v13, %v1120_v40  ;;  %v6870_v13 = vpop.f32.mrf.mxu2  ;;  %v3137_v38 = vld [vmem:[#allocation4 + $0x3e0] sm:$0xff] }
 0x449   : > { %v2866_v0 = vmin.f32 %v2834_v37, 0.0  ;;  %3525 = vmatmul.f32.gmra.mxu1 %v3470_v52  ;;  %v1197_v52 = vadd.f32 %v7285_v7, %v6798_v20  ;;  %v3410_v34 = vmin.f32 %v6865_v48, 0.0  ;;  %vm2850_vm9 = vcmp.gt.f32.partialorder %v2834_v37, 0.0  ;;  %v3677_v1 = vld [vmem:[#allocation4 + $0x560] sm:$0xff]  ;;  %3146 = vmatpush.msrb.mxu0 %v3137_v38 }
 0x44a   : > { %3686 = vmatpush.msra.mxu3 %v3677_v1  ;;  %vm3394_vm14 = vcmp.gt.f32.partialorder %v6865_v48, 0.0 }
 0x44b   : > { %v4757_v47 = vpop.eup %4756  ;;  %v2884_v36 = vmul.f32 1.442695, %v2866_v0 }
 0x44c   : > { %v4283_v46 = vadd.f32 -1.0, %v4757_v47  ;;  %v4759_v16 = vpop.eup %4758 }
 0x44d   : > { %4760 = vpow2.f32 %v2884_v36  ;;  %v4334_v47 = vadd.f32 -1.0, %v4759_v16 }
 0x44e   : > { %v2793_v11 = vpop.f32.mrf.mxu1  ;;  %v2929_v49 = vsel %vm2849_vm7, %v2833_v33, %v4283_v46  ;;  %v1123_v33 = vadd.f32 %v6432_v19, %v1058_v4  ;;  %4762 = vpow2.f32 %v3430_v44  ;;  %v3432_v19 = vmul.f32 1.442695, %v3410_v34 }
 0x44f   : > { %v2835_v35 = vadd.f32 %v2793_v11, %v2737_v10  ;;  %2982 = vmatmul.f32.gmra.mxu3 %v2929_v49  ;;  %v6879_v46 = vadd.f32 %v6514_v3, %v1197_v52  ;;  %v7286_v10 = vld [vmem:[#allocation11_spill] sm:$0xff] }
 0x450   : > { %v2738_v41 = vadd.f32 %v6837_v25, %v1123_v33  ;;  %v1061_v53 = vadd.f32 %v7286_v10, %v6814_v57  ;;  %v3472_v25 = vsel %vm3392_vm10, %v6841_v63, %v4334_v47  ;;  %v6886_v49 = vpop.f32.mrf.mxu2  ;;  %v7287_v3 = vld [vmem:[#allocation27_spill] sm:$0xff] }
 0x451   : > { %v2867_v43 = vmin.f32 %v2835_v35, 0.0  ;;  %3528 = vmatmul.f32.gmra.mxu1 %v3471_v26  ;;  %v1200_v62 = vadd.f32 %v7287_v3, %v6798_v20  ;;  %v3411_v4 = vmin.f32 %v6879_v46, 0.0  ;;  %vm2851_vm11 = vcmp.gt.f32.partialorder %v2835_v35, 0.0  ;;  %v3136_v63 = vld [vmem:[#allocation4 + $0x3d8] sm:$0xff] }
 0x452   : > { %3147 = vmatpush.msrb.mxu0 %v3136_v63  ;;  %v7289_v3 = vld [vmem:[#allocation19_spill] sm:$0xff]  ;;  %vm3395_vm1 = vcmp.gt.f32.partialorder %v6879_v46, 0.0 }
 0x453   : > { %v4761_v2 = vpop.eup %4760  ;;  %v2886_v0 = vmul.f32 1.442695, %v2867_v43  ;;  %v3434_v52 = vmul.f32 1.442695, %v3411_v4  ;;  %v6893_v34 = vadd.f32 %v6540_v39, %v1200_v62  ;;  %v1067_v62 = vadd.f32 %v7289_v3, %v6814_v57 }
 0x454   : > { %v4284_v40 = vadd.f32 -1.0, %v4761_v2  ;;  %v4763_v5 = vpop.eup %4762  ;;  %v3676_v2 = vld [vmem:[#allocation4 + $0x558] sm:$0xff] }
 0x455   : > { %4764 = vpow2.f32 %v2886_v0  ;;  %v4335_v43 = vadd.f32 -1.0, %v4763_v5  ;;  %3687 = vmatpush.msra.mxu3 %v3676_v2  ;;  %v3412_v39 = vmin.f32 %v6893_v34, 0.0  ;;  %v3675_v5 = vld [vmem:[#allocation4 + $0x550] sm:$0xff]  ;;  %vm3396_vm2 = vcmp.gt.f32.partialorder %v6893_v34, 0.0 }
 0x456   : > { %v2796_v54 = vpop.f32.mrf.mxu1  ;;  %v2930_v36 = vsel %vm2850_vm9, %v2834_v37, %v4284_v40  ;;  %v1126_v37 = vadd.f32 %v6465_v22, %v1061_v53  ;;  %4766 = vpow2.f32 %v3432_v19  ;;  %v7288_v40 = vld [vmem:[#allocation23_spill] sm:$0xff] }
 0x457   : > { %v2836_v23 = vadd.f32 %v2796_v54, %v2738_v41  ;;  %2985 = vmatmul.f32.gmra.mxu3 %v2930_v36  ;;  %v1064_v47 = vadd.f32 %v7288_v40, %v6814_v57  ;;  %v1203_v54 = vadd.f32 %v6406_v60, %v6798_v20 }
 0x458   : > { %v2739_v33 = vadd.f32 %v6850_v18, %v1126_v37  ;;  %v3473_v18 = vsel %vm3393_vm12, %v6853_v14, %v4335_v43  ;;  %v2710_v19 = vpop.f32.mrf.mxu2  ;;  %v3135_v14 = vld [vmem:[#allocation4 + $0x3d0] sm:$0xff]  ;;  %3688 = vmatpush.msra.mxu3 %v3675_v5  ;;  %v1206_v43 = vadd.f32 %v6439_v24, %v6798_v20 }
 0x459   : > { %v2868_v11 = vmin.f32 %v2836_v23, 0.0  ;;  %3531 = vmatmul.f32.gmra.mxu1 %v3472_v25  ;;  %vm2852_vm13 = vcmp.gt.f32.partialorder %v2836_v23, 0.0  ;;  %3148 = vmatpush.msrb.mxu0 %v3135_v14  ;;  %v6905_v60 = vadd.f32 %v6566_v45, %v1203_v54  ;;  %v3133_v14 = vld [vmem:[#allocation4 + $0x3c0] sm:$0xff] }
 0x45a   : > { %v6917_v24 = vadd.f32 %v6592_v17, %v1206_v43 }
 0x45b   : > { %v4765_v44 = vpop.eup %4764  ;;  %v2888_v26 = vmul.f32 1.442695, %v2868_v11  ;;  %v3413_v45 = vmin.f32 %v6905_v60, 0.0  ;;  %vm3397_vm4 = vcmp.gt.f32.partialorder %v6905_v60, 0.0 }
 0x45c   : > { %v4285_v16 = vadd.f32 -1.0, %v4765_v44  ;;  %v4767_v41 = vpop.eup %4766  ;;  %v3414_v17 = vmin.f32 %v6917_v24, 0.0  ;;  %vm3398_vm6 = vcmp.gt.f32.partialorder %v6917_v24, 0.0 }
 0x45d   : > { %4768 = vpow2.f32 %v2888_v26  ;;  %v4336_v53 = vadd.f32 -1.0, %v4767_v41  ;;  %v7290_v41 = vld [vmem:[#allocation13_spill] sm:$0xff] }
 0x45e   : > { %v2799_v7 = vpop.f32.mrf.mxu1  ;;  %v2931_v22 = vsel %vm2851_vm11, %v2835_v35, %v4285_v16  ;;  %v1129_v35 = vadd.f32 %v6502_v8, %v1064_v47  ;;  %4770 = vpow2.f32 %v3434_v52  ;;  %v3436_v8 = vmul.f32 1.442695, %v3412_v39 }
 0x45f   : > { %v2837_v0 = vadd.f32 %v2799_v7, %v2739_v33  ;;  %2988 = vmatmul.f32.gmra.mxu3 %v2931_v22  ;;  %v3674_v22 = vld [vmem:[#allocation4 + $0x548] sm:$0xff]  ;;  %v1209_v39 = vadd.f32 %v6476_v56, %v6798_v20 }
 0x460   : > { %v2740_v25 = vadd.f32 %v6870_v13, %v1129_v35  ;;  %v3474_v13 = vsel %vm3394_vm14, %v6865_v48, %v4336_v53  ;;  %v3134_v48 = vld [vmem:[#allocation4 + $0x3c8] sm:$0xff]  ;;  %v2713_v52 = vpop.f32.mrf.mxu2  ;;  %3689 = vmatpush.msra.mxu3 %v3674_v22  ;;  %v7292_v22 = vld [vmem:[#allocation22_spill] sm:$0xff] }
 0x461   : > { %v2869_v38 = vmin.f32 %v2837_v0, 0.0  ;;  %3534 = vmatmul.f32.gmra.mxu1 %v3473_v18  ;;  %vm2853_vm15 = vcmp.gt.f32.partialorder %v2837_v0, 0.0  ;;  %3149 = vmatpush.msrb.mxu0 %v3134_v48 }
 0x463   : > { %v4769_v1 = vpop.eup %4768  ;;  %v2890_v36 = vmul.f32 1.442695, %v2869_v38  ;;  %3150 = vmatpush.msrb.mxu0 %v3133_v14 }
 0x464   : > { %v4286_v10 = vadd.f32 -1.0, %v4769_v1  ;;  %v4771_v4 = vpop.eup %4770 }
 0x465   : > { %4772 = vpow2.f32 %v2890_v36  ;;  %v4337_v2 = vadd.f32 -1.0, %v4771_v4 }
 0x466   : > { %v2802_v11 = vpop.f32.mrf.mxu1  ;;  %v2932_v37 = vsel %vm2852_vm13, %v2836_v23, %v4286_v10  ;;  %v1132_v23 = vadd.f32 %v6535_v32, %v1067_v62  ;;  %4774 = vpow2.f32 %v3436_v8  ;;  %v3438_v32 = vmul.f32 1.442695, %v3413_v45  ;;  %v7291_v8 = vld [vmem:[#allocation26_spill] sm:$0xff] }
 0x467   : > { %v2838_v44 = vadd.f32 %v2802_v11, %v2740_v25  ;;  %2991 = vmatmul.f32.gmra.mxu3 %v2932_v37  ;;  %v3475_v38 = vsel %vm3395_vm1, %v6879_v46, %v4337_v2  ;;  %v3673_v46 = vld [vmem:[#allocation4 + $0x540] sm:$0xff]  ;;  %v6928_v37 = vadd.f32 %v6620_v29, %v1209_v39  ;;  %v1073_v3 = vadd.f32 %v7291_v8, %v6814_v57  ;;  %v3671_v39 = vld [vmem:[#allocation4 + $0x530] sm:$0xff] }
 0x468   : > { %v2741_v7 = vadd.f32 %v6886_v49, %v1132_v23  ;;  %v1070_v49 = vadd.f32 %v7290_v41, %v6814_v57  ;;  %3690 = vmatpush.msra.mxu3 %v3673_v46  ;;  %v1212_v29 = vadd.f32 %v6509_v6, %v6798_v20 }
 0x469   : > { %v2870_v26 = vmin.f32 %v2838_v44, 0.0  ;;  %3537 = vmatmul.f32.gmra.mxu1 %v3474_v13  ;;  %vm2854_vm0 = vcmp.gt.f32.partialorder %v2838_v44, 0.0  ;;  %v3415_v23 = vmin.f32 %v6928_v37, 0.0  ;;  %vm3399_vm8 = vcmp.gt.f32.partialorder %v6928_v37, 0.0 }
 0x46a   : > { %v6939_v48 = vadd.f32 %v6648_v30, %v1212_v29  ;;  %v1215_v30 = vadd.f32 %v6542_v55, %v6798_v20 }
 0x46b   : > { %v4773_v16 = vpop.eup %4772  ;;  %v2892_v33 = vmul.f32 1.442695, %v2870_v26 }
 0x46c   : > { %v4287_v63 = vadd.f32 -1.0, %v4773_v16  ;;  %v4775_v35 = vpop.eup %4774  ;;  %vm3400_vm10 = vcmp.gt.f32.partialorder %v6939_v48, 0.0 }
 0x46d   : > { %4776 = vpow2.f32 %v2892_v33  ;;  %v4338_v53 = vadd.f32 -1.0, %v4775_v35 }
 0x46e   : > { %v2805_v40 = vpop.f32.mrf.mxu1  ;;  %v2933_v47 = vsel %vm2853_vm15, %v2837_v0, %v4287_v63  ;;  %v1135_v0 = vadd.f32 %v6568_v27, %v1070_v49  ;;  %4778 = vpow2.f32 %v3438_v32  ;;  %v3440_v27 = vmul.f32 1.442695, %v3414_v17  ;;  %v3132_v63 = vld [vmem:[#allocation4 + $0x3b8] sm:$0xff] }
 0x46f   : > { %v2839_v18 = vadd.f32 %v2805_v40, %v2741_v7  ;;  %2994 = vmatmul.f32.gmra.mxu3 %v2933_v47  ;;  %v3476_v62 = vsel %vm3396_vm2, %v6893_v34, %v4338_v53  ;;  %v3672_v34 = vld [vmem:[#allocation4 + $0x538] sm:$0xff]  ;;  %3151 = vmatpush.msrb.mxu0 %v3132_v63  ;;  %v1076_v40 = vadd.f32 %v7292_v22, %v6814_v57 }
 0x470   : > { %v2742_v25 = vadd.f32 %v2710_v19, %v1135_v0  ;;  %v2716_v19 = vpop.f32.mrf.mxu2  ;;  %3691 = vmatpush.msra.mxu3 %v3672_v34  ;;  %v7293_v53 = vld [vmem:[#allocation15_spill] sm:$0xff] }
 0x471   : > { %v2871_v1 = vmin.f32 %v2839_v18, 0.0  ;;  %3540 = vmatmul.f32.gmra.mxu1 %v3475_v38  ;;  %vm2855_vm3 = vcmp.gt.f32.partialorder %v2839_v18, 0.0  ;;  %v3416_v38 = vmin.f32 %v6939_v48, 0.0 }
 0x472   : > { %3692 = vmatpush.msra.mxu3 %v3671_v39 }
 0x473   : > { %v4777_v54 = vpop.eup %4776  ;;  %v2894_v36 = vmul.f32 1.442695, %v2871_v1 }
 0x474   : > { %v4288_v10 = vadd.f32 -1.0, %v4777_v54  ;;  %v4779_v13 = vpop.eup %4778 }
 0x475   : > { %4780 = vpow2.f32 %v2894_v36  ;;  %v4339_v45 = vadd.f32 -1.0, %v4779_v13 }
 0x476   : > { %v2808_v5 = vpop.f32.mrf.mxu1  ;;  %v2934_v11 = vsel %vm2854_vm0, %v2838_v44, %v4288_v10  ;;  %v1138_v44 = vadd.f32 %v6601_v50, %v1073_v3  ;;  %4782 = vpow2.f32 %v3440_v27  ;;  %v3442_v50 = vmul.f32 1.442695, %v3415_v23  ;;  %v7294_v23 = vld [vmem:[#allocation16_spill] sm:$0xff] }
 0x477   : > { %v2840_v56 = vadd.f32 %v2808_v5, %v2742_v25  ;;  %2997 = vmatmul.f32.gmra.mxu3 %v2934_v11  ;;  %v6950_v10 = vadd.f32 %v6666_v59, %v1215_v30  ;;  %v1079_v25 = vadd.f32 %v7293_v53, %v6814_v57 }
 0x478   : > { %v2743_v33 = vadd.f32 %v2713_v52, %v1138_v44  ;;  %v3477_v52 = vsel %vm3397_vm4, %v6905_v60, %v4339_v45  ;;  %v2719_v41 = vpop.f32.mrf.mxu2  ;;  %v3131_v60 = vld [vmem:[#allocation4 + $0x3b0] sm:$0xff] }
 0x479   : > { %v2872_v4 = vmin.f32 %v2840_v56, 0.0  ;;  %3543 = vmatmul.f32.gmra.mxu1 %v3476_v62  ;;  %vm2856_vm5 = vcmp.gt.f32.partialorder %v2840_v56, 0.0  ;;  %3152 = vmatpush.msrb.mxu0 %v3131_v60  ;;  %v1144_v11 = vadd.f32 %v6663_v42, %v1079_v25  ;;  %v3417_v59 = vmin.f32 %v6950_v10, 0.0 }
 0x47a   : > { %vm3401_vm12 = vcmp.gt.f32.partialorder %v6950_v10, 0.0 }
 0x47b   : > { %v4781_v26 = vpop.eup %4780  ;;  %v2896_v16 = vmul.f32 1.442695, %v2872_v4  ;;  %v2745_v13 = vadd.f32 %v2719_v41, %v1144_v11  ;;  %v3670_v4 = vld [vmem:[#allocation4 + $0x528] sm:$0xff]  ;;  %v3446_v42 = vmul.f32 1.442695, %v3417_v59  ;;  %v3667_v11 = vld [vmem:[#allocation4 + $0x510] sm:$0xff] }
 0x47c   : > { %v4289_v43 = vadd.f32 -1.0, %v4781_v26  ;;  %v4783_v47 = vpop.eup %4782  ;;  %3693 = vmatpush.msra.mxu3 %v3670_v4  ;;  %v3127_v4 = vld [vmem:[#allocation4 + $0x390] sm:$0xff] }
 0x47d   : > { %4784 = vpow2.f32 %v2896_v16  ;;  %v4340_v0 = vadd.f32 -1.0, %v4783_v47  ;;  %v1082_v16 = vadd.f32 %v7294_v23, %v6814_v57 }
 0x47e   : > { %v2811_v2 = vpop.f32.mrf.mxu1  ;;  %v2935_v7 = vsel %vm2855_vm3, %v2839_v18, %v4289_v43  ;;  %v1141_v18 = vadd.f32 %v6638_v51, %v1076_v40  ;;  %4786 = vpow2.f32 %v3442_v50  ;;  %v3444_v51 = vmul.f32 1.442695, %v3416_v38  ;;  %v3129_v40 = vld [vmem:[#allocation4 + $0x3a0] sm:$0xff] }
 0x47f   : > { %v2841_v6 = vadd.f32 %v2811_v2, %v2743_v33  ;;  %3000 = vmatmul.f32.gmra.mxu3 %v2935_v7  ;;  %v3478_v14 = vsel %vm3398_vm6, %v6917_v24, %v4340_v0  ;;  %v3130_v24 = vld [vmem:[#allocation4 + $0x3a8] sm:$0xff]  ;;  %v1147_v63 = vadd.f32 %v6682_v9, %v1082_v16  ;;  %v1221_v2 = vadd.f32 %v6612_v28, %v6798_v20 }
 0x480   : > { %v2744_v54 = vadd.f32 %v2716_v19, %v1141_v18  ;;  %v2722_v3 = vpop.f32.mrf.mxu2  ;;  %3153 = vmatpush.msrb.mxu0 %v3130_v24  ;;  %v3128_v24 = vld [vmem:[#allocation4 + $0x398] sm:$0xff] }
 0x481   : > { %v2873_v32 = vmin.f32 %v2841_v6, 0.0  ;;  %3546 = vmatmul.f32.gmra.mxu1 %v3477_v52  ;;  %vm2857_vm7 = vcmp.gt.f32.partialorder %v2841_v6, 0.0  ;;  %v2746_v22 = vadd.f32 %v2722_v3, %v1147_v63  ;;  %v6972_v18 = vadd.f32 %v6693_v61, %v1221_v2 }
 0x482   : > { %3154 = vmatpush.msrb.mxu0 %v3129_v40 }
 0x483   : > { %v4785_v49 = vpop.eup %4784  ;;  %v2898_v35 = vmul.f32 1.442695, %v2873_v32  ;;  %v3419_v0 = vmin.f32 %v6972_v18, 0.0  ;;  %vm3403_vm1 = vcmp.gt.f32.partialorder %v6972_v18, 0.0 }
 0x484   : > { %v4290_v1 = vadd.f32 -1.0, %v4785_v49  ;;  %v4787_v46 = vpop.eup %4786  ;;  %v7295_v49 = vld [vmem:[#allocation18_spill] sm:$0xff]  ;;  %3155 = vmatpush.msrb.mxu0 %v3128_v24  ;;  %v3860_v24 = vld [vmem:[#allocation4 + $0x5f8] sm:$0xff] }
 0x485   : > { %4788 = vpow2.f32 %v2898_v35  ;;  %v4341_v62 = vadd.f32 -1.0, %v4787_v46  ;;  %v1085_v30 = vadd.f32 %v7295_v49, %v6814_v57 }
 0x486   : > { %v2814_v17 = vpop.f32.mrf.mxu1  ;;  %v2936_v36 = vsel %vm2856_vm5, %v2840_v56, %v4290_v1  ;;  %v1218_v56 = vadd.f32 %v6575_v15, %v6798_v20  ;;  %4790 = vpow2.f32 %v3444_v51  ;;  %3156 = vmatpush.msrb.mxu0 %v3127_v4  ;;  %v3319_v4 = vld [vmem:[#allocation4 + $0x470] sm:$0xff] }
 0x487   : > { %v2842_v55 = vadd.f32 %v2814_v17, %v2744_v54  ;;  %3003 = vmatmul.f32.gmra.mxu3 %v2936_v36  ;;  %v3479_v43 = vsel %vm3399_vm8, %v6928_v37, %v4341_v62  ;;  %v3669_v37 = vld [vmem:[#allocation4 + $0x520] sm:$0xff]  ;;  %v1150_v1 = vadd.f32 %v6696_v12, %v1085_v30  ;;  %v3450_v36 = vmul.f32 1.442695, %v3419_v0  ;;  %v3668_v12 = vld [vmem:[#allocation4 + $0x518] sm:$0xff] }
 0x488   : > { %v6961_v29 = vadd.f32 %v6680_v31, %v1218_v56  ;;  %v2725_v52 = vpop.f32.mrf.mxu2  ;;  %3694 = vmatpush.msra.mxu3 %v3669_v37 }
 0x489   : > { %v2874_v5 = vmin.f32 %v2842_v55, 0.0  ;;  %3549 = vmatmul.f32.gmra.mxu1 %v3478_v14  ;;  %vm2858_vm9 = vcmp.gt.f32.partialorder %v2842_v55, 0.0  ;;  %v2747_v39 = vadd.f32 %v2725_v52, %v1150_v1  ;;  %v7296_v14 = vld [vmem:[#allocation20_spill] sm:$0xff] }
 0x48a   : > { %v3418_v31 = vmin.f32 %v6961_v29, 0.0  ;;  %v1088_v46 = vadd.f32 %v7296_v14, %v6814_v57  ;;  %3695 = vmatpush.msra.mxu3 %v3668_v12  ;;  %vm3402_vm14 = vcmp.gt.f32.partialorder %v6961_v29, 0.0 }
 0x48b   : > { %v4789_v27 = vpop.eup %4788  ;;  %v2900_v8 = vmul.f32 1.442695, %v2874_v5 }
 0x48c   : > { %v4291_v19 = vadd.f32 -1.0, %v4789_v27  ;;  %v4791_v45 = vpop.eup %4790  ;;  %v3448_v9 = vmul.f32 1.442695, %v3418_v31  ;;  %v1153_v56 = vadd.f32 %v6711_v21, %v1088_v46  ;;  %3696 = vmatpush.msra.mxu3 %v3667_v11  ;;  %v3320_v46 = vld [vmem:[#allocation4 + $0x478] sm:$0xff] }
 0x48d   : > { %4792 = vpow2.f32 %v2900_v8  ;;  %3323 = vmatpush.msra.mxu2 %v3320_v46 }
 0x48e   : > { %v2817_v44 = vpop.f32.mrf.mxu1  ;;  %v2937_v26 = vsel %vm2857_vm7, %v2841_v6, %v4291_v19  ;;  %4794 = vpow2.f32 %v3446_v42  ;;  %v4342_v6 = vadd.f32 -1.0, %v4791_v45  ;;  %v3666_v19 = vld [vmem:[#allocation4 + $0x508] sm:$0xff] }
 0x48f   : > { %v2843_v15 = vadd.f32 %v2817_v44, %v2745_v13  ;;  %3006 = vmatmul.f32.gmra.mxu3 %v2937_v26  ;;  %v3665_v44 = vld [vmem:[#allocation4 + $0x500] sm:$0xff]  ;;  %3324 = vmatpush.msra.mxu2 %v3319_v4 }
 0x490   : > { %v3480_v20 = vsel %vm3400_vm10, %v6939_v48, %v4342_v6  ;;  %3697 = vmatpush.msra.mxu3 %v3666_v19 }
 0x491   : > { %v2875_v33 = vmin.f32 %v2843_v15, 0.0  ;;  %3552 = vmatmul.f32.gmra.mxu1 %v3479_v43  ;;  %vm2859_vm11 = vcmp.gt.f32.partialorder %v2843_v15, 0.0 }
 0x492   : > { %3698 = vmatpush.msra.mxu3 %v3665_v44 }
 0x493   : > { %v4793_v34 = vpop.eup %4792  ;;  %v2902_v7 = vmul.f32 1.442695, %v2875_v33 }
 0x494   : > { %v4292_v50 = vadd.f32 -1.0, %v4793_v34  ;;  %v4795_v41 = vpop.eup %4794 }
 0x495   : > { %4796 = vpow2.f32 %v2902_v7  ;;  %v4343_v60 = vadd.f32 -1.0, %v4795_v41 }
 0x496   : > { %v2820_v47 = vpop.f32.mrf.mxu1  ;;  %v2938_v32 = vsel %vm2858_vm9, %v2842_v55, %v4292_v50  ;;  %4798 = vpow2.f32 %v3448_v9  ;;  %v2728_v55 = vpop.f32.mrf.mxu2  ;;  %v3126_v9 = vld [vmem:[#allocation4 + $0x388] sm:$0xff] }
 0x497   : > { %v2844_v28 = vadd.f32 %v2820_v47, %v2746_v22  ;;  %3009 = vmatmul.f32.gmra.mxu3 %v2938_v32  ;;  %v3481_v53 = vsel %vm3401_vm12, %v6950_v10, %v4343_v60  ;;  %v2748_v62 = vadd.f32 %v2728_v55, %v1153_v56  ;;  %3157 = vmatpush.msrb.mxu0 %v3126_v9 }
 0x499   : > { %v2876_v38 = vmin.f32 %v2844_v28, 0.0  ;;  %3555 = vmatmul.f32.gmra.mxu1 %v3480_v20  ;;  %vm2860_vm13 = vcmp.gt.f32.partialorder %v2844_v28, 0.0 }
 0x49b   : > { %v4797_v35 = vpop.eup %4796  ;;  %v2904_v61 = vmul.f32 1.442695, %v2876_v38 }
 0x49c   : > { %v4293_v54 = vadd.f32 -1.0, %v4797_v35  ;;  %v4799_v25 = vpop.eup %4798 }
 0x49d   : > { %4800 = vpow2.f32 %v2904_v61  ;;  %v4344_v3 = vadd.f32 -1.0, %v4799_v25 }
 0x49e   : > { %v2823_v17 = vpop.f32.mrf.mxu1  ;;  %v2939_v48 = vsel %vm2859_vm11, %v2843_v15, %v4293_v54  ;;  %4802 = vpow2.f32 %v3450_v36  ;;  %v7297_v15 = vld [vmem:[#allocation12_spill] sm:$0xff]  ;;  %v2731_v43 = vpop.f32.mrf.mxu2 }
 0x49f   : > { %v2845_v51 = vadd.f32 %v2823_v17, %v2747_v39  ;;  %3012 = vmatmul.f32.gmra.mxu3 %v2939_v48  ;;  %v3482_v21 = vsel %vm3402_vm14, %v6961_v29, %v4344_v3  ;;  %v1091_v23 = vadd.f32 %v7297_v15, %v6814_v57  ;;  %v7003_v48 = vld [vmem:[%s7148_s5 + $0x6] ss:$0 sm:$0xff] }
 0x4a1   : > { %v2877_v5 = vmin.f32 %v2845_v51, 0.0  ;;  %3558 = vmatmul.f32.gmra.mxu1 %v3481_v53  ;;  %v1156_v33 = vadd.f32 %v6715_v58, %v1091_v23  ;;  %vm2861_vm15 = vcmp.gt.f32.partialorder %v2845_v51, 0.0  ;;  %v6995_v58 = vld [vmem:[%s7148_s5 + $0x9] ss:$0 sm:$0xff] }
 0x4a3   : > { %v4801_v27 = vpop.eup %4800  ;;  %v2906_v59 = vmul.f32 1.442695, %v2877_v5  ;;  %v2749_v31 = vadd.f32 %v2731_v43, %v1156_v33 }
 0x4a4   : > { %v4294_v8 = vadd.f32 -1.0, %v4801_v27  ;;  %v4803_v42 = vpop.eup %4802 }
 0x4a5   : > { %4804 = vpow2.f32 %v2906_v59  ;;  %v4345_v2 = vadd.f32 -1.0, %v4803_v42 }
 0x4a6   : > { %v2826_v10 = vpop.f32.mrf.mxu1  ;;  %v2940_v13 = vsel %vm2860_vm13, %v2844_v28, %v4294_v8 }
 0x4a7   : > { %v2846_v26 = vadd.f32 %v2826_v10, %v2748_v62  ;;  %3015 = vmatmul.f32.gmra.mxu3 %v2940_v13  ;;  %v3483_v57 = vsel %vm3403_vm1, %v6972_v18, %v4345_v2  ;;  %v3125_v18 = vld [vmem:[#allocation4 + $0x380] sm:$0xff] }
 0x4a8   : > { %3158 = vmatpush.msrb.mxu0 %v3125_v18 }
 0x4a9   : > { %v2878_v16 = vmin.f32 %v2846_v26, 0.0  ;;  %3561 = vmatmul.f32.gmra.mxu1 %v3482_v21  ;;  %vm2862_vm0 = vcmp.gt.f32.partialorder %v2846_v26, 0.0 }
 0x4aa   : > { %3863 = vmatpush.msra.mxu0 %v3860_v24 }
 0x4ab   : > { %v4805_v45 = vpop.eup %4804  ;;  %v2908_v63 = vmul.f32 1.442695, %v2878_v16 }
 0x4ac   : > { %v4295_v34 = vadd.f32 -1.0, %v4805_v45 }
 0x4ad   : > { %4806 = vpow2.f32 %v2908_v63 }
 0x4ae   : > { %v2829_v7 = vpop.f32.mrf.mxu1  ;;  %v2941_v29 = vsel %vm2861_vm15, %v2845_v51, %v4295_v34 }
 0x4af   : > { %v2847_v50 = vadd.f32 %v2829_v7, %v2749_v31  ;;  %3018 = vmatmul.f32.gmra.mxu3 %v2941_v29  ;;  %v3859_v7 = vld [vmem:[#allocation4 + $0x5f0] sm:$0xff]  ;;  %v3318_v29 = vld [vmem:[#allocation4 + $0x468] sm:$0xff] }
 0x4b0   : > { %3864 = vmatpush.msra.mxu0 %v3859_v7  ;;  %3325 = vmatpush.msra.mxu2 %v3318_v29 }
 0x4b1   : > { %v2879_v6 = vmin.f32 %v2847_v50, 0.0  ;;  %3564 = vmatmul.f32.gmra.mxu1 %v3483_v57  ;;  %vm2863_vm2 = vcmp.gt.f32.partialorder %v2847_v50, 0.0 }
 0x4b3   : > { %v4807_v22 = vpop.eup %4806  ;;  %v2910_v40 = vmul.f32 1.442695, %v2879_v6 }
 0x4b4   : > { %v4296_v37 = vadd.f32 -1.0, %v4807_v22 }
 0x4b5   : > { %4808 = vpow2.f32 %v2910_v40 }
 0x4b6   : > { %v3520_v52 = vpop.f32.mrf.mxu1  ;;  %v2942_v47 = vsel %vm2862_vm0, %v2846_v26, %v4296_v37 }
 0x4b7   : > { %v3521_v32 = vadd.f32 %v6995_v58, %v3520_v52  ;;  %3021 = vmatmul.f32.gmra.mxu3 %v2942_v47 }
 0x4b9   : > { %v3584_v28 = vmin.f32 %v3521_v32, 0.0  ;;  %vm3568_vm3 = vcmp.gt.f32.partialorder %v3521_v32, 0.0 }
 0x4bb   : > { %v4809_v20 = vpop.eup %4808  ;;  %v3600_v41 = vmul.f32 1.442695, %v3584_v28 }
 0x4bc   : > { %v4297_v49 = vadd.f32 -1.0, %v4809_v20 }
 0x4bd   : > { %4810 = vpow2.f32 %v3600_v41 }
 0x4be   : > { %v3523_v30 = vpop.f32.mrf.mxu1  ;;  %v2943_v38 = vsel %vm2863_vm2, %v2847_v50, %v4297_v49  ;;  %v3858_v49 = vld [vmem:[#allocation4 + $0x5e8] sm:$0xff] }
 0x4bf   : > { %v3524_v35 = vadd.f32 %v6995_v58, %v3523_v30  ;;  %3024 = vmatmul.f32.gmra.mxu3 %v2943_v38  ;;  %v3317_v30 = vld [vmem:[#allocation4 + $0x460] sm:$0xff]  ;;  %3865 = vmatpush.msra.mxu0 %v3858_v49 }
 0x4c0   : > { %3326 = vmatpush.msra.mxu2 %v3317_v30 }
 0x4c1   : > { %v3585_v1 = vmin.f32 %v3524_v35, 0.0  ;;  %vm3569_vm4 = vcmp.gt.f32.partialorder %v3524_v35, 0.0 }
 0x4c3   : > { %v4811_v0 = vpop.eup %4810  ;;  %v3602_v61 = vmul.f32 1.442695, %v3585_v1 }
 0x4c4   : > { %v4346_v54 = vadd.f32 -1.0, %v4811_v0 }
 0x4c5   : > { %4812 = vpow2.f32 %v3602_v61 }
 0x4c6   : > { %v3648_v60 = vsel %vm3568_vm3, %v3521_v32, %v4346_v54  ;;  %v3526_v39 = vpop.f32.mrf.mxu1 }
 0x4c7   : > { %v3527_v17 = vadd.f32 %v6995_v58, %v3526_v39  ;;  %3699 = vmatmul.f32.vlgmr.msra.gmra.mxu3 %v3648_v60 }
 0x4c9   : > { %v3586_v36 = vmin.f32 %v3527_v17, 0.0  ;;  %vm3570_vm5 = vcmp.gt.f32.partialorder %v3527_v17, 0.0 }
 0x4ca   : > { %v2980_v51 = vpop.f32.mrf.mxu3 }
 0x4cb   : > { %v4813_v55 = vpop.eup %4812  ;;  %v3604_v53 = vmul.f32 1.442695, %v3586_v36  ;;  %v2981_v12 = vadd.f32 %v7003_v48, %v2980_v51 }
 0x4cc   : > { %v4347_v25 = vadd.f32 -1.0, %v4813_v55 }
 0x4cd   : > { %4814 = vpow2.f32 %v3604_v53  ;;  %v3044_v14 = vmin.f32 %v2981_v12, 0.0  ;;  %vm3028_vm6 = vcmp.gt.f32.partialorder %v2981_v12, 0.0 }
 0x4ce   : > { %v3529_v5 = vpop.f32.mrf.mxu1  ;;  %v3649_v11 = vsel %vm3569_vm4, %v3524_v35, %v4347_v25  ;;  %v3857_v25 = vld [vmem:[#allocation4 + $0x5e0] sm:$0xff] }
 0x4cf   : > { %v3060_v27 = vmul.f32 1.442695, %v3044_v14  ;;  %v3530_v56 = vadd.f32 %v6995_v58, %v3529_v5  ;;  %3702 = vmatmul.f32.gmra.mxu3 %v3649_v11  ;;  %v3316_v14 = vld [vmem:[#allocation4 + $0x458] sm:$0xff]  ;;  %3866 = vmatpush.msra.mxu0 %v3857_v25 }
 0x4d0   : > { %3327 = vmatpush.msra.mxu2 %v3316_v14 }
 0x4d1   : > { %4816 = vpow2.f32 %v3060_v27  ;;  %v3587_v59 = vmin.f32 %v3530_v56, 0.0  ;;  %vm3571_vm7 = vcmp.gt.f32.partialorder %v3530_v56, 0.0 }
 0x4d2   : > { %v2983_v8 = vpop.f32.mrf.mxu3 }
 0x4d3   : > { %v4815_v3 = vpop.eup %4814  ;;  %v3606_v19 = vmul.f32 1.442695, %v3587_v59  ;;  %v2984_v62 = vadd.f32 %v7003_v48, %v2983_v8 }
 0x4d4   : > { %v4348_v10 = vadd.f32 -1.0, %v4815_v3 }
 0x4d5   : > { %4818 = vpow2.f32 %v3606_v19  ;;  %v3045_v13 = vmin.f32 %v2984_v62, 0.0  ;;  %vm3029_vm8 = vcmp.gt.f32.partialorder %v2984_v62, 0.0 }
 0x4d6   : > { %v3532_v44 = vpop.f32.mrf.mxu1  ;;  %v3650_v26 = vsel %vm3570_vm5, %v3527_v17, %v4348_v10 }
 0x4d7   : > { %v4817_v21 = vpop.eup %4816  ;;  %v3062_v42 = vmul.f32 1.442695, %v3045_v13  ;;  %v3533_v15 = vadd.f32 %v6995_v58, %v3532_v44  ;;  %3705 = vmatmul.f32.gmra.mxu3 %v3650_v26  ;;  %v3856_v44 = vld [vmem:[#allocation4 + $0x5d8] sm:$0xff]  ;;  %v3315_v26 = vld [vmem:[#allocation4 + $0x450] sm:$0xff] }
 0x4d8   : > { %v4298_v23 = vadd.f32 -1.0, %v4817_v21  ;;  %3867 = vmatpush.msra.mxu0 %v3856_v44  ;;  %3328 = vmatpush.msra.mxu2 %v3315_v26 }
 0x4d9   : > { %4820 = vpow2.f32 %v3062_v42  ;;  %v3588_v16 = vmin.f32 %v3533_v15, 0.0  ;;  %vm3572_vm9 = vcmp.gt.f32.partialorder %v3533_v15, 0.0 }
 0x4da   : > { %v2986_v43 = vpop.f32.mrf.mxu3  ;;  %v3108_v45 = vsel %vm3028_vm6, %v2981_v12, %v4298_v23 }
 0x4db   : > { %v4819_v33 = vpop.eup %4818  ;;  %v3608_v63 = vmul.f32 1.442695, %v3588_v16  ;;  %v2987_v34 = vadd.f32 %v7003_v48, %v2986_v43  ;;  %3159 = vmatmul.f32.vlgmr.msrb.gmra.mxu0 %v3108_v45 }
 0x4dc   : > { %v4349_v2 = vadd.f32 -1.0, %v4819_v33 }
 0x4dd   : > { %4822 = vpow2.f32 %v3608_v63  ;;  %v3046_v31 = vmin.f32 %v2987_v34, 0.0  ;;  %vm3030_vm10 = vcmp.gt.f32.partialorder %v2987_v34, 0.0 }
 0x4de   : > { %v3535_v50 = vpop.f32.mrf.mxu1  ;;  %v3651_v57 = vsel %vm3571_vm7, %v3530_v56, %v4349_v2 }
 0x4df   : > { %v4821_v6 = vpop.eup %4820  ;;  %v3064_v22 = vmul.f32 1.442695, %v3046_v31  ;;  %v3536_v40 = vadd.f32 %v6995_v58, %v3535_v50  ;;  %3708 = vmatmul.f32.gmra.mxu3 %v3651_v57  ;;  %v3855_v50 = vld [vmem:[#allocation4 + $0x5d0] sm:$0xff]  ;;  %v3314_v57 = vld [vmem:[#allocation4 + $0x448] sm:$0xff] }
 0x4e0   : > { %v4299_v37 = vadd.f32 -1.0, %v4821_v6  ;;  %3868 = vmatpush.msra.mxu0 %v3855_v50  ;;  %3329 = vmatpush.msra.mxu2 %v3314_v57 }
 0x4e1   : > { %4824 = vpow2.f32 %v3064_v22  ;;  %v3589_v52 = vmin.f32 %v3536_v40, 0.0  ;;  %vm3573_vm11 = vcmp.gt.f32.partialorder %v3536_v40, 0.0 }
 0x4e2   : > { %v2989_v47 = vpop.f32.mrf.mxu3  ;;  %v3109_v32 = vsel %vm3029_vm8, %v2984_v62, %v4299_v37 }
 0x4e3   : > { %v4823_v9 = vpop.eup %4822  ;;  %v3610_v28 = vmul.f32 1.442695, %v3589_v52  ;;  %v2990_v18 = vadd.f32 %v7003_v48, %v2989_v47  ;;  %3162 = vmatmul.f32.gmra.mxu0 %v3109_v32 }
 0x4e4   : > { %v4350_v20 = vadd.f32 -1.0, %v4823_v9 }
 0x4e5   : > { %4826 = vpow2.f32 %v3610_v28  ;;  %v3047_v41 = vmin.f32 %v2990_v18, 0.0  ;;  %vm3031_vm12 = vcmp.gt.f32.partialorder %v2990_v18, 0.0 }
 0x4e6   : > { %v3538_v38 = vpop.f32.mrf.mxu1  ;;  %v3652_v35 = vsel %vm3572_vm9, %v3533_v15, %v4350_v20 }
 0x4e7   : > { %v4825_v1 = vpop.eup %4824  ;;  %v3066_v0 = vmul.f32 1.442695, %v3047_v41  ;;  %v3539_v61 = vadd.f32 %v6995_v58, %v3538_v38  ;;  %3711 = vmatmul.f32.gmra.mxu3 %v3652_v35  ;;  %v3854_v38 = vld [vmem:[#allocation4 + $0x5c8] sm:$0xff]  ;;  %v3313_v35 = vld [vmem:[#allocation4 + $0x440] sm:$0xff] }
 0x4e8   : > { %v4300_v54 = vadd.f32 -1.0, %v4825_v1  ;;  %3869 = vmatpush.msra.mxu0 %v3854_v38  ;;  %3330 = vmatpush.msra.mxu2 %v3313_v35 }
 0x4e9   : > { %4828 = vpow2.f32 %v3066_v0  ;;  %v3590_v60 = vmin.f32 %v3539_v61, 0.0  ;;  %vm3574_vm13 = vcmp.gt.f32.partialorder %v3539_v61, 0.0 }
 0x4ea   : > { %v2992_v39 = vpop.f32.mrf.mxu3  ;;  %v3110_v17 = vsel %vm3030_vm10, %v2987_v34, %v4300_v54 }
 0x4eb   : > { %v4827_v36 = vpop.eup %4826  ;;  %v3612_v51 = vmul.f32 1.442695, %v3590_v60  ;;  %v2993_v55 = vadd.f32 %v7003_v48, %v2992_v39  ;;  %3165 = vmatmul.f32.gmra.mxu0 %v3110_v17 }
 0x4ec   : > { %v4351_v53 = vadd.f32 -1.0, %v4827_v36 }
 0x4ed   : > { %4830 = vpow2.f32 %v3612_v51  ;;  %v3048_v12 = vmin.f32 %v2993_v55, 0.0  ;;  %vm3032_vm14 = vcmp.gt.f32.partialorder %v2993_v55, 0.0 }
 0x4ee   : > { %v3541_v46 = vpop.f32.mrf.mxu1  ;;  %v3653_v5 = vsel %vm3573_vm11, %v3536_v40, %v4351_v53 }
 0x4ef   : > { %v4829_v11 = vpop.eup %4828  ;;  %v3068_v27 = vmul.f32 1.442695, %v3048_v12  ;;  %v3542_v56 = vadd.f32 %v6995_v58, %v3541_v46  ;;  %3714 = vmatmul.f32.gmra.mxu3 %v3653_v5  ;;  %v3853_v46 = vld [vmem:[#allocation4 + $0x5c0] sm:$0xff]  ;;  %v3312_v5 = vld [vmem:[#allocation4 + $0x438] sm:$0xff] }
 0x4f0   : > { %v4301_v59 = vadd.f32 -1.0, %v4829_v11  ;;  %3870 = vmatpush.msra.mxu0 %v3853_v46  ;;  %3331 = vmatpush.msra.mxu2 %v3312_v5 }
 0x4f1   : > { %4832 = vpow2.f32 %v3068_v27  ;;  %v3591_v8 = vmin.f32 %v3542_v56, 0.0  ;;  %vm3575_vm15 = vcmp.gt.f32.partialorder %v3542_v56, 0.0 }
 0x4f2   : > { %v2995_v3 = vpop.f32.mrf.mxu3  ;;  %v3111_v19 = vsel %vm3031_vm12, %v2990_v18, %v4301_v59 }
 0x4f3   : > { %v4831_v62 = vpop.eup %4830  ;;  %v3614_v10 = vmul.f32 1.442695, %v3591_v8  ;;  %v2996_v13 = vadd.f32 %v7003_v48, %v2995_v3  ;;  %3168 = vmatmul.f32.gmra.mxu0 %v3111_v19 }
 0x4f4   : > { %v4352_v24 = vadd.f32 -1.0, %v4831_v62 }
 0x4f5   : > { %4834 = vpow2.f32 %v3614_v10  ;;  %v3049_v4 = vmin.f32 %v2996_v13, 0.0  ;;  %vm3033_vm1 = vcmp.gt.f32.partialorder %v2996_v13, 0.0 }
 0x4f6   : > { %v3544_v21 = vpop.f32.mrf.mxu1  ;;  %v3654_v42 = vsel %vm3574_vm13, %v3539_v61, %v4352_v24 }
 0x4f7   : > { %v4833_v15 = vpop.eup %4832  ;;  %v3070_v23 = vmul.f32 1.442695, %v3049_v4  ;;  %v3545_v16 = vadd.f32 %v6995_v58, %v3544_v21  ;;  %3717 = vmatmul.f32.gmra.mxu3 %v3654_v42  ;;  %v3852_v21 = vld [vmem:[#allocation4 + $0x5b8] sm:$0xff]  ;;  %v3311_v42 = vld [vmem:[#allocation4 + $0x430] sm:$0xff] }
 0x4f8   : > { %v4302_v43 = vadd.f32 -1.0, %v4833_v15  ;;  %3871 = vmatpush.msra.mxu0 %v3852_v21  ;;  %3332 = vmatpush.msra.mxu2 %v3311_v42  ;;  %v3848_v42 = vld [vmem:[#allocation4 + $0x598] sm:$0xff] }
 0x4f9   : > { %4836 = vpow2.f32 %v3070_v23  ;;  %v3592_v45 = vmin.f32 %v3545_v16, 0.0  ;;  %vm3576_vm0 = vcmp.gt.f32.partialorder %v3545_v16, 0.0 }
 0x4fa   : > { %v2998_v33 = vpop.f32.mrf.mxu3  ;;  %v3112_v63 = vsel %vm3032_vm14, %v2993_v55, %v4302_v43 }
 0x4fb   : > { %v4835_v34 = vpop.eup %4834  ;;  %v3616_v2 = vmul.f32 1.442695, %v3592_v45  ;;  %v2999_v31 = vadd.f32 %v7003_v48, %v2998_v33  ;;  %3171 = vmatmul.f32.gmra.mxu0 %v3112_v63 }
 0x4fc   : > { %v4353_v7 = vadd.f32 -1.0, %v4835_v34  ;;  %v3851_v34 = vld [vmem:[#allocation4 + $0x5b0] sm:$0xff] }
 0x4fd   : > { %4838 = vpow2.f32 %v3616_v2  ;;  %v3050_v29 = vmin.f32 %v2999_v31, 0.0  ;;  %vm3034_vm2 = vcmp.gt.f32.partialorder %v2999_v31, 0.0  ;;  %v3310_v2 = vld [vmem:[#allocation4 + $0x428] sm:$0xff]  ;;  %3872 = vmatpush.msra.mxu0 %v3851_v34 }
 0x4fe   : > { %v3547_v6 = vpop.f32.mrf.mxu1  ;;  %v3655_v22 = vsel %vm3575_vm15, %v3542_v56, %v4353_v7  ;;  %3333 = vmatpush.msra.mxu2 %v3310_v2  ;;  %v3307_v2 = vld [vmem:[#allocation4 + $0x410] sm:$0xff] }
 0x4ff   : > { %v4837_v40 = vpop.eup %4836  ;;  %v3072_v37 = vmul.f32 1.442695, %v3050_v29  ;;  %v3548_v52 = vadd.f32 %v6995_v58, %v3547_v6  ;;  %3720 = vmatmul.f32.gmra.mxu3 %v3655_v22 }
 0x500   : > { %v4303_v47 = vadd.f32 -1.0, %v4837_v40 }
 0x501   : > { %4840 = vpow2.f32 %v3072_v37  ;;  %v3593_v32 = vmin.f32 %v3548_v52, 0.0  ;;  %vm3577_vm3 = vcmp.gt.f32.partialorder %v3548_v52, 0.0 }
 0x502   : > { %v3001_v9 = vpop.f32.mrf.mxu3  ;;  %v3113_v28 = vsel %vm3033_vm1, %v2996_v13, %v4303_v47 }
 0x503   : > { %v4839_v18 = vpop.eup %4838  ;;  %v3618_v20 = vmul.f32 1.442695, %v3593_v32  ;;  %v3002_v41 = vadd.f32 %v7003_v48, %v3001_v9  ;;  %3174 = vmatmul.f32.gmra.mxu0 %v3113_v28 }
 0x504   : > { %v4354_v49 = vadd.f32 -1.0, %v4839_v18  ;;  %v3850_v18 = vld [vmem:[#allocation4 + $0x5a8] sm:$0xff] }
 0x505   : > { %4842 = vpow2.f32 %v3618_v20  ;;  %v3051_v30 = vmin.f32 %v3002_v41, 0.0  ;;  %vm3035_vm4 = vcmp.gt.f32.partialorder %v3002_v41, 0.0  ;;  %v3309_v20 = vld [vmem:[#allocation4 + $0x420] sm:$0xff]  ;;  %3873 = vmatpush.msra.mxu0 %v3850_v18 }
 0x506   : > { %v3550_v1 = vpop.f32.mrf.mxu1  ;;  %v3656_v0 = vsel %vm3576_vm0, %v3545_v16, %v4354_v49  ;;  %3334 = vmatpush.msra.mxu2 %v3309_v20 }
 0x507   : > { %v4841_v61 = vpop.eup %4840  ;;  %v3074_v54 = vmul.f32 1.442695, %v3051_v30  ;;  %v3551_v60 = vadd.f32 %v6995_v58, %v3550_v1  ;;  %3723 = vmatmul.f32.gmra.mxu3 %v3656_v0 }
 0x508   : > { %v4304_v39 = vadd.f32 -1.0, %v4841_v61 }
 0x509   : > { %4844 = vpow2.f32 %v3074_v54  ;;  %v3594_v17 = vmin.f32 %v3551_v60, 0.0  ;;  %vm3578_vm5 = vcmp.gt.f32.partialorder %v3551_v60, 0.0 }
 0x50a   : > { %v3004_v36 = vpop.f32.mrf.mxu3  ;;  %v3114_v51 = vsel %vm3034_vm2, %v2999_v31, %v4304_v39 }
 0x50b   : > { %v4843_v55 = vpop.eup %4842  ;;  %v3620_v53 = vmul.f32 1.442695, %v3594_v17  ;;  %v3005_v12 = vadd.f32 %v7003_v48, %v3004_v36  ;;  %3177 = vmatmul.f32.gmra.mxu0 %v3114_v51 }
 0x50c   : > { %v4355_v25 = vadd.f32 -1.0, %v4843_v55  ;;  %v3849_v55 = vld [vmem:[#allocation4 + $0x5a0] sm:$0xff] }
 0x50d   : > { %4846 = vpow2.f32 %v3620_v53  ;;  %v3052_v14 = vmin.f32 %v3005_v12, 0.0  ;;  %vm3036_vm6 = vcmp.gt.f32.partialorder %v3005_v12, 0.0  ;;  %v3308_v53 = vld [vmem:[#allocation4 + $0x418] sm:$0xff]  ;;  %3874 = vmatpush.msra.mxu0 %v3849_v55 }
 0x50e   : > { %v3553_v11 = vpop.f32.mrf.mxu1  ;;  %v3657_v27 = vsel %vm3577_vm3, %v3548_v52, %v4355_v25  ;;  %3335 = vmatpush.msra.mxu2 %v3308_v53 }
 0x50f   : > { %v4845_v56 = vpop.eup %4844  ;;  %v3076_v59 = vmul.f32 1.442695, %v3052_v14  ;;  %v3554_v8 = vadd.f32 %v6995_v58, %v3553_v11  ;;  %3726 = vmatmul.f32.gmra.mxu3 %v3657_v27  ;;  %3875 = vmatpush.msra.mxu0 %v3848_v42 }
 0x510   : > { %v4305_v3 = vadd.f32 -1.0, %v4845_v56  ;;  %3336 = vmatpush.msra.mxu2 %v3307_v2 }
 0x511   : > { %4848 = vpow2.f32 %v3076_v59  ;;  %v3595_v19 = vmin.f32 %v3554_v8, 0.0  ;;  %vm3579_vm7 = vcmp.gt.f32.partialorder %v3554_v8, 0.0 }
 0x512   : > { %v3007_v62 = vpop.f32.mrf.mxu3  ;;  %v3115_v10 = vsel %vm3035_vm4, %v3002_v41, %v4305_v3 }
 0x513   : > { %v4847_v13 = vpop.eup %4846  ;;  %v3622_v24 = vmul.f32 1.442695, %v3595_v19  ;;  %v3008_v4 = vadd.f32 %v7003_v48, %v3007_v62  ;;  %3180 = vmatmul.f32.gmra.mxu0 %v3115_v10 }
 0x514   : > { %v4356_v44 = vadd.f32 -1.0, %v4847_v13 }
 0x515   : > { %4850 = vpow2.f32 %v3622_v24  ;;  %v3053_v26 = vmin.f32 %v3008_v4, 0.0  ;;  %vm3037_vm8 = vcmp.gt.f32.partialorder %v3008_v4, 0.0 }
 0x516   : > { %v3556_v15 = vpop.f32.mrf.mxu1  ;;  %v3658_v23 = vsel %vm3578_vm5, %v3551_v60, %v4356_v44 }
 0x517   : > { %v4849_v16 = vpop.eup %4848  ;;  %v3078_v43 = vmul.f32 1.442695, %v3053_v26  ;;  %v3557_v45 = vadd.f32 %v6995_v58, %v3556_v15  ;;  %3729 = vmatmul.f32.gmra.mxu3 %v3658_v23 }
 0x518   : > { %v4306_v33 = vadd.f32 -1.0, %v4849_v16 }
 0x519   : > { %4852 = vpow2.f32 %v3078_v43  ;;  %v3596_v63 = vmin.f32 %v3557_v45, 0.0  ;;  %vm3580_vm9 = vcmp.gt.f32.partialorder %v3557_v45, 0.0 }
 0x51a   : > { %v3010_v31 = vpop.f32.mrf.mxu3  ;;  %v3116_v7 = vsel %vm3036_vm6, %v3005_v12, %v4306_v33  ;;  %v3846_v33 = vld [vmem:[#allocation4 + $0x588] sm:$0xff] }
 0x51b   : > { %v4851_v29 = vpop.eup %4850  ;;  %v3624_v50 = vmul.f32 1.442695, %v3596_v63  ;;  %v3011_v57 = vadd.f32 %v7003_v48, %v3010_v31  ;;  %3183 = vmatmul.f32.gmra.mxu0 %v3116_v7  ;;  %v3845_v31 = vld [vmem:[#allocation4 + $0x580] sm:$0xff] }
 0x51c   : > { %v4357_v6 = vadd.f32 -1.0, %v4851_v29 }
 0x51d   : > { %4854 = vpow2.f32 %v3624_v50  ;;  %v3054_v22 = vmin.f32 %v3011_v57, 0.0  ;;  %vm3038_vm10 = vcmp.gt.f32.partialorder %v3011_v57, 0.0 }
 0x51e   : > { %v3559_v40 = vpop.f32.mrf.mxu1  ;;  %v3659_v37 = vsel %vm3579_vm7, %v3554_v8, %v4357_v6 }
 0x51f   : > { %v4853_v52 = vpop.eup %4852  ;;  %v3080_v47 = vmul.f32 1.442695, %v3054_v22  ;;  %v3560_v32 = vadd.f32 %v6995_v58, %v3559_v40  ;;  %3732 = vmatmul.f32.gmra.mxu3 %v3659_v37 }
 0x520   : > { %v4307_v9 = vadd.f32 -1.0, %v4853_v52 }
 0x521   : > { %4856 = vpow2.f32 %v3080_v47  ;;  %v3597_v28 = vmin.f32 %v3560_v32, 0.0  ;;  %vm3581_vm11 = vcmp.gt.f32.partialorder %v3560_v32, 0.0 }
 0x522   : > { %v3013_v41 = vpop.f32.mrf.mxu3  ;;  %v3117_v49 = vsel %vm3037_vm8, %v3008_v4, %v4307_v9 }
 0x523   : > { %v4855_v30 = vpop.eup %4854  ;;  %v3626_v38 = vmul.f32 1.442695, %v3597_v28  ;;  %v3014_v35 = vadd.f32 %v7003_v48, %v3013_v41  ;;  %3186 = vmatmul.f32.gmra.mxu0 %v3117_v49  ;;  %v3306_v28 = vld [vmem:[#allocation4 + $0x408] sm:$0xff]  ;;  %v7037_v41 = vld [vmem:[%s7148_s5 + $0xa] ss:$0 sm:$0xff]  ;;  %v3305_v49 = vld [vmem:[#allocation4 + $0x400] sm:$0xff] }
 0x524   : > { %v4358_v1 = vadd.f32 -1.0, %v4855_v30  ;;  %3337 = vmatpush.msra.mxu2 %v3306_v28 }
 0x525   : > { %4858 = vpow2.f32 %v3626_v38  ;;  %v3055_v0 = vmin.f32 %v3014_v35, 0.0  ;;  %vm3039_vm12 = vcmp.gt.f32.partialorder %v3014_v35, 0.0 }
 0x526   : > { %v3562_v61 = vpop.f32.mrf.mxu1  ;;  %v3660_v54 = vsel %vm3580_vm9, %v3557_v45, %v4358_v1  ;;  %3338 = vmatpush.msra.mxu2 %v3305_v49 }
 0x527   : > { %v4857_v60 = vpop.eup %4856  ;;  %v3082_v39 = vmul.f32 1.442695, %v3055_v0  ;;  %v3563_v17 = vadd.f32 %v6995_v58, %v3562_v61  ;;  %3735 = vmatmul.f32.gmra.mxu3 %v3660_v54 }
 0x528   : > { %v4308_v36 = vadd.f32 -1.0, %v4857_v60 }
 0x529   : > { %4860 = vpow2.f32 %v3082_v39  ;;  %v3598_v51 = vmin.f32 %v3563_v17, 0.0  ;;  %vm3582_vm13 = vcmp.gt.f32.partialorder %v3563_v17, 0.0 }
 0x52a   : > { %v3016_v12 = vpop.f32.mrf.mxu3  ;;  %v3118_v25 = vsel %vm3038_vm10, %v3011_v57, %v4308_v36 }
 0x52b   : > { %v4859_v14 = vpop.eup %4858  ;;  %v3628_v46 = vmul.f32 1.442695, %v3598_v51  ;;  %v3017_v5 = vadd.f32 %v7003_v48, %v3016_v12  ;;  %3189 = vmatmul.f32.gmra.mxu0 %v3118_v25  ;;  %v7044_v51 = vld [vmem:[%s7148_s5 + $0x7] ss:$0 sm:$0xff] }
 0x52c   : > { %v4359_v11 = vadd.f32 -1.0, %v4859_v14 }
 0x52d   : > { %4862 = vpow2.f32 %v3628_v46  ;;  %v3056_v27 = vmin.f32 %v3017_v5, 0.0  ;;  %vm3040_vm14 = vcmp.gt.f32.partialorder %v3017_v5, 0.0 }
 0x52e   : > { %v3565_v56 = vpop.f32.mrf.mxu1  ;;  %v3661_v59 = vsel %vm3581_vm11, %v3560_v32, %v4359_v11 }
 0x52f   : > { %v4861_v8 = vpop.eup %4860  ;;  %v3084_v3 = vmul.f32 1.442695, %v3056_v27  ;;  %v3566_v19 = vadd.f32 %v6995_v58, %v3565_v56  ;;  %3738 = vmatmul.f32.gmra.mxu3 %v3661_v59  ;;  %v3847_v58 = vld [vmem:[#allocation4 + $0x590] sm:$0xff] }
 0x530   : > { %v4309_v62 = vadd.f32 -1.0, %v4861_v8  ;;  %3876 = vmatpush.msra.mxu0 %v3847_v58 }
 0x531   : > { %4864 = vpow2.f32 %v3084_v3  ;;  %v3599_v10 = vmin.f32 %v3566_v19, 0.0  ;;  %vm3583_vm15 = vcmp.gt.f32.partialorder %v3566_v19, 0.0 }
 0x532   : > { %v3019_v13 = vpop.f32.mrf.mxu3  ;;  %v3119_v24 = vsel %vm3039_vm12, %v3014_v35, %v4309_v62  ;;  %3877 = vmatpush.msra.mxu0 %v3846_v33 }
 0x533   : > { %v4863_v4 = vpop.eup %4862  ;;  %v3630_v44 = vmul.f32 1.442695, %v3599_v10  ;;  %v3020_v26 = vadd.f32 %v7003_v48, %v3019_v13  ;;  %3192 = vmatmul.f32.gmra.mxu0 %v3119_v24 }
 0x534   : > { %v4360_v21 = vadd.f32 -1.0, %v4863_v4  ;;  %3878 = vmatpush.msra.mxu0 %v3845_v31 }
 0x535   : > { %4866 = vpow2.f32 %v3630_v44  ;;  %v3057_v15 = vmin.f32 %v3020_v26, 0.0  ;;  %vm3041_vm1 = vcmp.gt.f32.partialorder %v3020_v26, 0.0 }
 0x536   : > { %v3662_v23 = vsel %vm3582_vm13, %v3563_v17, %v4360_v21 }
 0x537   : > { %v4865_v16 = vpop.eup %4864  ;;  %v3086_v43 = vmul.f32 1.442695, %v3057_v15  ;;  %3741 = vmatmul.f32.gmra.mxu3 %v3662_v23 }
 0x538   : > { %v4310_v45 = vadd.f32 -1.0, %v4865_v16 }
 0x539   : > { %4868 = vpow2.f32 %v3086_v43 }
 0x53a   : > { %v3022_v63 = vpop.f32.mrf.mxu3  ;;  %v3120_v34 = vsel %vm3040_vm14, %v3017_v5, %v4310_v45 }
 0x53b   : > { %v4867_v7 = vpop.eup %4866  ;;  %v3023_v29 = vadd.f32 %v7003_v48, %v3022_v63  ;;  %3195 = vmatmul.f32.gmra.mxu0 %v3120_v34 }
 0x53c   : > { %v4361_v50 = vadd.f32 -1.0, %v4867_v7 }
 0x53d   : > { %v3058_v57 = vmin.f32 %v3023_v29, 0.0  ;;  %vm3042_vm0 = vcmp.gt.f32.partialorder %v3023_v29, 0.0 }
 0x53e   : > { %v3663_v6 = vsel %vm3583_vm15, %v3566_v19, %v4361_v50 }
 0x53f   : > { %v4869_v22 = vpop.eup %4868  ;;  %v3088_v40 = vmul.f32 1.442695, %v3058_v57  ;;  %3744 = vmatmul.f32.gmra.mxu3 %v3663_v6 }
 0x540   : > { %v4311_v37 = vadd.f32 -1.0, %v4869_v22 }
 0x541   : > { %4870 = vpow2.f32 %v3088_v40 }
 0x542   : > { %v3025_v52 = vpop.f32.mrf.mxu3  ;;  %v3121_v47 = vsel %vm3041_vm1, %v3020_v26, %v4311_v37 }
 0x543   : > { %v3026_v32 = vadd.f32 %v7003_v48, %v3025_v52  ;;  %3198 = vmatmul.f32.gmra.mxu0 %v3121_v47 }
 0x545   : > { %v3059_v9 = vmin.f32 %v3026_v32, 0.0  ;;  %vm3043_vm2 = vcmp.gt.f32.partialorder %v3026_v32, 0.0 }
 0x547   : > { %v4871_v18 = vpop.eup %4870  ;;  %v3090_v20 = vmul.f32 1.442695, %v3059_v9 }
 0x548   : > { %v4312_v30 = vadd.f32 -1.0, %v4871_v18 }
 0x549   : > { %4872 = vpow2.f32 %v3090_v20 }
 0x54a   : > { %v3700_v38 = vpop.f32.mrf.mxu3  ;;  %v3122_v35 = vsel %vm3042_vm0, %v3023_v29, %v4312_v30 }
 0x54b   : > { %v3701_v48 = vadd.f32 %v7037_v41, %v3700_v38  ;;  %3201 = vmatmul.f32.gmra.mxu0 %v3122_v35 }
 0x54d   : > { %v3764_v1 = vmin.f32 %v3701_v48, 0.0  ;;  %vm3748_vm3 = vcmp.gt.f32.partialorder %v3701_v48, 0.0 }
 0x54f   : > { %v4873_v0 = vpop.eup %4872  ;;  %v3780_v61 = vmul.f32 1.442695, %v3764_v1 }
 0x550   : > { %v4313_v54 = vadd.f32 -1.0, %v4873_v0 }
 0x551   : > { %4874 = vpow2.f32 %v3780_v61 }
 0x552   : > { %v3703_v60 = vpop.f32.mrf.mxu3  ;;  %v3123_v39 = vsel %vm3043_vm2, %v3026_v32, %v4313_v54 }
 0x553   : > { %v3704_v17 = vadd.f32 %v7037_v41, %v3703_v60  ;;  %3204 = vmatmul.f32.gmra.mxu0 %v3123_v39 }
 0x555   : > { %v3765_v36 = vmin.f32 %v3704_v17, 0.0  ;;  %vm3749_vm4 = vcmp.gt.f32.partialorder %v3704_v17, 0.0 }
 0x557   : > { %v4875_v55 = vpop.eup %4874  ;;  %v3782_v53 = vmul.f32 1.442695, %v3765_v36 }
 0x558   : > { %v4362_v12 = vadd.f32 -1.0, %v4875_v55  ;;  %v3160_v25 = vpop.f32.mrf.mxu0 }
 0x559   : > { %4876 = vpow2.f32 %v3782_v53  ;;  %v3161_v14 = vadd.f32 %v7044_v51, %v3160_v25 }
 0x55a   : > { %v3828_v46 = vsel %vm3748_vm3, %v3701_v48, %v4362_v12  ;;  %v3706_v5 = vpop.f32.mrf.mxu3 }
 0x55b   : > { %v3224_v11 = vmin.f32 %v3161_v14, 0.0  ;;  %v3707_v27 = vadd.f32 %v7037_v41, %v3706_v5  ;;  %3879 = vmatmul.f32.vlgmr.msra.gmra.mxu0 %v3828_v46  ;;  %vm3208_vm5 = vcmp.gt.f32.partialorder %v3161_v14, 0.0 }
 0x55d   : > { %v3240_v56 = vmul.f32 1.442695, %v3224_v11  ;;  %v3766_v59 = vmin.f32 %v3707_v27, 0.0  ;;  %vm3750_vm6 = vcmp.gt.f32.partialorder %v3707_v27, 0.0 }
 0x55f   : > { %v4877_v8 = vpop.eup %4876  ;;  %4878 = vpow2.f32 %v3240_v56  ;;  %v3784_v3 = vmul.f32 1.442695, %v3766_v59 }
 0x560   : > { %v3163_v19 = vpop.f32.mrf.mxu0  ;;  %v4363_v62 = vadd.f32 -1.0, %v4877_v8 }
 0x561   : > { %4880 = vpow2.f32 %v3784_v3  ;;  %v3164_v10 = vadd.f32 %v7044_v51, %v3163_v19 }
 0x562   : > { %v3709_v13 = vpop.f32.mrf.mxu3  ;;  %v3829_v24 = vsel %vm3749_vm4, %v3704_v17, %v4363_v62 }
 0x563   : > { %v3225_v4 = vmin.f32 %v3164_v10, 0.0  ;;  %v3710_v44 = vadd.f32 %v7037_v41, %v3709_v13  ;;  %3882 = vmatmul.f32.gmra.mxu0 %v3829_v24  ;;  %vm3209_vm7 = vcmp.gt.f32.partialorder %v3164_v10, 0.0 }
 0x565   : > { %v4879_v26 = vpop.eup %4878  ;;  %v3242_v21 = vmul.f32 1.442695, %v3225_v4  ;;  %v3767_v42 = vmin.f32 %v3710_v44, 0.0  ;;  %vm3751_vm8 = vcmp.gt.f32.partialorder %v3710_v44, 0.0 }
 0x566   : > { %v4314_v15 = vadd.f32 -1.0, %v4879_v26 }
 0x567   : > { %v4881_v23 = vpop.eup %4880  ;;  %4882 = vpow2.f32 %v3242_v21  ;;  %v3786_v58 = vmul.f32 1.442695, %v3767_v42 }
 0x568   : > { %v3166_v16 = vpop.f32.mrf.mxu0  ;;  %v3288_v43 = vsel %vm3208_vm5, %v3161_v14, %v4314_v15  ;;  %v4364_v45 = vadd.f32 -1.0, %v4881_v23 }
 0x569   : > { %4884 = vpow2.f32 %v3786_v58  ;;  %v3167_v33 = vadd.f32 %v7044_v51, %v3166_v16  ;;  %3339 = vmatmul.f32.vlgmr.msra.gmra.mxu2 %v3288_v43 }
 0x56a   : > { %v3712_v63 = vpop.f32.mrf.mxu3  ;;  %v3830_v34 = vsel %vm3750_vm6, %v3707_v27, %v4364_v45 }
 0x56b   : > { %v3226_v2 = vmin.f32 %v3167_v33, 0.0  ;;  %v3713_v31 = vadd.f32 %v7037_v41, %v3712_v63  ;;  %3885 = vmatmul.f32.gmra.mxu0 %v3830_v34  ;;  %vm3210_vm9 = vcmp.gt.f32.partialorder %v3167_v33, 0.0 }
 0x56d   : > { %v4883_v7 = vpop.eup %4882  ;;  %v3244_v29 = vmul.f32 1.442695, %v3226_v2  ;;  %v3768_v50 = vmin.f32 %v3713_v31, 0.0  ;;  %vm3752_vm10 = vcmp.gt.f32.partialorder %v3713_v31, 0.0 }
 0x56e   : > { %v4315_v57 = vadd.f32 -1.0, %v4883_v7 }
 0x56f   : > { %v4885_v6 = vpop.eup %4884  ;;  %4886 = vpow2.f32 %v3244_v29  ;;  %v3788_v22 = vmul.f32 1.442695, %v3768_v50 }
 0x570   : > { %v3169_v40 = vpop.f32.mrf.mxu0  ;;  %v3289_v37 = vsel %vm3209_vm7, %v3164_v10, %v4315_v57  ;;  %v4365_v52 = vadd.f32 -1.0, %v4885_v6 }
 0x571   : > { %4888 = vpow2.f32 %v3788_v22  ;;  %v3170_v47 = vadd.f32 %v7044_v51, %v3169_v40  ;;  %3342 = vmatmul.f32.gmra.mxu2 %v3289_v37 }
 0x572   : > { %v3715_v32 = vpop.f32.mrf.mxu3  ;;  %v3831_v9 = vsel %vm3751_vm8, %v3710_v44, %v4365_v52 }
 0x573   : > { %v3227_v28 = vmin.f32 %v3170_v47, 0.0  ;;  %v3716_v18 = vadd.f32 %v7037_v41, %v3715_v32  ;;  %3888 = vmatmul.f32.gmra.mxu0 %v3831_v9  ;;  %vm3211_vm11 = vcmp.gt.f32.partialorder %v3170_v47, 0.0 }
 0x575   : > { %v4887_v20 = vpop.eup %4886  ;;  %v3246_v49 = vmul.f32 1.442695, %v3227_v28  ;;  %v3769_v30 = vmin.f32 %v3716_v18, 0.0  ;;  %vm3753_vm12 = vcmp.gt.f32.partialorder %v3716_v18, 0.0 }
 0x576   : > { %v4316_v38 = vadd.f32 -1.0, %v4887_v20 }
 0x577   : > { %v4889_v35 = vpop.eup %4888  ;;  %4890 = vpow2.f32 %v3246_v49  ;;  %v3790_v48 = vmul.f32 1.442695, %v3769_v30 }
 0x578   : > { %v3172_v1 = vpop.f32.mrf.mxu0  ;;  %v3290_v0 = vsel %vm3210_vm9, %v3167_v33, %v4316_v38  ;;  %v4366_v61 = vadd.f32 -1.0, %v4889_v35 }
 0x579   : > { %4892 = vpow2.f32 %v3790_v48  ;;  %v3173_v54 = vadd.f32 %v7044_v51, %v3172_v1  ;;  %3345 = vmatmul.f32.gmra.mxu2 %v3290_v0 }
 0x57a   : > { %v3718_v60 = vpop.f32.mrf.mxu3  ;;  %v3832_v39 = vsel %vm3752_vm10, %v3713_v31, %v4366_v61 }
 0x57b   : > { %v3228_v17 = vmin.f32 %v3173_v54, 0.0  ;;  %v3719_v36 = vadd.f32 %v7037_v41, %v3718_v60  ;;  %3891 = vmatmul.f32.gmra.mxu0 %v3832_v39  ;;  %vm3212_vm13 = vcmp.gt.f32.partialorder %v3173_v54, 0.0 }
 0x57d   : > { %v4891_v55 = vpop.eup %4890  ;;  %v3248_v53 = vmul.f32 1.442695, %v3228_v17  ;;  %v3770_v12 = vmin.f32 %v3719_v36, 0.0  ;;  %vm3754_vm14 = vcmp.gt.f32.partialorder %v3719_v36, 0.0 }
 0x57e   : > { %v4317_v25 = vadd.f32 -1.0, %v4891_v55 }
 0x57f   : > { %v4893_v14 = vpop.eup %4892  ;;  %4894 = vpow2.f32 %v3248_v53  ;;  %v3792_v46 = vmul.f32 1.442695, %v3770_v12 }
 0x580   : > { %v3175_v5 = vpop.f32.mrf.mxu0  ;;  %v3291_v11 = vsel %vm3211_vm11, %v3170_v47, %v4317_v25  ;;  %v4367_v27 = vadd.f32 -1.0, %v4893_v14 }
 0x581   : > { %4896 = vpow2.f32 %v3792_v46  ;;  %v3176_v56 = vadd.f32 %v7044_v51, %v3175_v5  ;;  %3348 = vmatmul.f32.gmra.mxu2 %v3291_v11 }
 0x582   : > { %v3721_v59 = vpop.f32.mrf.mxu3  ;;  %v3833_v8 = vsel %vm3753_vm12, %v3716_v18, %v4367_v27 }
 0x583   : > { %v3229_v3 = vmin.f32 %v3176_v56, 0.0  ;;  %v3722_v19 = vadd.f32 %v7037_v41, %v3721_v59  ;;  %3894 = vmatmul.f32.gmra.mxu0 %v3833_v8  ;;  %vm3213_vm15 = vcmp.gt.f32.partialorder %v3176_v56, 0.0 }
 0x585   : > { %v4895_v62 = vpop.eup %4894  ;;  %v3250_v10 = vmul.f32 1.442695, %v3229_v3  ;;  %v3771_v13 = vmin.f32 %v3722_v19, 0.0  ;;  %vm3755_vm1 = vcmp.gt.f32.partialorder %v3722_v19, 0.0 }
 0x586   : > { %v4318_v24 = vadd.f32 -1.0, %v4895_v62 }
 0x587   : > { %v4897_v4 = vpop.eup %4896  ;;  %4898 = vpow2.f32 %v3250_v10  ;;  %v3794_v44 = vmul.f32 1.442695, %v3771_v13 }
 0x588   : > { %v3178_v26 = vpop.f32.mrf.mxu0  ;;  %v3292_v21 = vsel %vm3212_vm13, %v3173_v54, %v4318_v24  ;;  %v4368_v42 = vadd.f32 -1.0, %v4897_v4 }
 0x589   : > { %4900 = vpow2.f32 %v3794_v44  ;;  %v3179_v15 = vadd.f32 %v7044_v51, %v3178_v26  ;;  %3351 = vmatmul.f32.gmra.mxu2 %v3292_v21 }
 0x58a   : > { %v3724_v23 = vpop.f32.mrf.mxu3  ;;  %v3834_v58 = vsel %vm3754_vm14, %v3719_v36, %v4368_v42 }
 0x58b   : > { %v3230_v16 = vmin.f32 %v3179_v15, 0.0  ;;  %v3725_v43 = vadd.f32 %v7037_v41, %v3724_v23  ;;  %3897 = vmatmul.f32.gmra.mxu0 %v3834_v58  ;;  %vm3214_vm0 = vcmp.gt.f32.partialorder %v3179_v15, 0.0 }
 0x58d   : > { %v4899_v45 = vpop.eup %4898  ;;  %v3252_v33 = vmul.f32 1.442695, %v3230_v16  ;;  %v3772_v63 = vmin.f32 %v3725_v43, 0.0  ;;  %vm3756_vm2 = vcmp.gt.f32.partialorder %v3725_v43, 0.0 }
 0x58e   : > { %v4319_v34 = vadd.f32 -1.0, %v4899_v45 }
 0x58f   : > { %v4901_v2 = vpop.eup %4900  ;;  %4902 = vpow2.f32 %v3252_v33  ;;  %v3796_v31 = vmul.f32 1.442695, %v3772_v63 }
 0x590   : > { %v3181_v7 = vpop.f32.mrf.mxu0  ;;  %v3293_v29 = vsel %vm3213_vm15, %v3176_v56, %v4319_v34  ;;  %v4369_v50 = vadd.f32 -1.0, %v4901_v2 }
 0x591   : > { %4904 = vpow2.f32 %v3796_v31  ;;  %v3182_v57 = vadd.f32 %v7044_v51, %v3181_v7  ;;  %3354 = vmatmul.f32.gmra.mxu2 %v3293_v29 }
 0x592   : > { %v3727_v6 = vpop.f32.mrf.mxu3  ;;  %v3835_v22 = vsel %vm3755_vm1, %v3722_v19, %v4369_v50 }
 0x593   : > { %v3231_v40 = vmin.f32 %v3182_v57, 0.0  ;;  %v3728_v37 = vadd.f32 %v7037_v41, %v3727_v6  ;;  %3900 = vmatmul.f32.gmra.mxu0 %v3835_v22  ;;  %vm3215_vm3 = vcmp.gt.f32.partialorder %v3182_v57, 0.0 }
 0x595   : > { %v4903_v52 = vpop.eup %4902  ;;  %v3254_v47 = vmul.f32 1.442695, %v3231_v40  ;;  %v3773_v32 = vmin.f32 %v3728_v37, 0.0  ;;  %vm3757_vm4 = vcmp.gt.f32.partialorder %v3728_v37, 0.0 }
 0x596   : > { %v4320_v9 = vadd.f32 -1.0, %v4903_v52 }
 0x597   : > { %v4905_v28 = vpop.eup %4904  ;;  %4906 = vpow2.f32 %v3254_v47  ;;  %v3798_v18 = vmul.f32 1.442695, %v3773_v32 }
 0x598   : > { %v3184_v20 = vpop.f32.mrf.mxu0  ;;  %v3294_v49 = vsel %vm3214_vm0, %v3179_v15, %v4320_v9  ;;  %v4370_v30 = vadd.f32 -1.0, %v4905_v28 }
 0x599   : > { %4908 = vpow2.f32 %v3798_v18  ;;  %v3185_v38 = vadd.f32 %v7044_v51, %v3184_v20  ;;  %3357 = vmatmul.f32.gmra.mxu2 %v3294_v49 }
 0x59a   : > { %v3730_v35 = vpop.f32.mrf.mxu3  ;;  %v3836_v48 = vsel %vm3756_vm2, %v3725_v43, %v4370_v30 }
 0x59b   : > { %v3232_v1 = vmin.f32 %v3185_v38, 0.0  ;;  %v3731_v0 = vadd.f32 %v7037_v41, %v3730_v35  ;;  %3903 = vmatmul.f32.gmra.mxu0 %v3836_v48  ;;  %vm3216_vm5 = vcmp.gt.f32.partialorder %v3185_v38, 0.0 }
 0x59d   : > { %v4907_v61 = vpop.eup %4906  ;;  %v3256_v54 = vmul.f32 1.442695, %v3232_v1  ;;  %v3774_v60 = vmin.f32 %v3731_v0, 0.0  ;;  %vm3758_vm6 = vcmp.gt.f32.partialorder %v3731_v0, 0.0 }
 0x59e   : > { %v4321_v39 = vadd.f32 -1.0, %v4907_v61 }
 0x59f   : > { %v4909_v17 = vpop.eup %4908  ;;  %4910 = vpow2.f32 %v3256_v54  ;;  %v3800_v36 = vmul.f32 1.442695, %v3774_v60 }
 0x5a0   : > { %v3187_v55 = vpop.f32.mrf.mxu0  ;;  %v3295_v53 = vsel %vm3215_vm3, %v3182_v57, %v4321_v39  ;;  %v4371_v12 = vadd.f32 -1.0, %v4909_v17 }
 0x5a1   : > { %4912 = vpow2.f32 %v3800_v36  ;;  %v3188_v25 = vadd.f32 %v7044_v51, %v3187_v55  ;;  %3360 = vmatmul.f32.gmra.mxu2 %v3295_v53 }
 0x5a2   : > { %v3733_v14 = vpop.f32.mrf.mxu3  ;;  %v3837_v46 = vsel %vm3757_vm4, %v3728_v37, %v4371_v12 }
 0x5a3   : > { %v3233_v5 = vmin.f32 %v3188_v25, 0.0  ;;  %v3734_v11 = vadd.f32 %v7037_v41, %v3733_v14  ;;  %3906 = vmatmul.f32.gmra.mxu0 %v3837_v46  ;;  %vm3217_vm7 = vcmp.gt.f32.partialorder %v3188_v25, 0.0 }
 0x5a5   : > { %v4911_v27 = vpop.eup %4910  ;;  %v3258_v56 = vmul.f32 1.442695, %v3233_v5  ;;  %v3775_v59 = vmin.f32 %v3734_v11, 0.0  ;;  %vm3759_vm8 = vcmp.gt.f32.partialorder %v3734_v11, 0.0 }
 0x5a6   : > { %v4322_v8 = vadd.f32 -1.0, %v4911_v27 }
 0x5a7   : > { %v4913_v3 = vpop.eup %4912  ;;  %4914 = vpow2.f32 %v3258_v56  ;;  %v3802_v19 = vmul.f32 1.442695, %v3775_v59 }
 0x5a8   : > { %v3190_v62 = vpop.f32.mrf.mxu0  ;;  %v3296_v10 = vsel %vm3216_vm5, %v3185_v38, %v4322_v8  ;;  %v4372_v13 = vadd.f32 -1.0, %v4913_v3 }
 0x5a9   : > { %4916 = vpow2.f32 %v3802_v19  ;;  %v3191_v24 = vadd.f32 %v7044_v51, %v3190_v62  ;;  %3363 = vmatmul.f32.gmra.mxu2 %v3296_v10 }
 0x5aa   : > { %v3736_v4 = vpop.f32.mrf.mxu3  ;;  %v3838_v44 = vsel %vm3758_vm6, %v3731_v0, %v4372_v13 }
 0x5ab   : > { %v3234_v26 = vmin.f32 %v3191_v24, 0.0  ;;  %v3737_v21 = vadd.f32 %v7037_v41, %v3736_v4  ;;  %3909 = vmatmul.f32.gmra.mxu0 %v3838_v44  ;;  %vm3218_vm9 = vcmp.gt.f32.partialorder %v3191_v24, 0.0 }
 0x5ad   : > { %v4915_v42 = vpop.eup %4914  ;;  %v3260_v15 = vmul.f32 1.442695, %v3234_v26  ;;  %v3776_v23 = vmin.f32 %v3737_v21, 0.0  ;;  %vm3760_vm10 = vcmp.gt.f32.partialorder %v3737_v21, 0.0 }
 0x5ae   : > { %v4323_v58 = vadd.f32 -1.0, %v4915_v42 }
 0x5af   : > { %v4917_v16 = vpop.eup %4916  ;;  %4918 = vpow2.f32 %v3260_v15  ;;  %v3804_v43 = vmul.f32 1.442695, %v3776_v23 }
 0x5b0   : > { %v3193_v45 = vpop.f32.mrf.mxu0  ;;  %v3297_v33 = vsel %vm3217_vm7, %v3188_v25, %v4323_v58  ;;  %v4373_v63 = vadd.f32 -1.0, %v4917_v16 }
 0x5b1   : > { %4920 = vpow2.f32 %v3804_v43  ;;  %v3194_v34 = vadd.f32 %v7044_v51, %v3193_v45  ;;  %3366 = vmatmul.f32.gmra.mxu2 %v3297_v33 }
 0x5b2   : > { %v3739_v2 = vpop.f32.mrf.mxu3  ;;  %v3839_v31 = vsel %vm3759_vm8, %v3734_v11, %v4373_v63 }
 0x5b3   : > { %v3235_v7 = vmin.f32 %v3194_v34, 0.0  ;;  %v3740_v29 = vadd.f32 %v7037_v41, %v3739_v2  ;;  %3912 = vmatmul.f32.gmra.mxu0 %v3839_v31  ;;  %vm3219_vm11 = vcmp.gt.f32.partialorder %v3194_v34, 0.0  ;;  %v7079_v2 = vld [vmem:[%s7148_s5 + $0xb] ss:$0 sm:$0xff]  ;;  %v7084_v31 = vld [vmem:[%s7148_s5 + $0x8] ss:$0 sm:$0xff] }
 0x5b5   : > { %v4919_v50 = vpop.eup %4918  ;;  %v3262_v57 = vmul.f32 1.442695, %v3235_v7  ;;  %v3777_v6 = vmin.f32 %v3740_v29, 0.0  ;;  %vm3761_vm12 = vcmp.gt.f32.partialorder %v3740_v29, 0.0 }
 0x5b6   : > { %v4324_v22 = vadd.f32 -1.0, %v4919_v50 }
 0x5b7   : > { %v4921_v40 = vpop.eup %4920  ;;  %4922 = vpow2.f32 %v3262_v57  ;;  %v3806_v37 = vmul.f32 1.442695, %v3777_v6 }
 0x5b8   : > { %v3196_v52 = vpop.f32.mrf.mxu0  ;;  %v3298_v47 = vsel %vm3218_vm9, %v3191_v24, %v4324_v22  ;;  %v4374_v32 = vadd.f32 -1.0, %v4921_v40 }
 0x5b9   : > { %4924 = vpow2.f32 %v3806_v37  ;;  %v3197_v9 = vadd.f32 %v7044_v51, %v3196_v52  ;;  %3369 = vmatmul.f32.gmra.mxu2 %v3298_v47 }
 0x5ba   : > { %v3742_v28 = vpop.f32.mrf.mxu3  ;;  %v3840_v18 = vsel %vm3760_vm10, %v3737_v21, %v4374_v32 }
 0x5bb   : > { %v3236_v20 = vmin.f32 %v3197_v9, 0.0  ;;  %v3743_v49 = vadd.f32 %v7037_v41, %v3742_v28  ;;  %3915 = vmatmul.f32.gmra.mxu0 %v3840_v18  ;;  %vm3220_vm13 = vcmp.gt.f32.partialorder %v3197_v9, 0.0 }
 0x5bd   : > { %v4923_v30 = vpop.eup %4922  ;;  %v3264_v38 = vmul.f32 1.442695, %v3236_v20  ;;  %v3778_v35 = vmin.f32 %v3743_v49, 0.0  ;;  %vm3762_vm14 = vcmp.gt.f32.partialorder %v3743_v49, 0.0 }
 0x5be   : > { %v4325_v48 = vadd.f32 -1.0, %v4923_v30 }
 0x5bf   : > { %v4925_v1 = vpop.eup %4924  ;;  %4926 = vpow2.f32 %v3264_v38  ;;  %v3808_v0 = vmul.f32 1.442695, %v3778_v35 }
 0x5c0   : > { %v3199_v61 = vpop.f32.mrf.mxu0  ;;  %v3299_v54 = vsel %vm3219_vm11, %v3194_v34, %v4325_v48  ;;  %v4375_v60 = vadd.f32 -1.0, %v4925_v1 }
 0x5c1   : > { %4928 = vpow2.f32 %v3808_v0  ;;  %v3200_v39 = vadd.f32 %v7044_v51, %v3199_v61  ;;  %3372 = vmatmul.f32.gmra.mxu2 %v3299_v54 }
 0x5c2   : > { %v3745_v17 = vpop.f32.mrf.mxu3  ;;  %v3841_v36 = vsel %vm3761_vm12, %v3740_v29, %v4375_v60 }
 0x5c3   : > { %v3237_v55 = vmin.f32 %v3200_v39, 0.0  ;;  %v3746_v53 = vadd.f32 %v7037_v41, %v3745_v17  ;;  %3918 = vmatmul.f32.gmra.mxu0 %v3841_v36  ;;  %vm3221_vm15 = vcmp.gt.f32.partialorder %v3200_v39, 0.0 }
 0x5c5   : > { %v4927_v12 = vpop.eup %4926  ;;  %v3266_v25 = vmul.f32 1.442695, %v3237_v55  ;;  %v3779_v14 = vmin.f32 %v3746_v53, 0.0  ;;  %vm3763_vm1 = vcmp.gt.f32.partialorder %v3746_v53, 0.0 }
 0x5c6   : > { %v4326_v46 = vadd.f32 -1.0, %v4927_v12 }
 0x5c7   : > { %v4929_v5 = vpop.eup %4928  ;;  %4930 = vpow2.f32 %v3266_v25  ;;  %v3810_v11 = vmul.f32 1.442695, %v3779_v14 }
 0x5c8   : > { %v3202_v27 = vpop.f32.mrf.mxu0  ;;  %v3300_v56 = vsel %vm3220_vm13, %v3197_v9, %v4326_v46  ;;  %v4376_v59 = vadd.f32 -1.0, %v4929_v5 }
 0x5c9   : > { %4932 = vpow2.f32 %v3810_v11  ;;  %v3203_v8 = vadd.f32 %v7044_v51, %v3202_v27  ;;  %3375 = vmatmul.f32.gmra.mxu2 %v3300_v56 }
 0x5ca   : > { %v3842_v3 = vsel %vm3762_vm14, %v3743_v49, %v4376_v59 }
 0x5cb   : > { %v3238_v19 = vmin.f32 %v3203_v8, 0.0  ;;  %3921 = vmatmul.f32.gmra.mxu0 %v3842_v3  ;;  %vm3222_vm0 = vcmp.gt.f32.partialorder %v3203_v8, 0.0 }
 0x5cd   : > { %v4931_v41 = vpop.eup %4930  ;;  %v3268_v62 = vmul.f32 1.442695, %v3238_v19 }
 0x5ce   : > { %v4327_v10 = vadd.f32 -1.0, %v4931_v41 }
 0x5cf   : > { %v4933_v13 = vpop.eup %4932  ;;  %4934 = vpow2.f32 %v3268_v62 }
 0x5d0   : > { %v3205_v24 = vpop.f32.mrf.mxu0  ;;  %v3301_v4 = vsel %vm3221_vm15, %v3200_v39, %v4327_v10  ;;  %v4377_v44 = vadd.f32 -1.0, %v4933_v13 }
 0x5d1   : > { %v3206_v26 = vadd.f32 %v7044_v51, %v3205_v24  ;;  %3378 = vmatmul.f32.gmra.mxu2 %v3301_v4 }
 0x5d2   : > { %v3843_v21 = vsel %vm3763_vm1, %v3746_v53, %v4377_v44 }
 0x5d3   : > { %v3239_v42 = vmin.f32 %v3206_v26, 0.0  ;;  %3924 = vmatmul.f32.gmra.mxu0 %v3843_v21  ;;  %vm3223_vm2 = vcmp.gt.f32.partialorder %v3206_v26, 0.0 }
 0x5d5   : > { %v4935_v15 = vpop.eup %4934  ;;  %v3270_v23 = vmul.f32 1.442695, %v3239_v42 }
 0x5d6   : > { %v4328_v58 = vadd.f32 -1.0, %v4935_v15 }
 0x5d7   : > { %4936 = vpow2.f32 %v3270_v23 }
 0x5d8   : > { %v3880_v16 = vpop.f32.mrf.mxu0  ;;  %v3302_v43 = vsel %vm3222_vm0, %v3203_v8, %v4328_v58 }
 0x5d9   : > { %3381 = vmatmul.f32.gmra.mxu2 %v3302_v43  ;;  %v3881_v29 = vadd.f32 %v7079_v2, %v3880_v16 }
 0x5dd   : > { %v4937_v45 = vpop.eup %4936 }
 0x5de   : > { %v4329_v33 = vadd.f32 -1.0, %v4937_v45 }
 0x5e0   : > { %v3883_v63 = vpop.f32.mrf.mxu0  ;;  %v3303_v34 = vsel %vm3223_vm2, %v3206_v26, %v4329_v33 }
 0x5e1   : > { %3384 = vmatmul.f32.gmra.mxu2 %v3303_v34  ;;  %v3884_v40 = vadd.f32 %v7079_v2, %v3883_v63 }
 0x5e8   : > { %v3886_v51 = vpop.f32.mrf.mxu0 }
 0x5e9   : > { %v3887_v9 = vadd.f32 %v7079_v2, %v3886_v51 }
 0x5ec   : > { %v3340_v7 = vpop.f32.mrf.mxu2 }
 0x5ed   : > { %v3341_v50 = vadd.f32 %v7084_v31, %v3340_v7 }
 0x5ef   : > { %v3928_v57 = vadd.f32 %v3881_v29, %v3341_v50 }
 0x5f0   : > { %v3889_v6 = vpop.f32.mrf.mxu0 }
 0x5f1   : > { %3944 = vst [vmem:[%s7092_s18] sm:$0xff] %v3928_v57  ;;  %v3890_v30 = vadd.f32 %v7079_v2, %v3889_v6 }
 0x5f4   : > { %v3343_v22 = vpop.f32.mrf.mxu2 }
 0x5f5   : > { %v3344_v37 = vadd.f32 %v7084_v31, %v3343_v22 }
 0x5f7   : > { %v3929_v52 = vadd.f32 %v3884_v40, %v3344_v37 }
 0x5f8   : > { %v3892_v47 = vpop.f32.mrf.mxu0 }
 0x5f9   : > { %3945 = vst [vmem:[%s7092_s18 + $0x8] sm:$0xff] %v3929_v52  ;;  %v3893_v0 = vadd.f32 %v7079_v2, %v3892_v47 }
 0x5fc   : > { %v3346_v32 = vpop.f32.mrf.mxu2 }
 0x5fd   : > { %v3347_v28 = vadd.f32 %v7084_v31, %v3346_v32 }
 0x5ff   : > { %v3930_v18 = vadd.f32 %v3887_v9, %v3347_v28 }
 0x600   : > { %v3895_v20 = vpop.f32.mrf.mxu0 }
 0x601   : > { %3946 = vst [vmem:[%s7092_s18 + $0x10] sm:$0xff] %v3930_v18  ;;  %v3896_v17 = vadd.f32 %v7079_v2, %v3895_v20 }
 0x604   : > { %v3349_v49 = vpop.f32.mrf.mxu2 }
 0x605   : > { %v3350_v38 = vadd.f32 %v7084_v31, %v3349_v49 }
 0x607   : > { %v3931_v35 = vadd.f32 %v3890_v30, %v3350_v38 }
 0x608   : > { %v3898_v48 = vpop.f32.mrf.mxu0 }
 0x609   : > { %3947 = vst [vmem:[%s7092_s18 + $0x18] sm:$0xff] %v3931_v35  ;;  %v3899_v25 = vadd.f32 %v7079_v2, %v3898_v48 }
 0x60c   : > { %v3352_v1 = vpop.f32.mrf.mxu2 }
 0x60d   : > { %v3353_v61 = vadd.f32 %v7084_v31, %v3352_v1 }
 0x60f   : > { %v3932_v54 = vadd.f32 %v3893_v0, %v3353_v61 }
 0x610   : > { %v3901_v60 = vpop.f32.mrf.mxu0 }
 0x611   : > { %3948 = vst [vmem:[%s7092_s18 + $0x20] sm:$0xff] %v3932_v54  ;;  %v3902_v11 = vadd.f32 %v7079_v2, %v3901_v60 }
 0x614   : > { %v3355_v39 = vpop.f32.mrf.mxu2 }
 0x615   : > { %v3356_v36 = vadd.f32 %v7084_v31, %v3355_v39 }
 0x617   : > { %v3933_v55 = vadd.f32 %v3896_v17, %v3356_v36 }
 0x618   : > { %v3904_v53 = vpop.f32.mrf.mxu0 }
 0x619   : > { %3949 = vst [vmem:[%s7092_s18 + $0x28] sm:$0xff] %v3933_v55  ;;  %v3905_v3 = vadd.f32 %v7079_v2, %v3904_v53 }
 0x61c   : > { %v3358_v12 = vpop.f32.mrf.mxu2 }
 0x61d   : > { %v3359_v14 = vadd.f32 %v7084_v31, %v3358_v12 }
 0x61f   : > { %v3934_v46 = vadd.f32 %v3899_v25, %v3359_v14 }
 0x620   : > { %v3907_v56 = vpop.f32.mrf.mxu0 }
 0x621   : > { %3950 = vst [vmem:[%s7092_s18 + $0x30] sm:$0xff] %v3934_v46  ;;  %v3908_v13 = vadd.f32 %v7079_v2, %v3907_v56 }
 0x624   : > { %v3361_v5 = vpop.f32.mrf.mxu2 }
 0x625   : > { %v3362_v27 = vadd.f32 %v7084_v31, %v3361_v5 }
 0x627   : > { %v3935_v59 = vadd.f32 %v3902_v11, %v3362_v27 }
 0x628   : > { %v3910_v62 = vpop.f32.mrf.mxu0 }
 0x629   : > { %3951 = vst [vmem:[%s7092_s18 + $0x38] sm:$0xff] %v3935_v59  ;;  %v3911_v21 = vadd.f32 %v7079_v2, %v3910_v62 }
 0x62c   : > { %v3364_v8 = vpop.f32.mrf.mxu2 }
 0x62d   : > { %v3365_v19 = vadd.f32 %v7084_v31, %v3364_v8 }
 0x62f   : > { %v3936_v41 = vadd.f32 %v3905_v3, %v3365_v19 }
 0x630   : > { %v3913_v44 = vpop.f32.mrf.mxu0 }
 0x631   : > { %3952 = vst [vmem:[%s7092_s18 + $0x40] sm:$0xff] %v3936_v41  ;;  %v3914_v16 = vadd.f32 %v7079_v2, %v3913_v44 }
 0x634   : > { %v3367_v10 = vpop.f32.mrf.mxu2 }
 0x635   : > { %v3368_v24 = vadd.f32 %v7084_v31, %v3367_v10 }
 0x637   : > { %v3937_v4 = vadd.f32 %v3908_v13, %v3368_v24 }
 0x638   : > { %v3916_v23 = vpop.f32.mrf.mxu0 }
 0x639   : > { %3953 = vst [vmem:[%s7092_s18 + $0x48] sm:$0xff] %v3937_v4  ;;  %v3917_v63 = vadd.f32 %v7079_v2, %v3916_v23 }
 0x63c   : > { %v3370_v26 = vpop.f32.mrf.mxu2 }
 0x63d   : > { %v3371_v42 = vadd.f32 %v7084_v31, %v3370_v26 }
 0x63f   : > { %v3938_v15 = vadd.f32 %v3911_v21, %v3371_v42 }
 0x640   : > { %v3919_v51 = vpop.f32.mrf.mxu0 }
 0x641   : > { %3954 = vst [vmem:[%s7092_s18 + $0x50] sm:$0xff] %v3938_v15  ;;  %v3920_v50 = vadd.f32 %v7079_v2, %v3919_v51 }
 0x644   : > { %v3373_v58 = vpop.f32.mrf.mxu2 }
 0x645   : > { %v3374_v43 = vadd.f32 %v7084_v31, %v3373_v58 }
 0x647   : > { %v3939_v45 = vadd.f32 %v3914_v16, %v3374_v43 }
 0x648   : > { %v3922_v22 = vpop.f32.mrf.mxu0 }
 0x649   : > { %3955 = vst [vmem:[%s7092_s18 + $0x58] sm:$0xff] %v3939_v45  ;;  %v3923_v37 = vadd.f32 %v7079_v2, %v3922_v22 }
 0x64c   : > { %v3376_v33 = vpop.f32.mrf.mxu2 }
 0x64d   : > { %v3377_v34 = vadd.f32 %v7084_v31, %v3376_v33 }
 0x64f   : > { %v3940_v7 = vadd.f32 %v3917_v63, %v3377_v34 }
 0x650   : > { %v3925_v32 = vpop.f32.mrf.mxu0 }
 0x651   : > { %3956 = vst [vmem:[%s7092_s18 + $0x60] sm:$0xff] %v3940_v7  ;;  %v3926_v28 = vadd.f32 %v7079_v2, %v3925_v32 }
 0x654   : > { %v3379_v29 = vpop.f32.mrf.mxu2 }
 0x655   : > { %v3380_v57 = vadd.f32 %v7084_v31, %v3379_v29 }
 0x657   : > { %v3941_v6 = vadd.f32 %v3920_v50, %v3380_v57 }
 0x659   : > { %3957 = vst [vmem:[%s7092_s18 + $0x68] sm:$0xff] %v3941_v6 }
 0x65c   : > { %v3382_v40 = vpop.f32.mrf.mxu2 }
 0x65d   : > { %v3383_v52 = vadd.f32 %v7084_v31, %v3382_v40 }
 0x65f   : > { %v3942_v47 = vadd.f32 %v3923_v37, %v3383_v52 }
 0x661   : > { %3958 = vst [vmem:[%s7092_s18 + $0x70] sm:$0xff] %v3942_v47 }
 0x664   : > { %v3385_v9 = vpop.f32.mrf.mxu2 }
 0x665   : > { %v3386_v18 = vadd.f32 %v7084_v31, %v3385_v9 }
 0x667   : > { %v3943_v20 = vadd.f32 %v3926_v28, %v3386_v18 }
 0x669   : > { %3959 = vst [vmem:[%s7092_s18 + $0x78] sm:$0xff] %v3943_v20 }
 0x66a PF: > { %s18_s21 = sadd.s32 1, %s5031_s21  }
 0x66b   : > { %p15_p7 = scmp.ge.s32.totalorder %s18_s21, 4  }
 0x66d   :  { %17 = sbr.rel (!%p15_p7) target bundleno = 2 (0x2), region = 94 }
 0x672   :  { %3982 = vsyncpa [#allocation3], 1 }
 0x673   :  { %3984 = vsyncpa [#allocation3 + $0x1], 1 }
 0x674   :  { %3985 = vsyncpa [#allocation5], 1 }

</bundles_post_ra>
